<compile_context>
chip_gen: v6e
topology: v6e:2x2x1
jax: 0.10.0
libtpu: 0.0.40
codegen_flags: <defaults>
</compile_context>

<pallas_src>
import jax
import jax.numpy as jnp
from jax.experimental import pallas as pl
from jax.experimental.pallas import tpu as pltpu


def _round_up(x, m):
    return ((x + m - 1) // m) * m


def _sine_layer_kernel(x_ref, w_ref, b_ref, o_ref):
    # x_ref: (tm, K)  w_ref: (K, Np)  b_ref: (1, Np)  o_ref: (tm, Np)
    # omega_0 is already folded into w_ref / b_ref.
    z = jnp.dot(x_ref[...], w_ref[...], preferred_element_type=jnp.float32)
    o_ref[...] = jnp.sin(z + b_ref[...]).astype(o_ref.dtype)


def sine_layer(x, w_t, b, omega_0=30.0, *, tm=512):
    """x: (M, K) f32, w_t: (K, N) f32 (= PyTorch weight transposed), b: (N,) f32."""
    M, K = x.shape
    K2, N = w_t.shape
    assert K == K2

    # Fold omega_0 into the parameters (once, on params -> genuinely free).
    w_s = (jnp.float32(omega_0) * w_t).astype(jnp.float32)
    b_s = (jnp.float32(omega_0) * b).astype(jnp.float32).reshape(1, N)

    # Lane-dense output: pad N up to a multiple of 128 (sliced off at the end).
    n_pad = _round_up(N, 128)
    if n_pad != N:
        w_s = jnp.pad(w_s, ((0, 0), (0, n_pad - N)))
        b_s = jnp.pad(b_s, ((0, 0), (0, n_pad - N)))

    # Batch tiling: no divisibility requirement; pad rows to a grid multiple.
    tm_eff = min(tm, _round_up(M, 8))
    m_pad = _round_up(M, tm_eff)
    x_p = jnp.pad(x, ((0, m_pad - M), (0, 0))) if m_pad != M else x
    grid_m = m_pad // tm_eff

    # VMEM budget: x tile + out tile double-buffered, weight + bias resident
    # (pipeline still allocates 2 bufs for them).  Keep an explicit limit so we
    # stay well under v7x's 64 MiB while allowing large tiles on v5e/v6e.
    vmem_bytes = 4 * (2 * tm_eff * K + 2 * tm_eff * n_pad + 2 * K * n_pad + 2 * n_pad)
    vmem_limit = int(min(max(vmem_bytes + (1 << 20), 32 << 20), 96 << 20))

    cost = pl.CostEstimate(
        flops=2 * M * K * N,
        transcendentals=M * N,
        bytes_accessed=4 * (M * K + K * N + M * N),
    )

    out = pl.pallas_call(
        _sine_layer_kernel,
        out_shape=jax.ShapeDtypeStruct((m_pad, n_pad), x.dtype),
        grid_spec=pltpu.PrefetchScalarGridSpec(
            num_scalar_prefetch=0,
            grid=(grid_m,),
            in_specs=[
                pl.BlockSpec((tm_eff, K), lambda i: (i, 0)),   # x tile (streamed)
                pl.BlockSpec((K, n_pad), lambda i: (0, 0)),    # full weight, resident
                pl.BlockSpec((1, n_pad), lambda i: (0, 0)),    # bias, resident
            ],
            out_specs=pl.BlockSpec((tm_eff, n_pad), lambda i: (i, 0)),
        ),
        compiler_params=pltpu.CompilerParams(
            dimension_semantics=("parallel",),
            vmem_limit_bytes=vmem_limit,
        ),
        cost_estimate=cost,
    )(x_p, w_s, b_s)

    return out[:M, :N]


def init_sine_layer_params(key, in_features, out_features, is_first, omega_0):
    """SIREN init matching SineLayer.init_weights (bias uses the PyTorch
    nn.Linear default: U(-1/sqrt(in), 1/sqrt(in)))."""
    kw, kb = jax.random.split(key)
    if is_first:
        bound_w = 1.0 / in_features
    else:
        bound_w = float(jnp.sqrt(6.0 / in_features) / omega_0)
    # PyTorch weight is (out_features, in_features); we store its transpose.
    weight = jax.random.uniform(
        kw, (out_features, in_features), jnp.float32, -bound_w, bound_w
    )
    bound_b = 1.0 / float(jnp.sqrt(jnp.float32(in_features)))
    bias = jax.random.uniform(kb, (out_features,), jnp.float32, -bound_b, bound_b)
    return weight.T, bias  # (in, out), (out,)


if __name__ == "__main__":
    key = jax.random.PRNGKey(0)
    k_x, k_p = jax.random.split(key)

    # Small SIREN hidden layer: 256 coordinates, in=64, out=128, is_first=True.
    batch, in_features, out_features = 256, 64, 128
    omega_0 = 30.0

    x = jax.random.uniform(k_x, (batch, in_features), jnp.float32, -1.0, 1.0)
    w_t, b = init_sine_layer_params(k_p, in_features, out_features,
                                    is_first=True, omega_0=omega_0)

    out = jax.block_until_ready(sine_layer(x, w_t, b, omega_0=omega_0))
    ref = jnp.sin(omega_0 * (x @ w_t + b[None, :]))
    assert out.shape == (batch, out_features)
    assert jnp.allclose(out, ref, atol=1e-4, rtol=1e-4)

    # Also exercise the padding paths: ragged batch + non-128-multiple width.
    x2 = jax.random.uniform(k_x, (37, in_features), jnp.float32, -1.0, 1.0)
    w_t2, b2 = init_sine_layer_params(k_p, in_features, 96,
                                      is_first=False, omega_0=omega_0)
    out2 = jax.block_until_ready(sine_layer(x2, w_t2, b2, omega_0=omega_0))
    ref2 = jnp.sin(omega_0 * (x2 @ w_t2 + b2[None, :]))
    assert out2.shape == (37, 96)
    assert jnp.allclose(out2, ref2, atol=1e-4, rtol=1e-4)

    print("KERNEL_OK")
</pallas_src>

<mosaic_0001>
module attributes {stable_mosaic.version = 11 : i64} {
  func.func @_sine_layer_kernel(%arg0: i32, %arg1: memref<256x64xf32, #tpu.memory_space<vmem>>, %arg2: memref<64x128xf32, #tpu.memory_space<vmem>>, %arg3: memref<1x128xf32, #tpu.memory_space<vmem>>, %arg4: memref<256x128xf32, #tpu.memory_space<vmem>>) attributes {dimension_semantics = [#tpu.dimension_semantics<parallel>], iteration_bounds = array<i64: 1>, scalar_prefetch = 0 : i64, scratch_operands = 0 : i64, tpu.core_type = #tpu.core_type<tc>, window_params = [{transform_indices = @transform_0, window_bounds = array<i64: 256, 64>}, {pipeline_mode = #tpu.pipeline_mode<synchronous>, transform_indices = @transform_1, window_bounds = array<i64: 64, 128>}, {pipeline_mode = #tpu.pipeline_mode<synchronous>, transform_indices = @transform_2, window_bounds = array<i64: 1, 128>}, {transform_indices = @transform_3, window_bounds = array<i64: 256, 128>}]} {
    %c0 = arith.constant 0 : index
    %c0_0 = arith.constant 0 : index
    %0 = vector.load %arg1[%c0, %c0_0] : memref<256x64xf32, #tpu.memory_space<vmem>>, vector<256x64xf32>
    %c0_1 = arith.constant 0 : index
    %c0_2 = arith.constant 0 : index
    %1 = vector.load %arg2[%c0_1, %c0_2] : memref<64x128xf32, #tpu.memory_space<vmem>>, vector<64x128xf32>
    %cst = arith.constant dense<0.000000e+00> : vector<256x128xf32>
    %2 = tpu.matmul %0, %1, %cst {dimension_numbers = #tpu.dot_dimension_numbers<[1], [0], [0], [1], [0, 0, 1, 1], [], []>} : vector<256x64xf32>, vector<64x128xf32>, vector<256x128xf32> -> vector<256x128xf32>
    %c0_3 = arith.constant 0 : index
    %c0_4 = arith.constant 0 : index
    %3 = vector.load %arg3[%c0_3, %c0_4] : memref<1x128xf32, #tpu.memory_space<vmem>>, vector<1x128xf32>
    %4 = vector.broadcast %3 : vector<1x128xf32> to vector<256x128xf32>
    %5 = arith.addf %2, %4 : vector<256x128xf32>
    %6 = math.sin %5 : vector<256x128xf32>
    %c0_5 = arith.constant 0 : index
    %c0_6 = arith.constant 0 : index
    %7 = vector.load %arg4[%c0_5, %c0_6] : memref<256x128xf32, #tpu.memory_space<vmem>>, vector<256x128xf32>
    tpu.vector_store %arg4[%c0_5, %c0_6], %6 {strides = array<i32>} : memref<256x128xf32, #tpu.memory_space<vmem>>, vector<256x128xf32>,
    return
  }
  func.func @transform_0(%arg0: i32) -> (i32, i32) {
    %c0_i32 = arith.constant 0 : i32
    %c0_i32_0 = arith.constant 0 : i32
    return %arg0, %c0_i32 : i32, i32
  }
  func.func @transform_1(%arg0: i32) -> (i32, i32) {
    %c0_i32 = arith.constant 0 : i32
    %c0_i32_0 = arith.constant 0 : i32
    %c0_i32_1 = arith.constant 0 : i32
    return %c0_i32, %c0_i32_0 : i32, i32
  }
  func.func @transform_2(%arg0: i32) -> (i32, i32) {
    %c0_i32 = arith.constant 0 : i32
    %c0_i32_0 = arith.constant 0 : i32
    %c0_i32_1 = arith.constant 0 : i32
    return %c0_i32, %c0_i32_0 : i32, i32
  }
  func.func @transform_3(%arg0: i32) -> (i32, i32) {
    %c0_i32 = arith.constant 0 : i32
    %c0_i32_0 = arith.constant 0 : i32
    return %arg0, %c0_i32 : i32, i32
  }
}

</mosaic_0001>

<bundles_post_ra>
// kernel: tpu_custom_call.1
= control target key start
LH: loop header
LB: loop body
LE: loop exit
PB: predicated region body
PF: predicated region fallthrough
CT: control target
= control target key end

     0   :  { %s6866_s0 = inlined_call_operand.vmem [shape: f32[256,64], index: 0, kind: input, shape index: {}]   ;;  %s6867_s1 = inlined_call_operand.vmem [shape: f32[64,128], index: 1, kind: input, shape index: {}]   ;;  %s6868_s2 = inlined_call_operand.vmem [shape: f32[1,128], index: 2, kind: input, shape index: {}]   ;;  %s6869_s3 = inlined_call_operand.hbm [shape: f32[256,128], index: 3, kind: output, shape index: {}]  }
   0x1   :  { %v54_v0 = vld [vmem:[%s6867_s1 + $0x38] sm:$0xff]  ;;  %v53_v1 = vld [vmem:[%s6867_s1 + $0x30] sm:$0xff]  ;;  %v52_v2 = vld [vmem:[%s6867_s1 + $0x28] sm:$0xff] }
   0x2   :  { %3961 = vmatprep.subr.mxu0 %v54_v0  ;;  %4025 = vmatprep.subr.mxu1 %v54_v0  ;;  %v51_v3 = vld [vmem:[%s6867_s1 + $0x20] sm:$0xff]  ;;  %v50_v4 = vld [vmem:[%s6867_s1 + $0x18] sm:$0xff]  ;;  %v49_v5 = vld [vmem:[%s6867_s1 + $0x10] sm:$0xff] }
   0x3   :  { %3962 = vmatpush3.msra.mxu0 %v54_v0  ;;  %4033 = vmatpush3.msra.mxu1 %v54_v0  ;;  %v48_v6 = vld [vmem:[%s6867_s1 + $0x8] sm:$0xff]  ;;  %v47_v7 = vld [vmem:[%s6867_s1] sm:$0xff] }
   0x4   :  { %3963 = vmatprep.subr.mxu0 %v53_v1  ;;  %4026 = vmatprep.subr.mxu1 %v53_v1 }
   0x5   :  { %3964 = vmatpush3.msra.mxu0 %v53_v1  ;;  %4034 = vmatpush3.msra.mxu1 %v53_v1 }
   0x6   :  { %3965 = vmatprep.subr.mxu0 %v52_v2  ;;  %4027 = vmatprep.subr.mxu1 %v52_v2 }
   0x7   :  { %3966 = vmatpush3.msra.mxu0 %v52_v2  ;;  %4035 = vmatpush3.msra.mxu1 %v52_v2 }
   0x8   :  { %3967 = vmatprep.subr.mxu0 %v51_v3  ;;  %4028 = vmatprep.subr.mxu1 %v51_v3 }
   0x9   :  { %3968 = vmatpush3.msra.mxu0 %v51_v3  ;;  %4036 = vmatpush3.msra.mxu1 %v51_v3 }
   0xa   :  { %3969 = vmatprep.subr.mxu0 %v50_v4  ;;  %4029 = vmatprep.subr.mxu1 %v50_v4 }
   0xb   :  { %3970 = vmatpush3.msra.mxu0 %v50_v4  ;;  %4037 = vmatpush3.msra.mxu1 %v50_v4 }
   0xc   :  { %3971 = vmatprep.subr.mxu0 %v49_v5  ;;  %4030 = vmatprep.subr.mxu1 %v49_v5 }
   0xd   :  { %3972 = vmatpush3.msra.mxu0 %v49_v5  ;;  %4038 = vmatpush3.msra.mxu1 %v49_v5 }
   0xe   :  { %3973 = vmatprep.subr.mxu0 %v48_v6  ;;  %4031 = vmatprep.subr.mxu1 %v48_v6 }
   0xf   :  { %8 = vsyncpa [#allocation3], 0  ;;  %3974 = vmatpush3.msra.mxu0 %v48_v6  ;;  %4039 = vmatpush3.msra.mxu1 %v48_v6  ;;  %v15_v8 = vld [vmem:[%s6866_s0] sm:$0xff]  ;;  %vm62_vm0 = vcmask 523264   ;;  %v16_v10 = vld [vmem:[%s6866_s0 + $0x8] sm:$0xff] }
  0x10   :  { %v31_v9 = vld [vmem:[%s6866_s0 + $0x80] sm:$0xff]  ;;  %3975 = vmatprep.subr.mxu0 %v47_v7  ;;  %4032 = vmatprep.subr.mxu1 %v47_v7  ;;  %v32_v11 = vld [vmem:[%s6866_s0 + $0x88] sm:$0xff]  ;;  %v17_v12 = vld [vmem:[%s6866_s0 + $0x10] sm:$0xff] }
  0x11   :  { %3976 = vmatpush3.msra.mxu0 %v47_v7  ;;  %4040 = vmatpush3.msra.mxu1 %v47_v7  ;;  %v33_v13 = vld [vmem:[%s6866_s0 + $0x90] sm:$0xff]  ;;  %v18_v14 = vld [vmem:[%s6866_s0 + $0x18] sm:$0xff]  ;;  %v19_v16 = vld [vmem:[%s6866_s0 + $0x20] sm:$0xff] }
  0x12   :  { %3977 = vmatprep.mubr.msk.f32.mxu0 %vm62_vm0, %v15_v8  ;;  %4001 = vmatprep.mubr.msk.f32.mxu1 %vm62_vm0, %v31_v9  ;;  %v34_v15 = vld [vmem:[%s6866_s0 + $0x98] sm:$0xff]  ;;  %v35_v17 = vld [vmem:[%s6866_s0 + $0xa0] sm:$0xff]  ;;  %v20_v18 = vld [vmem:[%s6866_s0 + $0x28] sm:$0xff] }
  0x13   :  { %3978 = vmatmul.mubr.msk.f32.vlgmr.msra.gmra.mxu0 %vm62_vm0, %v16_v10  ;;  %4002 = vmatmul.mubr.msk.f32.vlgmr.msra.gmra.mxu1 %vm62_vm0, %v32_v11  ;;  %v36_v19 = vld [vmem:[%s6866_s0 + $0xa8] sm:$0xff]  ;;  %v21_v20 = vld [vmem:[%s6866_s0 + $0x30] sm:$0xff]  ;;  %v22_v22 = vld [vmem:[%s6866_s0 + $0x38] sm:$0xff] }
  0x14   :  { %3980 = vmatprep.mubr.msk.f32.mxu0 %vm62_vm0, %v17_v12  ;;  %4004 = vmatprep.mubr.msk.f32.mxu1 %vm62_vm0, %v33_v13  ;;  %v37_v21 = vld [vmem:[%s6866_s0 + $0xb0] sm:$0xff]  ;;  %v38_v23 = vld [vmem:[%s6866_s0 + $0xb8] sm:$0xff]  ;;  %v23_v24 = vld [vmem:[%s6866_s0 + $0x40] sm:$0xff]  ;;  %v4333_v12 = vmov 683565275  }
  0x15   :  { %v39_v25 = vld [vmem:[%s6866_s0 + $0xc0] sm:$0xff]  ;;  %v24_v26 = vld [vmem:[%s6866_s0 + $0x48] sm:$0xff]  ;;  %v25_v28 = vld [vmem:[%s6866_s0 + $0x50] sm:$0xff] }
  0x16   :  { %v40_v27 = vld [vmem:[%s6866_s0 + $0xc8] sm:$0xff]  ;;  %v41_v29 = vld [vmem:[%s6866_s0 + $0xd0] sm:$0xff]  ;;  %v26_v30 = vld [vmem:[%s6866_s0 + $0x58] sm:$0xff] }
  0x17   :  { %3981 = vmatmul.mubr.msk.f32.gmra.mxu0 %vm62_vm0, %v18_v14  ;;  %4005 = vmatmul.mubr.msk.f32.gmra.mxu1 %vm62_vm0, %v34_v15  ;;  %v42_v31 = vld [vmem:[%s6866_s0 + $0xd8] sm:$0xff]  ;;  %v27_v32 = vld [vmem:[%s6866_s0 + $0x60] sm:$0xff]  ;;  %v28_v34 = vld [vmem:[%s6866_s0 + $0x68] sm:$0xff] }
  0x18   :  { %3983 = vmatprep.mubr.msk.f32.mxu0 %vm62_vm0, %v19_v16  ;;  %4007 = vmatprep.mubr.msk.f32.mxu1 %vm62_vm0, %v35_v17  ;;  %v43_v33 = vld [vmem:[%s6866_s0 + $0xe0] sm:$0xff]  ;;  %v44_v35 = vld [vmem:[%s6866_s0 + $0xe8] sm:$0xff]  ;;  %v29_v36 = vld [vmem:[%s6866_s0 + $0x70] sm:$0xff]  ;;  %v4334_v16 = vmov 2475754826  }
  0x19   :  { %v45_v37 = vld [vmem:[%s6866_s0 + $0xf0] sm:$0xff]  ;;  %v30_v38 = vld [vmem:[%s6866_s0 + $0x78] sm:$0xff]  ;;  %v4517_v40 = vld [vmem:[%s6868_s2] ss:$0 sm:$0xff] }
  0x1a   :  { %v46_v39 = vld [vmem:[%s6866_s0 + $0xf8] sm:$0xff] }
  0x1b   :  { %3984 = vmatmul.mubr.msk.f32.gmra.mxu0 %vm62_vm0, %v20_v18  ;;  %4008 = vmatmul.mubr.msk.f32.gmra.mxu1 %vm62_vm0, %v36_v19  ;;  %v4335_v18 = vmov 2131351028  }
  0x1c   :  { %3986 = vmatprep.mubr.msk.f32.mxu0 %vm62_vm0, %v21_v20  ;;  %4010 = vmatprep.mubr.msk.f32.mxu1 %vm62_vm0, %v37_v21  ;;  %v4336_v20 = vmov 2102212464  }
  0x1f   :  { %3987 = vmatmul.mubr.msk.f32.gmra.mxu0 %vm62_vm0, %v22_v22  ;;  %4011 = vmatmul.mubr.msk.f32.gmra.mxu1 %vm62_vm0, %v38_v23  ;;  %v4337_v22 = vmov 920167782  }
  0x20   :  { %3989 = vmatprep.mubr.msk.f32.mxu0 %vm62_vm0, %v23_v24  ;;  %4013 = vmatprep.mubr.msk.f32.mxu1 %vm62_vm0, %v39_v25 }
  0x23   :  { %3990 = vmatmul.mubr.msk.f32.gmra.mxu0 %vm62_vm0, %v24_v26  ;;  %4014 = vmatmul.mubr.msk.f32.gmra.mxu1 %vm62_vm0, %v40_v27 }
  0x24   :  { %3992 = vmatprep.mubr.msk.f32.mxu0 %vm62_vm0, %v25_v28  ;;  %4016 = vmatprep.mubr.msk.f32.mxu1 %vm62_vm0, %v41_v29  ;;  %v4338_v29 = vmov 1326507024  }
  0x27   :  { %3993 = vmatmul.mubr.msk.f32.gmra.mxu0 %vm62_vm0, %v26_v30  ;;  %4017 = vmatmul.mubr.msk.f32.gmra.mxu1 %vm62_vm0, %v42_v31 }
  0x28   :  { %3995 = vmatprep.mubr.msk.f32.mxu0 %vm62_vm0, %v27_v32  ;;  %4019 = vmatprep.mubr.msk.f32.mxu1 %vm62_vm0, %v43_v33 }
  0x2b   :  { %3996 = vmatmul.mubr.msk.f32.gmra.mxu0 %vm62_vm0, %v28_v34  ;;  %4020 = vmatmul.mubr.msk.f32.gmra.mxu1 %vm62_vm0, %v44_v35 }
  0x2c   :  { %3998 = vmatprep.mubr.msk.f32.mxu0 %vm62_vm0, %v29_v36  ;;  %4022 = vmatprep.mubr.msk.f32.mxu1 %vm62_vm0, %v45_v37 }
  0x2f   :  { %3999 = vmatmul.mubr.msk.f32.gmra.mxu0 %vm62_vm0, %v30_v38  ;;  %4023 = vmatmul.mubr.msk.f32.gmra.mxu1 %vm62_vm0, %v46_v39 }
  0xd3   :  { %v3979_v41 = vpop.f32.mrf.mxu0  ;;  %v4003_v42 = vpop.f32.mrf.mxu1 }
  0xd4   :  { %v4520_v43 = vadd.f32 %v3979_v41, %v4517_v40  ;;  %v4523_v44 = vadd.f32 %v4003_v42, %v4517_v40 }
  0xd5   :  { %v225_v45 = vpop.f32.mrf.mxu0  ;;  %v305_v0 = vpop.f32.mrf.mxu1 }
  0xd6   :  { %v488_v46 = vand.u32 2147483647, %v4520_v43  ;;  %v491_v47 = vand.u32 2139095040, %v4520_v43  ;;  %v2152_v48 = vand.u32 2147483647, %v4523_v44  ;;  %v2155_v49 = vand.u32 2139095040, %v4523_v44 }
  0xd7   :  { %v4532_v52 = vadd.f32 %v4517_v40, %v225_v45  ;;  %v4539_v6 = vadd.f32 %v4517_v40, %v305_v0  ;;  %vm490_vm14 = vcmp.lt.s32.totalorder %v4520_v43, 0 }
  0xd8   :  { %v492_v50 = vshrl.u32 %v491_v47, 23  ;;  %v495_v51 = vand.u32 8388607, %v488_v46  ;;  %v2156_v53 = vshrl.u32 %v2155_v49, 23  ;;  %v2159_v54 = vand.u32 8388607, %v2152_v48 }
  0xd9   :  { %v387_v57 = vand.u32 2139095040, %v4532_v52  ;;  %v384_v62 = vand.u32 2147483647, %v4532_v52  ;;  %vm4644_vm15 = vcmp.le.f32.partialorder %v488_v46, 0.7853982 }
  0xda   :  { %v3797_v55 = vadd.s32 4294967169, %v492_v50  ;;  %v3861_v56 = vadd.s32 4294967169, %v2156_v53  ;;  %v496_v58 = vor.u32 8388608, %v495_v51  ;;  %v2160_v60 = vor.u32 8388608, %v2159_v54 }
  0xdb   :  { %v388_v63 = vshrl.u32 %v387_v57, 23  ;;  %v4549_v10 = vand.u32 8388607, %v384_v62 }
  0xdc   :  { %v498_v59 = vadd.s32 1, %v3797_v55  ;;  %v2162_v61 = vadd.s32 1, %v3861_v56  ;;  %v4541_v7 = vshll.u32 %v496_v58, 8  ;;  %v4545_v9 = vshll.u32 %v2160_v60, 8 }
  0xdd   :  { %v3793_v2 = vadd.s32 4294967169, %v388_v63 }
  0xde   :  { %vm499_vm1 = vcmp.gt.s32.totalorder %v498_v59, 0  ;;  %vm2163_vm2 = vcmp.gt.s32.totalorder %v2162_v61, 0 }
  0xdf   :  { %v500_v1 = vsel %vm499_vm1, %v498_v59, 0  ;;  %v2164_v5 = vsel %vm2163_vm2, %v2162_v61, 0  ;;  %v4552_v15 = vadd.s32 1, %v3793_v2 }
  0xe0   :  { %v501_v3 = vshrl.u32 %v500_v1, 5  ;;  %v502_v4 = vand.u32 31, %v500_v1  ;;  %v4543_v8 = vshrl.u32 %v2164_v5, 5  ;;  %v2166_v14 = vand.u32 31, %v2164_v5 }
  0xe1   :  { %vm395_vm12 = vcmp.gt.s32.totalorder %v4552_v15, 0 }
  0xe2   :  { %v503_v11 = vsub.s32 32, %v502_v4  ;;  %v505_v13 = vshll.u32 %v4333_v12, %v502_v4  ;;  %v508_v17 = vshll.u32 %v4334_v16, %v502_v4  ;;  %v511_v19 = vshll.u32 %v4335_v18, %v502_v4 }
  0xe3   :  { %v514_v21 = vshll.u32 %v4336_v20, %v502_v4  ;;  %v517_v23 = vshll.u32 %v4337_v22, %v502_v4  ;;  %vm520_vm3 = vcmp.lt.s32.totalorder %v501_v3, 1  ;;  %vm521_vm4 = vcmp.lt.s32.totalorder %v501_v3, 2 }
  0xe4   :  { %v506_v24 = vshrl.u32 %v4334_v16, %v503_v11  ;;  %v509_v25 = vshrl.u32 %v4335_v18, %v503_v11  ;;  %v512_v26 = vshrl.u32 %v4336_v20, %v503_v11  ;;  %v504_v27 = vshrl.u32 %v4333_v12, %v503_v11 }
  0xe5   :  { %v515_v28 = vshrl.u32 %v4337_v22, %v503_v11  ;;  %v518_v30 = vshrl.u32 %v4338_v29, %v503_v11  ;;  %v2167_v34 = vsub.s32 32, %v2166_v14  ;;  %vm522_vm5 = vcmp.lt.s32.totalorder %v501_v3, 3 }
  0xe6   :  { %v507_v31 = vor.u32 %v506_v24, %v505_v13  ;;  %v510_v32 = vor.u32 %v509_v25, %v508_v17  ;;  %v513_v33 = vor.u32 %v512_v26, %v511_v19  ;;  %vm523_vm6 = vcmp.lt.s32.totalorder %v501_v3, 4 }
  0xe7   :  { %v516_v35 = vor.u32 %v515_v28, %v514_v21  ;;  %v519_v36 = vor.u32 %v518_v30, %v517_v23  ;;  %v2169_v49 = vshll.u32 %v4333_v12, %v2166_v14  ;;  %v2170_v53 = vshrl.u32 %v4334_v16, %v2167_v34 }
  0xe8   :  { %v524_v37 = vsel %vm520_vm3, %v504_v27, %v507_v31  ;;  %v525_v38 = vsel %vm523_vm6, %v513_v33, 2102212464  ;;  %v528_v39 = vsel %vm520_vm3, %v507_v31, %v510_v32  ;;  %v532_v41 = vsel %vm520_vm3, %v510_v32, %v513_v33 }
  0xe9   :  { %v526_v42 = vsel %vm522_vm5, %v510_v32, %v525_v38  ;;  %v529_v45 = vsel %vm523_vm6, %v516_v35, 920167782  ;;  %v533_v47 = vsel %vm523_vm6, %v519_v36, 1326507024  ;;  %v2172_v54 = vshll.u32 %v4334_v16, %v2166_v14 }
  0xea   :  { %v530_v50 = vsel %vm522_vm5, %v513_v33, %v529_v45  ;;  %v534_v51 = vsel %vm522_vm5, %v516_v35, %v533_v47  ;;  %v527_v55 = vsel %vm521_vm4, %v524_v37, %v526_v42  ;;  %v2173_v58 = vshrl.u32 %v4335_v18, %v2167_v34 }
  0xeb   :  { %v531_v56 = vsel %vm521_vm4, %v528_v39, %v530_v50  ;;  %v535_v57 = vsel %vm521_vm4, %v532_v41, %v534_v51  ;;  %v2171_v0 = vor.u32 %v2170_v53, %v2169_v49  ;;  %v2175_v2 = vshll.u32 %v4335_v18, %v2166_v14 }
  0xec   :  { %v4575_v59 = vmul.u32.u64.low %v4541_v7, %v535_v57  ;;  %v4576_v60 = vmul.u32.u64.high %v4541_v7, %v535_v57, %v4575_v59  ;;  %v4579_v61 = vmul.u32.u64.low %v4541_v7, %v531_v56  ;;  %v4580_v63 = vmul.u32.u64.high %v4541_v7, %v531_v56, %v4579_v61 }
  0xed   :  { %v2174_v1 = vor.u32 %v2173_v58, %v2172_v54  ;;  %v2176_v4 = vshrl.u32 %v4336_v20, %v2167_v34  ;;  %v2168_v5 = vshrl.u32 %v4333_v12, %v2167_v34  ;;  %v2178_v3 = vshll.u32 %v4336_v20, %v2166_v14 }
  0xee   :  { %v2179_v11 = vshrl.u32 %v4337_v22, %v2167_v34  ;;  %v2182_v13 = vshrl.u32 %v4338_v29, %v2167_v34  ;;  %v543_v17 = vmul.u32 %v4541_v7, %v527_v55  ;;  %v2181_v21 = vshll.u32 %v4337_v22, %v2166_v14 }
  0xef   :  { %v2177_v19 = vor.u32 %v2176_v4, %v2175_v2  ;;  %vm2184_vm7 = vcmp.lt.s32.totalorder %v4543_v8, 1  ;;  %vm545_vm8 = vc.u32 %v4576_v60, %v4579_v61  ;;  %v546_v23 = vadd.s32 1, %v4580_v63 }
  0xf0   :  { %v2180_v24 = vor.u32 %v2179_v11, %v2178_v3  ;;  %vm2185_vm9 = vcmp.lt.s32.totalorder %v4543_v8, 2  ;;  %v2183_v25 = vor.u32 %v2182_v13, %v2181_v21  ;;  %vm2186_vm10 = vcmp.lt.s32.totalorder %v4543_v8, 3 }
  0xf1   :  { %vm2187_vm11 = vcmp.lt.s32.totalorder %v4543_v8, 4  ;;  %v2192_v26 = vsel %vm2184_vm7, %v2171_v0, %v2174_v1  ;;  %v547_v7 = vsel %vm545_vm8, %v546_v23, %v4580_v63  ;;  %v2196_v14 = vsel %vm2184_vm7, %v2174_v1, %v2177_v19 }
  0xf2   :  { %v2189_v27 = vsel %vm2187_vm11, %v2177_v19, 2102212464  ;;  %v2193_v28 = vsel %vm2187_vm11, %v2180_v24, 920167782  ;;  %v548_v30 = vadd.s32 %v547_v7, %v543_v17  ;;  %v2188_v31 = vsel %vm2184_vm7, %v2168_v5, %v2171_v0 }
  0xf3   :  { %v2194_v32 = vsel %vm2186_vm10, %v2177_v19, %v2193_v28  ;;  %v2197_v33 = vsel %vm2187_vm11, %v2183_v25, 1326507024  ;;  %v2190_v34 = vsel %vm2186_vm10, %v2174_v1, %v2189_v27  ;;  %v396_v47 = vsel %vm395_vm12, %v4552_v15, 0 }
  0xf4   :  { %v2195_v35 = vsel %vm2185_vm9, %v2192_v26, %v2194_v32  ;;  %v2198_v36 = vsel %vm2186_vm10, %v2180_v24, %v2197_v33  ;;  %v549_v37 = vadd.s32 536870912, %v548_v30  ;;  %v2191_v50 = vsel %vm2185_vm9, %v2188_v31, %v2190_v34 }
  0xf5   :  { %v2199_v38 = vsel %vm2185_vm9, %v2196_v14, %v2198_v36  ;;  %v4603_v39 = vmul.u32.u64.low %v4545_v9, %v2195_v35  ;;  %v4604_v41 = vmul.u32.u64.high %v4545_v9, %v2195_v35, %v4603_v39  ;;  %v398_v51 = vand.u32 31, %v396_v47 }
  0xf6   :  { %v4608_v42 = vmul.u32.u64.low %v4545_v9, %v2199_v38  ;;  %v4609_v45 = vmul.u32.u64.high %v4545_v9, %v2199_v38, %v4608_v42  ;;  %v550_v49 = vshrl.u32 %v549_v37, 30  ;;  %v2051_v53 = vand.u32 2139095040, %v4539_v6 }
  0xf7   :  { %v2210_v55 = vadd.s32 1, %v4604_v41  ;;  %v392_v56 = vor.u32 8388608, %v4549_v10  ;;  %v2207_v57 = vmul.u32 %v4545_v9, %v2191_v50  ;;  %v399_v58 = vsub.s32 32, %v398_v51 }
  0xf8   :  { %v551_v54 = vshll.u32 %v550_v49, 30  ;;  %vm2209_vm13 = vc.u32 %v4609_v45, %v4603_v39  ;;  %v2052_v8 = vshrl.u32 %v2051_v53, 23  ;;  %v544_v0 = vadd.s32 %v4579_v61, %v4576_v60 }
  0xf9   :  { %v2211_v15 = vsel %vm2209_vm13, %v2210_v55, %v4604_v41  ;;  %v4626_v2 = vshll.u32 %v392_v56, 8  ;;  %v2048_v9 = vand.u32 2147483647, %v4539_v6  ;;  %v4629_v4 = vshrl.u32 %v396_v47, 5 }
  0xfa   :  { %v4620_v59 = vsub.s32 %v548_v30, %v551_v54  ;;  %v2212_v63 = vadd.s32 %v2211_v15, %v2207_v57  ;;  %v402_v5 = vshrl.u32 %v4334_v16, %v399_v58  ;;  %v405_v3 = vshrl.u32 %v4335_v18, %v399_v58 }
  0xfb   :  { %v408_v13 = vshrl.u32 %v4336_v20, %v399_v58  ;;  %v411_v17 = vshrl.u32 %v4337_v22, %v399_v58  ;;  %v4636_v60 = vadd.s32 4294967169, %v2052_v8  ;;  %v574_v61 = vsub.s32 4, %v550_v49 }
  0xfc   :  { %v554_v1 = vsub.s32 0, %v4620_v59  ;;  %v2213_v10 = vadd.s32 536870912, %v2212_v63  ;;  %v401_v21 = vshll.u32 %v4333_v12, %v398_v51  ;;  %v404_v23 = vshll.u32 %v4334_v16, %v398_v51 }
  0xfd   :  { %v407_v26 = vshll.u32 %v4335_v18, %v398_v51  ;;  %v410_v7 = vshll.u32 %v4336_v20, %v398_v51  ;;  %v414_v27 = vshrl.u32 %v4338_v29, %v399_v58  ;;  %v4654_v31 = vand.u32 8388607, %v2048_v9 }
  0xfe   :  { %v3798_v11 = vmin.u32 %v554_v1, %v4620_v59  ;;  %v4638_v19 = vshrl.u32 %v2213_v10, 30  ;;  %v403_v14 = vor.u32 %v402_v5, %v401_v21  ;;  %v406_v30 = vor.u32 %v405_v3, %v404_v23 }
  0xff   :  { %v409_v46 = vor.u32 %v408_v13, %v407_v26  ;;  %v412_v33 = vor.u32 %v411_v17, %v410_v7  ;;  %v413_v34 = vshll.u32 %v4337_v22, %v398_v51  ;;  %v575_v35 = vsel %vm490_vm14, %v574_v61, %v550_v49 }
 0x100   :  { %v556_v25 = vclz %v3798_v11  ;;  %v2215_v28 = vshll.u32 %v4638_v19, 30  ;;  %v400_v37 = vshrl.u32 %v4333_v12, %v399_v58  ;;  %vm416_vm0 = vcmp.lt.s32.totalorder %v4629_v4, 1 }
 0x101   :  { %v415_v38 = vor.u32 %v414_v27, %v413_v34  ;;  %vm417_vm2 = vcmp.lt.s32.totalorder %v4629_v4, 2  ;;  %vm418_vm3 = vcmp.lt.s32.totalorder %v4629_v4, 3  ;;  %vm2154_vm4 = vcmp.lt.s32.totalorder %v4523_v44, 0 }
 0x102   :  { %v3799_v32 = vadd.s32 4294967294, %v556_v25  ;;  %v4659_v36 = vsub.s32 %v2212_v63, %v2215_v28  ;;  %vm419_vm5 = vcmp.lt.s32.totalorder %v4629_v4, 4  ;;  %v424_v47 = vsel %vm416_vm0, %v403_v14, %v406_v30 }
 0x103   :  { %v421_v51 = vsel %vm419_vm5, %v409_v46, 2102212464  ;;  %v425_v53 = vsel %vm419_vm5, %v412_v33, 920167782  ;;  %v428_v57 = vsel %vm416_vm0, %v406_v30, %v409_v46  ;;  %v429_v63 = vsel %vm419_vm5, %v415_v38, 1326507024 }
 0x104   :  { %vm3800_vm1 = vcmp.lt.s32.totalorder %v3799_v32, 0  ;;  %v2218_v42 = vsub.s32 0, %v4659_v36  ;;  %v426_v56 = vsel %vm418_vm3, %v409_v46, %v425_v53  ;;  %v577_v1 = vsel %vm4644_vm15, 0, %v575_v35 }
 0x105   :  { %v559_v41 = vsel %vm3800_vm1, 0, %v3799_v32  ;;  %v427_v8 = vsel %vm417_vm2, %v424_v47, %v426_v56  ;;  %vm4682_vm6 = vcmp.le.f32.partialorder %v2152_v48, 0.7853982  ;;  %v420_v5 = vsel %vm416_vm0, %v400_v37, %v403_v14 }
 0x106   :  { %v560_v49 = vsub.s32 32, %v559_v41  ;;  %v564_v50 = vsub.s32 4294967266, %v559_v41  ;;  %v561_v54 = vshll.u32 %v4620_v59, %v559_v41  ;;  %v3862_v55 = vmin.u32 %v2218_v42, %v4659_v36 }
 0x107   :  { %v2238_v13 = vsub.s32 4, %v4638_v19  ;;  %v430_v17 = vsel %vm418_vm3, %v412_v33, %v429_v63  ;;  %v4696_v21 = vmul.u32.u64.low %v4626_v2, %v427_v8  ;;  %v4697_v23 = vmul.u32.u64.high %v4626_v2, %v427_v8, %v4696_v21 }
 0x108   :  { %v562_v58 = vshrl.u32 %v544_v0, %v560_v49  ;;  %v565_v15 = vadd.s32 127, %v564_v50  ;;  %v2220_v10 = vclz %v3862_v55  ;;  %v422_v0 = vsel %vm418_vm3, %v406_v30, %v421_v51  ;;  %v3982_v49 = vpop.f32.mrf.mxu0 }
 0x109   :  { %v431_v48 = vsel %vm417_vm2, %v428_v57, %v430_v17  ;;  %v423_v26 = vsel %vm417_vm2, %v420_v5, %v422_v0  ;;  %v581_v28 = vadd.s32 3, %v577_v1  ;;  %v2208_v14 = vadd.s32 %v4603_v39, %v4609_v45 }
 0x10a   :  { %v563_v3 = vor.u32 %v562_v58, %v561_v54  ;;  %v566_v11 = vshll.u32 %v565_v15, 23  ;;  %v3863_v61 = vadd.s32 4294967294, %v2220_v10  ;;  %v2058_v30 = vadd.s32 1, %v4636_v60 }
 0x10b   :  { %v4703_v7 = vmul.u32.u64.low %v4626_v2, %v431_v48  ;;  %v4704_v27 = vmul.u32.u64.high %v4626_v2, %v431_v48, %v4703_v7  ;;  %v2239_v34 = vsel %vm2154_vm4, %v2238_v13, %v4638_v19  ;;  %v439_v37 = vmul.u32 %v4626_v2, %v423_v26 }
 0x10c   :  { %v567_v25 = vor.u32 4788187, %v566_v11  ;;  %vm3864_vm7 = vcmp.lt.s32.totalorder %v3863_v61, 0  ;;  %v570_v46 = vcvt.s32.f32 %v563_v3  ;;  %v442_v38 = vadd.s32 1, %v4697_v23 }
 0x10d   :  { %v2223_v33 = vsel %vm3864_vm7, 0, %v3863_v61  ;;  %vm441_vm8 = vc.u32 %v4704_v27, %v4696_v21  ;;  %vm2059_vm9 = vcmp.gt.s32.totalorder %v2058_v30, 0  ;;  %v2241_v50 = vsel %vm4682_vm6, 0, %v2239_v34 }
 0x10e   :  { %v568_v32 = vand.u32 2147483647, %v567_v25  ;;  %v2224_v4 = vsub.s32 32, %v2223_v33  ;;  %v2228_v35 = vsub.s32 4294967266, %v2223_v33  ;;  %v2225_v42 = vshll.u32 %v4659_v36, %v2223_v33 }
 0x10f   :  { %v443_v60 = vsel %vm441_vm8, %v442_v38, %v4697_v23  ;;  %v2060_v47 = vsel %vm2059_vm9, %v2058_v30, 0  ;;  %v4723_v57 = vadd.f32 %v3982_v49, %v4517_v40  ;;  %v4728_v15 = vand.u32 3, %v581_v28 }
 0x110   :  { %v571_v41 = vmul.f32 %v570_v46, %v568_v32  ;;  %v2226_v39 = vshrl.u32 %v2208_v14, %v2224_v4  ;;  %v2229_v45 = vadd.s32 127, %v2228_v35  ;;  %v444_v2 = vadd.s32 %v443_v60, %v439_v37 }
 0x111   :  { %v2062_v51 = vand.u32 31, %v2060_v47  ;;  %v4730_v63 = vadd.s32 3, %v2241_v50  ;;  %v2056_v10 = vor.u32 8388608, %v4654_v31  ;;  %vm386_vm10 = vcmp.lt.s32.totalorder %v4532_v52, 0 }
 0x112   :  { %v572_v19 = vxor.u32 2147483648, %v571_v41  ;;  %v2227_v53 = vor.u32 %v2226_v39, %v2225_v42  ;;  %v2230_v54 = vshll.u32 %v2229_v45, 23  ;;  %v445_v55 = vadd.s32 536870912, %v444_v2 }
 0x113   :  { %v2063_v56 = vsub.s32 32, %v2062_v51  ;;  %v4736_v13 = vshrl.u32 %v2060_v47, 5  ;;  %v2065_v17 = vshll.u32 %v4333_v12, %v2062_v51  ;;  %v2068_v23 = vshll.u32 %v4334_v16, %v2062_v51 }
 0x114   :  { %v573_v36 = vsel %vm490_vm14, %v572_v19, %v571_v41  ;;  %v2231_v8 = vor.u32 4788187, %v2230_v54  ;;  %v446_v1 = vshrl.u32 %v445_v55, 30  ;;  %v2234_v3 = vcvt.s32.f32 %v2227_v53 }
 0x115   :  { %v576_v58 = vsel %vm4644_vm15, %v4520_v43, %v573_v36  ;;  %v2066_v5 = vshrl.u32 %v4334_v16, %v2063_v56  ;;  %v2069_v11 = vshrl.u32 %v4335_v18, %v2063_v56  ;;  %v2072_v61 = vshrl.u32 %v4336_v20, %v2063_v56 }
 0x116   :  { %4178 = vcosq.f32 %v576_v58  ;;  %v2232_v0 = vand.u32 2147483647, %v2231_v8  ;;  %v447_v24 = vshll.u32 %v446_v1, 30  ;;  %v2074_v31 = vshll.u32 %v4336_v20, %v2062_v51 }
 0x117   :  { %4180 = vsinq.f32 %v576_v58  ;;  %v2075_v25 = vshrl.u32 %v4337_v22, %v2063_v56  ;;  %v2067_v7 = vor.u32 %v2066_v5, %v2065_v17  ;;  %v2071_v28 = vshll.u32 %v4335_v18, %v2062_v51 }
 0x118   :  { %v2235_v48 = vmul.f32 %v2234_v3, %v2232_v0  ;;  %v4743_v26 = vsub.s32 %v444_v2, %v447_v24  ;;  %v699_v14 = vand.u32 2139095040, %v4723_v57  ;;  %v2070_v32 = vor.u32 %v2069_v11, %v2068_v23 }
 0x119   :  { %v2076_v46 = vor.u32 %v2075_v25, %v2074_v31  ;;  %v2078_v33 = vshrl.u32 %v4338_v29, %v2063_v56  ;;  %v440_v34 = vadd.s32 %v4696_v21, %v4704_v27  ;;  %v2073_v35 = vor.u32 %v2072_v61, %v2071_v28 }
 0x11a   :  { %v2236_v30 = vxor.u32 2147483648, %v2235_v48  ;;  %v450_v4 = vsub.s32 0, %v4743_v26  ;;  %v2077_v37 = vshll.u32 %v4337_v22, %v2062_v51  ;;  %vm587_vm11 = vcmp.eq.s32.totalorder %v4728_v15, 2 }
 0x11b   :  { %v470_v41 = vsub.s32 4, %v446_v1  ;;  %vm2080_vm12 = vcmp.lt.s32.totalorder %v4736_v13, 1  ;;  %v2096_v42 = vshll.u32 %v2056_v10, 8  ;;  %vm584_vm13 = vcmp.eq.s32.totalorder %v4728_v15, 0 }
 0x11c   :  { %v2237_v38 = vsel %vm2154_vm4, %v2236_v30, %v2235_v48  ;;  %v3794_v27 = vmin.u32 %v450_v4, %v4743_v26  ;;  %v2079_v39 = vor.u32 %v2078_v33, %v2077_v37  ;;  %vm2083_vm14 = vcmp.lt.s32.totalorder %v4736_v13, 4 }
 0x11d   :  { %v2240_v21 = vsel %vm4682_vm6, %v4523_v44, %v2237_v38  ;;  %vm583_vm15 = vcmp.lt.s32.totalorder %v4728_v15, 2  ;;  %v2064_v45 = vshrl.u32 %v4333_v12, %v2063_v56  ;;  %v2088_v60 = vsel %vm2080_vm12, %v2067_v7, %v2070_v32 }
 0x11e   :  { %4182 = vcosq.f32 %v2240_v21  ;;  %v2089_v47 = vsel %vm2083_vm14, %v2076_v46, 920167782  ;;  %vm580_vm0 = vweird.f32 %v4520_v43  ;;  %vm4771_vm1 = vcmp.le.f32.partialorder %v384_v62, 0.7853982 }
 0x11f   :  { %4184 = vsinq.f32 %v2240_v21  ;;  %v452_v49 = vclz %v3794_v27  ;;  %vm2082_vm2 = vcmp.lt.s32.totalorder %v4736_v13, 3  ;;  %v2085_v19 = vsel %vm2083_vm14, %v2073_v35, 2102212464 }
 0x120   :  { %v471_v50 = vsel %vm386_vm10, %v470_v41, %v446_v1  ;;  %vm2081_vm3 = vcmp.lt.s32.totalorder %v4736_v13, 2  ;;  %v2090_v2 = vsel %vm2082_vm2, %v2073_v35, %v2089_v47  ;;  %v2092_v51 = vsel %vm2080_vm12, %v2070_v32, %v2073_v35 }
 0x121   :  { %v3795_v53 = vadd.s32 4294967294, %v452_v49  ;;  %v2084_v62 = vsel %vm2080_vm12, %v2064_v45, %v2067_v7  ;;  %v2091_v54 = vsel %vm2081_vm3, %v2088_v60, %v2090_v2  ;;  %v2093_v36 = vsel %vm2083_vm14, %v2079_v39, 1326507024 }
 0x122   :  { %v2086_v56 = vsel %vm2082_vm2, %v2070_v32, %v2085_v19  ;;  %v2094_v58 = vsel %vm2082_vm2, %v2076_v46, %v2093_v36  ;;  %v4789_v8 = vmul.u32.u64.low %v2096_v42, %v2091_v54  ;;  %v4790_v1 = vmul.u32.u64.high %v2096_v42, %v2091_v54, %v4789_v8 }
 0x123   :  { %v4179_v55 = vpop.eup %4178  ;;  %vm3796_vm4 = vcmp.lt.s32.totalorder %v3795_v53, 0  ;;  %v2095_v0 = vsel %vm2081_vm3, %v2092_v51, %v2094_v58  ;;  %v700_v3 = vshrl.u32 %v699_v14, 23  ;;  %v2087_v25 = vsel %vm2081_vm3, %v2084_v62, %v2086_v56 }
 0x124   :  { %v4181_v10 = vpop.eup %4180  ;;  %v588_v5 = vxor.u32 2147483648, %v4179_v55  ;;  %v455_v24 = vsel %vm3796_vm4, 0, %v3795_v53  ;;  %v4795_v17 = vmul.u32.u64.low %v2096_v42, %v2095_v0  ;;  %v4796_v61 = vmul.u32.u64.high %v2096_v42, %v2095_v0, %v4795_v17 }
 0x125   :  { %v585_v11 = vxor.u32 2147483648, %v4181_v10  ;;  %v456_v23 = vsub.s32 32, %v455_v24  ;;  %v460_v31 = vsub.s32 4294967266, %v455_v24  ;;  %v2246_v28 = vand.u32 3, %v4730_v63  ;;  %v4006_v63 = vpop.f32.mrf.mxu1 }
 0x126   :  { %v589_v48 = vsel %vm587_vm11, %v588_v5, %v4181_v10  ;;  %v2106_v14 = vadd.s32 1, %v4790_v1  ;;  %v3805_v30 = vadd.s32 4294967169, %v700_v3  ;;  %v457_v46 = vshll.u32 %v4743_v26, %v455_v24 }
 0x127   :  { %v586_v7 = vsel %vm584_vm13, %v4179_v55, %v585_v11  ;;  %v458_v33 = vshrl.u32 %v440_v34, %v456_v23  ;;  %v461_v4 = vadd.s32 127, %v460_v31  ;;  %v473_v13 = vsel %vm4771_vm1, 0, %v471_v50 }
 0x128   :  { %v590_v32 = vsel %vm583_vm15, %v586_v7, %v589_v48  ;;  %v2103_v37 = vmul.u32 %v2096_v42, %v2087_v25  ;;  %vm2105_vm5 = vc.u32 %v4796_v61, %v4789_v8  ;;  %v706_v21 = vadd.s32 1, %v3805_v30 }
 0x129   :  { %v591_v35 = vsel %vm580_vm0, nan, %v590_v32  ;;  %v459_v38 = vor.u32 %v458_v33, %v457_v46  ;;  %v462_v41 = vshll.u32 %v461_v4, 23  ;;  %v2107_v15 = vsel %vm2105_vm5, %v2106_v14, %v4790_v1 }
 0x12a   :  { %3713 = vst [vmem:[#allocation2 + $0x8] sm:$0xff] %v591_v35  ;;  %v2108_v26 = vadd.s32 %v2107_v15, %v2103_v37  ;;  %v696_v34 = vand.u32 2147483647, %v4723_v57  ;;  %vm2251_vm6 = vcmp.eq.s32.totalorder %v2246_v28, 2  ;;  %vm707_vm7 = vcmp.gt.s32.totalorder %v706_v21, 0 }
 0x12b   :  { %v4183_v27 = vpop.eup %4182  ;;  %v463_v43 = vor.u32 4788187, %v462_v41  ;;  %v4818_v39 = vadd.f32 %v4006_v63, %v4517_v40  ;;  %v477_v60 = vadd.s32 3, %v473_v13  ;;  %v708_v49 = vsel %vm707_vm7, %v706_v21, 0 }
 0x12c   :  { %v4185_v42 = vpop.eup %4184  ;;  %v2252_v45 = vxor.u32 2147483648, %v4183_v27  ;;  %v2109_v47 = vadd.s32 536870912, %v2108_v26  ;;  %v466_v2 = vcvt.s32.f32 %v459_v38  ;;  %v710_v51 = vand.u32 31, %v708_v49 }
 0x12d   :  { %v2249_v19 = vxor.u32 2147483648, %v4185_v42  ;;  %v464_v50 = vand.u32 2147483647, %v463_v43  ;;  %vm2248_vm8 = vcmp.eq.s32.totalorder %v2246_v28, 0  ;;  %v703_v54 = vand.u32 8388607, %v696_v34 }
 0x12e   :  { %v2253_v53 = vsel %vm2251_vm6, %v2252_v45, %v4185_v42  ;;  %v4820_v62 = vshrl.u32 %v2109_v47, 30  ;;  %vm2247_vm9 = vcmp.lt.s32.totalorder %v2246_v28, 2  ;;  %v711_v56 = vsub.s32 32, %v710_v51 }
 0x12f   :  { %v2250_v36 = vsel %vm2248_vm8, %v4183_v27, %v2249_v19  ;;  %v467_v55 = vmul.f32 %v466_v2, %v464_v50  ;;  %vm2244_vm11 = vweird.f32 %v4523_v44  ;;  %v4826_v0 = vand.u32 3, %v477_v60 }
 0x130   :  { %v2254_v58 = vsel %vm2247_vm9, %v2250_v36, %v2253_v53  ;;  %v2111_v1 = vshll.u32 %v4820_v62, 30  ;;  %v714_v3 = vshrl.u32 %v4334_v16, %v711_v56  ;;  %v704_v24 = vor.u32 8388608, %v703_v54 }
 0x131   :  { %v2255_v10 = vsel %vm2244_vm11, nan, %v2254_v58  ;;  %v468_v5 = vxor.u32 2147483648, %v467_v55  ;;  %v717_v17 = vshrl.u32 %v4335_v18, %v711_v56  ;;  %v2363_v48 = vand.u32 2139095040, %v4818_v39 }
 0x132   :  { %3729 = vst [vmem:[#allocation2 + $0x88] sm:$0xff] %v2255_v10  ;;  %v4829_v11 = vsub.s32 %v2108_v26, %v2111_v1  ;;  %v709_v23 = vshrl.u32 %v708_v49, 5  ;;  %v713_v31 = vshll.u32 %v4333_v12, %v710_v51  ;;  %v720_v25 = vshrl.u32 %v4336_v20, %v711_v56 }
 0x133   :  { %v469_v44 = vsel %vm386_vm10, %v468_v5, %v467_v55  ;;  %v716_v14 = vshll.u32 %v4334_v16, %v710_v51  ;;  %v719_v30 = vshll.u32 %v4335_v18, %v710_v51  ;;  %v722_v46 = vshll.u32 %v4336_v20, %v710_v51 }
 0x134   :  { %v472_v7 = vsel %vm4771_vm1, %v4532_v52, %v469_v44  ;;  %v2114_v28 = vsub.s32 0, %v4829_v11  ;;  %v715_v32 = vor.u32 %v714_v3, %v713_v31  ;;  %v723_v33 = vshrl.u32 %v4337_v22, %v711_v56 }
 0x135   :  { %4186 = vcosq.f32 %v472_v7  ;;  %v718_v35 = vor.u32 %v717_v17, %v716_v14  ;;  %v721_v13 = vor.u32 %v720_v25, %v719_v30  ;;  %v725_v59 = vshll.u32 %v4337_v22, %v710_v51 }
 0x136   :  { %4188 = vsinq.f32 %v472_v7  ;;  %v3858_v4 = vmin.u32 %v2114_v28, %v4829_v11  ;;  %v724_v37 = vor.u32 %v723_v33, %v722_v46  ;;  %v726_v63 = vshrl.u32 %v4338_v29, %v711_v56 }
 0x137   :  { %v744_v38 = vshll.u32 %v704_v24, 8  ;;  %v712_v15 = vshrl.u32 %v4333_v12, %v711_v56  ;;  %vm728_vm10 = vcmp.lt.s32.totalorder %v709_v23, 1  ;;  %v2364_v21 = vshrl.u32 %v2363_v48, 23 }
 0x138   :  { %v2116_v41 = vclz %v3858_v4  ;;  %vm2050_vm12 = vcmp.lt.s32.totalorder %v4539_v6, 0  ;;  %v727_v26 = vor.u32 %v726_v63, %v725_v59  ;;  %vm729_vm13 = vcmp.lt.s32.totalorder %v709_v23, 2 }
 0x139   :  { %vm730_vm14 = vcmp.lt.s32.totalorder %v709_v23, 3  ;;  %vm731_vm15 = vcmp.lt.s32.totalorder %v709_v23, 4  ;;  %v736_v42 = vsel %vm728_vm10, %v715_v32, %v718_v35  ;;  %v732_v60 = vsel %vm728_vm10, %v712_v15, %v715_v32 }
 0x13a   :  { %v3859_v27 = vadd.s32 4294967294, %v2116_v41  ;;  %v733_v43 = vsel %vm731_vm15, %v721_v13, 2102212464  ;;  %v737_v45 = vsel %vm731_vm15, %v724_v37, 920167782  ;;  %v740_v49 = vsel %vm728_vm10, %v718_v35, %v721_v13 }
 0x13b   :  { %v738_v47 = vsel %vm730_vm14, %v721_v13, %v737_v45  ;;  %v741_v19 = vsel %vm731_vm15, %v727_v26, 1326507024  ;;  %vm4852_vm0 = vcmp.le.f32.partialorder %v2048_v9, 0.7853982  ;;  %v734_v2 = vsel %vm730_vm14, %v718_v35, %v733_v43 }
 0x13c   :  { %vm3860_vm1 = vcmp.lt.s32.totalorder %v3859_v27, 0  ;;  %v739_v51 = vsel %vm729_vm13, %v736_v42, %v738_v47  ;;  %v742_v53 = vsel %vm730_vm14, %v724_v37, %v741_v19  ;;  %v2104_v58 = vadd.s32 %v4789_v8, %v4796_v61 }
 0x13d   :  { %v2119_v54 = vsel %vm3860_vm1, 0, %v3859_v27  ;;  %v743_v36 = vsel %vm729_vm13, %v740_v49, %v742_v53  ;;  %v4858_v55 = vmul.u32.u64.low %v744_v38, %v739_v51  ;;  %v4859_v56 = vmul.u32.u64.high %v744_v38, %v739_v51, %v4858_v55 }
 0x13e   :  { %v2120_v1 = vsub.s32 32, %v2119_v54  ;;  %v2124_v9 = vsub.s32 4294967266, %v2119_v54  ;;  %v2134_v10 = vsub.s32 4, %v4820_v62  ;;  %v2360_v24 = vand.u32 2147483647, %v4818_v39 }
 0x13f   :  { %v4865_v5 = vmul.u32.u64.low %v744_v38, %v743_v36  ;;  %v4866_v3 = vmul.u32.u64.high %v744_v38, %v743_v36, %v4865_v5  ;;  %v3869_v17 = vadd.s32 4294967169, %v2364_v21  ;;  %v2121_v48 = vshll.u32 %v4829_v11, %v2119_v54  ;;  %v235_v21 = vpop.f32.mrf.mxu0 }
 0x140   :  { %v2122_v44 = vshrl.u32 %v2104_v58, %v2120_v1  ;;  %v2125_v31 = vadd.s32 127, %v2124_v9  ;;  %v735_v25 = vsel %vm729_vm13, %v732_v60, %v734_v2  ;;  %vm479_vm2 = vcmp.lt.s32.totalorder %v4826_v0, 2 }
 0x141   :  { %vm480_vm3 = vcmp.eq.s32.totalorder %v4826_v0, 0  ;;  %v754_v8 = vadd.s32 1, %v4859_v56  ;;  %v2370_v61 = vadd.s32 1, %v3869_v17  ;;  %vm483_vm4 = vcmp.eq.s32.totalorder %v4826_v0, 2 }
 0x142   :  { %v4187_v7 = vpop.eup %4186  ;;  %v2123_v28 = vor.u32 %v2122_v44, %v2121_v48  ;;  %v2126_v14 = vshll.u32 %v2125_v31, 23  ;;  %v2135_v11 = vsel %vm2050_vm12, %v2134_v10, %v4820_v62  ;;  %v751_v23 = vmul.u32 %v744_v38, %v735_v25 }
 0x143   :  { %v4189_v30 = vpop.eup %4188  ;;  %v484_v32 = vxor.u32 2147483648, %v4187_v7  ;;  %vm753_vm5 = vc.u32 %v4866_v3, %v4858_v55  ;;  %vm2371_vm6 = vcmp.gt.s32.totalorder %v2370_v61, 0  ;;  %v2367_v35 = vand.u32 8388607, %v2360_v24 }
 0x144   :  { %v481_v46 = vxor.u32 2147483648, %v4189_v30  ;;  %v2127_v33 = vor.u32 4788187, %v2126_v14  ;;  %v755_v4 = vsel %vm753_vm5, %v754_v8, %v4859_v56  ;;  %v2137_v37 = vsel %vm4852_vm0, 0, %v2135_v11 }
 0x145   :  { %v485_v13 = vsel %vm483_vm4, %v484_v32, %v4189_v30  ;;  %v756_v59 = vadd.s32 %v755_v4, %v751_v23  ;;  %v2372_v62 = vsel %vm2371_vm6, %v2370_v61, 0  ;;  %v2130_v41 = vcvt.s32.f32 %v2123_v28 }
 0x146   :  { %v482_v63 = vsel %vm480_vm3, %v4187_v7, %v481_v46  ;;  %v2128_v38 = vand.u32 2147483647, %v2127_v33  ;;  %v2374_v15 = vand.u32 31, %v2372_v62  ;;  %vm476_vm7 = vweird.f32 %v4532_v52 }
 0x147   :  { %v486_v26 = vsel %vm479_vm2, %v482_v63, %v485_v13  ;;  %v757_v27 = vadd.s32 536870912, %v756_v59  ;;  %v2141_v45 = vadd.s32 3, %v2137_v37  ;;  %v2368_v49 = vor.u32 8388608, %v2367_v35 }
 0x148   :  { %v487_v43 = vsel %vm476_vm7, nan, %v486_v26  ;;  %v2131_v42 = vmul.f32 %v2130_v41, %v2128_v38  ;;  %v2375_v60 = vsub.s32 32, %v2374_v15  ;;  %v2377_v19 = vshll.u32 %v4333_v12, %v2374_v15 }
 0x149   :  { %3712 = vst [vmem:[#allocation2] sm:$0xff] %v487_v43  ;;  %v4890_v47 = vshrl.u32 %v757_v27, 30  ;;  %v4894_v2 = vadd.f32 %v4517_v40, %v235_v21  ;;  %v2380_v0 = vshll.u32 %v4334_v16, %v2374_v15  ;;  %v2383_v36 = vshll.u32 %v4335_v18, %v2374_v15 }
 0x14a   :  { %v2132_v51 = vxor.u32 2147483648, %v2131_v42  ;;  %v2378_v52 = vshrl.u32 %v4334_v16, %v2375_v60  ;;  %v2381_v53 = vshrl.u32 %v4335_v18, %v2375_v60  ;;  %v2384_v56 = vshrl.u32 %v4336_v20, %v2375_v60 }
 0x14b   :  { %v759_v54 = vshll.u32 %v4890_v47, 30  ;;  %v2387_v58 = vshrl.u32 %v4337_v22, %v2375_v60  ;;  %v2373_v40 = vshrl.u32 %v2372_v62, 5  ;;  %v2386_v10 = vshll.u32 %v4336_v20, %v2374_v15 }
 0x14c   :  { %v2133_v1 = vsel %vm2050_vm12, %v2132_v51, %v2131_v42  ;;  %v2379_v9 = vor.u32 %v2378_v52, %v2377_v19  ;;  %v2382_v48 = vor.u32 %v2381_v53, %v2380_v0  ;;  %v2385_v44 = vor.u32 %v2384_v56, %v2383_v36 }
 0x14d   :  { %v2136_v5 = vsel %vm4852_vm0, %v4539_v6, %v2133_v1  ;;  %v4909_v17 = vsub.s32 %v756_v59, %v759_v54  ;;  %v2388_v31 = vor.u32 %v2387_v58, %v2386_v10  ;;  %v2389_v25 = vshll.u32 %v4337_v22, %v2374_v15 }
 0x14e   :  { %4190 = vcosq.f32 %v2136_v5  ;;  %v2390_v8 = vshrl.u32 %v4338_v29, %v2375_v60  ;;  %v4913_v61 = vand.u32 3, %v2141_v45  ;;  %vm698_vm8 = vcmp.lt.s32.totalorder %v4723_v57, 0 }
 0x14f   :  { %4192 = vsinq.f32 %v2136_v5  ;;  %v762_v7 = vsub.s32 0, %v4909_v17  ;;  %vm2395_vm9 = vcmp.lt.s32.totalorder %v2373_v40, 4  ;;  %v2408_v50 = vshll.u32 %v2368_v49, 8 }
 0x150   :  { %v2391_v28 = vor.u32 %v2390_v8, %v2389_v25  ;;  %v595_v14 = vand.u32 2139095040, %v4894_v2  ;;  %v2376_v30 = vshrl.u32 %v4333_v12, %v2375_v60  ;;  %vm2392_vm11 = vcmp.lt.s32.totalorder %v2373_v40, 1 }
 0x151   :  { %v3806_v11 = vmin.u32 %v762_v7, %v4909_v17  ;;  %v2397_v32 = vsel %vm2395_vm9, %v2385_v44, 2102212464  ;;  %vm2393_vm10 = vcmp.lt.s32.totalorder %v2373_v40, 2  ;;  %v2400_v23 = vsel %vm2392_vm11, %v2379_v9, %v2382_v48 }
 0x152   :  { %v2401_v46 = vsel %vm2395_vm9, %v2388_v31, 920167782  ;;  %v592_v33 = vand.u32 2147483647, %v4894_v2  ;;  %vm2394_vm12 = vcmp.lt.s32.totalorder %v2373_v40, 3  ;;  %v2396_v35 = vsel %vm2392_vm11, %v2376_v30, %v2379_v9 }
 0x153   :  { %v764_v4 = vclz %v3806_v11  ;;  %v2404_v13 = vsel %vm2392_vm11, %v2382_v48, %v2385_v44  ;;  %v2398_v37 = vsel %vm2394_vm12, %v2382_v48, %v2397_v32  ;;  %v2402_v59 = vsel %vm2394_vm12, %v2385_v44, %v2401_v46 }
 0x154   :  { %v2405_v62 = vsel %vm2395_vm9, %v2391_v28, 1326507024  ;;  %v596_v63 = vshrl.u32 %v595_v14, 23  ;;  %v782_v41 = vsub.s32 4, %v4890_v47  ;;  %v2403_v15 = vsel %vm2393_vm10, %v2400_v23, %v2402_v59 }
 0x155   :  { %v3807_v38 = vadd.s32 4294967294, %v764_v4  ;;  %v2406_v21 = vsel %vm2394_vm12, %v2388_v31, %v2405_v62  ;;  %v4927_v27 = vmul.u32.u64.low %v2408_v50, %v2403_v15  ;;  %v4928_v43 = vmul.u32.u64.high %v2408_v50, %v2403_v15, %v4927_v27 }
 0x156   :  { %v2407_v26 = vsel %vm2393_vm10, %v2404_v13, %v2406_v21  ;;  %v3801_v42 = vadd.s32 4294967169, %v596_v63  ;;  %v2399_v45 = vsel %vm2393_vm10, %v2396_v35, %v2398_v37  ;;  %vm2140_vm14 = vweird.f32 %v4539_v6 }
 0x157   :  { %vm3808_vm13 = vcmp.lt.s32.totalorder %v3807_v38, 0  ;;  %v4932_v60 = vmul.u32.u64.low %v2408_v50, %v2407_v26  ;;  %v4933_v49 = vmul.u32.u64.high %v2408_v50, %v2407_v26, %v4932_v60  ;;  %vm2147_vm15 = vcmp.eq.s32.totalorder %v4913_v61, 2 }
 0x158   :  { %vm4939_vm0 = vcmp.le.f32.partialorder %v696_v34, 0.7853982  ;;  %v767_v51 = vsel %vm3808_vm13, 0, %v3807_v38  ;;  %v602_v52 = vadd.s32 1, %v3801_v42  ;;  %v752_v0 = vadd.s32 %v4858_v55, %v4866_v3  ;;  %v315_v55 = vpop.f32.mrf.mxu1 }
 0x159   :  { %v768_v53 = vsub.s32 32, %v767_v51  ;;  %v772_v54 = vsub.s32 4294967266, %v767_v51  ;;  %v783_v36 = vsel %vm698_vm8, %v782_v41, %v4890_v47  ;;  %v2415_v56 = vmul.u32 %v2408_v50, %v2399_v45  ;;  %v4963_v50 = vld [vmem:[%s6868_s2] ss:$0 sm:$0xff] }
 0x15a   :  { %v2418_v58 = vadd.s32 1, %v4928_v43  ;;  %v599_v34 = vand.u32 8388607, %v592_v33  ;;  %vm603_vm1 = vcmp.gt.s32.totalorder %v602_v52, 0  ;;  %v769_v40 = vshll.u32 %v4909_v17, %v767_v51 }
 0x15b   :  { %v4191_v1 = vpop.eup %4190  ;;  %v770_v9 = vshrl.u32 %v752_v0, %v768_v53  ;;  %v773_v10 = vadd.s32 127, %v772_v54  ;;  %vm2417_vm2 = vc.u32 %v4933_v49, %v4927_v27  ;;  %v785_v47 = vsel %vm4939_vm0, 0, %v783_v36 }
 0x15c   :  { %v4193_v3 = vpop.eup %4192  ;;  %v2148_v5 = vxor.u32 2147483648, %v4191_v1  ;;  %v2419_v48 = vsel %vm2417_vm2, %v2418_v58, %v4928_v43  ;;  %v604_v44 = vsel %vm603_vm1, %v602_v52, 0  ;;  %vm2144_vm3 = vcmp.eq.s32.totalorder %v4913_v61, 0 }
 0x15d   :  { %v2145_v31 = vxor.u32 2147483648, %v4193_v3  ;;  %v771_v25 = vor.u32 %v770_v9, %v769_v40  ;;  %v774_v8 = vshll.u32 %v773_v10, 23  ;;  %v2420_v7 = vadd.s32 %v2419_v48, %v2415_v56 }
 0x15e   :  { %v2149_v17 = vsel %vm2147_vm15, %v2148_v5, %v4193_v3  ;;  %v606_v28 = vand.u32 31, %v604_v44  ;;  %v4966_v14 = vadd.f32 %v4963_v50, %v315_v55  ;;  %vm2143_vm4 = vcmp.lt.s32.totalorder %v4913_v61, 2 }
 0x15f   :  { %v2146_v11 = vsel %vm2144_vm3, %v4191_v1, %v2145_v31  ;;  %v775_v30 = vor.u32 4788187, %v774_v8  ;;  %v2421_v32 = vadd.s32 536870912, %v2420_v7  ;;  %v4969_v46 = vadd.s32 3, %v785_v47 }
 0x160   :  { %v2150_v23 = vsel %vm2143_vm4, %v2146_v11, %v2149_v17  ;;  %v600_v4 = vor.u32 8388608, %v599_v34  ;;  %v607_v35 = vsub.s32 32, %v606_v28  ;;  %v778_v59 = vcvt.s32.f32 %v771_v25 }
 0x161   :  { %v2151_v13 = vsel %vm2140_vm14, nan, %v2150_v23  ;;  %v776_v37 = vand.u32 2147483647, %v775_v30  ;;  %v4973_v62 = vshrl.u32 %v2421_v32, 30  ;;  %v2259_v41 = vand.u32 2139095040, %v4966_v14 }
 0x162   :  { %3728 = vst [vmem:[#allocation2 + $0x80] sm:$0xff] %v2151_v13  ;;  %v610_v63 = vshrl.u32 %v4334_v16, %v607_v35  ;;  %v613_v61 = vshrl.u32 %v4335_v18, %v607_v35  ;;  %v616_v38 = vshrl.u32 %v4336_v20, %v607_v35  ;;  %v609_v26 = vshll.u32 %v4333_v12, %v606_v28 }
 0x163   :  { %v779_v15 = vmul.f32 %v778_v59, %v776_v37  ;;  %v2423_v21 = vshll.u32 %v4973_v62, 30  ;;  %v612_v6 = vshll.u32 %v4334_v16, %v606_v28  ;;  %v605_v43 = vshrl.u32 %v604_v44, 5 }
 0x164   :  { %v615_v42 = vshll.u32 %v4335_v18, %v606_v28  ;;  %v618_v45 = vshll.u32 %v4336_v20, %v606_v28  ;;  %v619_v60 = vshrl.u32 %v4337_v22, %v607_v35  ;;  %v611_v0 = vor.u32 %v610_v63, %v609_v26 }
 0x165   :  { %v780_v51 = vxor.u32 2147483648, %v779_v15  ;;  %v4985_v52 = vsub.s32 %v2420_v7, %v2423_v21  ;;  %v614_v53 = vor.u32 %v613_v61, %v612_v6  ;;  %v621_v56 = vshll.u32 %v4337_v22, %v606_v28 }
 0x166   :  { %v617_v54 = vor.u32 %v616_v38, %v615_v42  ;;  %v620_v36 = vor.u32 %v619_v60, %v618_v45  ;;  %v622_v58 = vshrl.u32 %v4338_v29, %v607_v35  ;;  %v640_v40 = vshll.u32 %v600_v4, 8 }
 0x167   :  { %v781_v34 = vsel %vm698_vm8, %v780_v51, %v779_v15  ;;  %v2426_v1 = vsub.s32 0, %v4985_v52  ;;  %v2256_v9 = vand.u32 2147483647, %v4966_v14  ;;  %v608_v55 = vshrl.u32 %v4333_v12, %v607_v35 }
 0x168   :  { %v784_v10 = vsel %vm4939_vm0, %v4723_v57, %v781_v34  ;;  %v623_v3 = vor.u32 %v622_v58, %v621_v56  ;;  %v2260_v5 = vshrl.u32 %v2259_v41, 23  ;;  %vm624_vm5 = vcmp.lt.s32.totalorder %v605_v43, 1 }
 0x169   :  { %4194 = vcosq.f32 %v784_v10  ;;  %v3870_v47 = vmin.u32 %v2426_v1, %v4985_v52  ;;  %vm627_vm6 = vcmp.lt.s32.totalorder %v605_v43, 4  ;;  %v632_v44 = vsel %vm624_vm5, %v611_v0, %v614_v53 }
 0x16a   :  { %4196 = vsinq.f32 %v784_v10  ;;  %v629_v48 = vsel %vm627_vm6, %v617_v54, 2102212464  ;;  %v633_v31 = vsel %vm627_vm6, %v620_v36, 920167782  ;;  %vm625_vm7 = vcmp.lt.s32.totalorder %v605_v43, 2 }
 0x16b   :  { %v2428_v25 = vclz %v3870_v47  ;;  %vm626_vm8 = vcmp.lt.s32.totalorder %v605_v43, 3  ;;  %v628_v8 = vsel %vm624_vm5, %v608_v55, %v611_v0  ;;  %v636_v17 = vsel %vm624_vm5, %v614_v53, %v617_v54  ;;  %v3985_v55 = vpop.f32.mrf.mxu0 }
 0x16c   :  { %v630_v7 = vsel %vm626_vm8, %v614_v53, %v629_v48  ;;  %v634_v19 = vsel %vm626_vm8, %v617_v54, %v633_v31  ;;  %v637_v28 = vsel %vm627_vm6, %v623_v3, 1326507024  ;;  %v2446_v30 = vsub.s32 4, %v4973_v62 }
 0x16d   :  { %v3871_v11 = vadd.s32 4294967294, %v2428_v25  ;;  %v635_v32 = vsel %vm625_vm7, %v632_v44, %v634_v19  ;;  %v638_v23 = vsel %vm626_vm8, %v620_v36, %v637_v28  ;;  %v631_v4 = vsel %vm625_vm7, %v628_v8, %v630_v7 }
 0x16e   :  { %v639_v35 = vsel %vm625_vm7, %v636_v17, %v638_v23  ;;  %v4999_v13 = vmul.u32.u64.low %v640_v40, %v635_v32  ;;  %v5000_v37 = vmul.u32.u64.high %v640_v40, %v635_v32, %v4999_v13  ;;  %v3865_v61 = vadd.s32 4294967169, %v2260_v5 }
 0x16f   :  { %vm3872_vm9 = vcmp.lt.s32.totalorder %v3871_v11, 0  ;;  %v5002_v59 = vmul.u32.u64.low %v640_v40, %v639_v35  ;;  %v5003_v63 = vmul.u32.u64.high %v640_v40, %v639_v35, %v5002_v59  ;;  %vm5007_vm11 = vcmp.le.f32.partialorder %v2360_v24, 0.7853982 }
 0x170   :  { %vm2362_vm10 = vcmp.lt.s32.totalorder %v4818_v39, 0  ;;  %v2416_v41 = vadd.s32 %v4927_v27, %v4933_v49  ;;  %v2431_v15 = vsel %vm3872_vm9, 0, %v3871_v11  ;;  %v2266_v43 = vadd.s32 1, %v3865_v61 }
 0x171   :  { %v2432_v21 = vsub.s32 32, %v2431_v15  ;;  %v2436_v26 = vsub.s32 4294967266, %v2431_v15  ;;  %v2447_v6 = vsel %vm2362_vm10, %v2446_v30, %v4973_v62  ;;  %v790_v42 = vand.u32 3, %v4969_v46 }
 0x172   :  { %v647_v45 = vmul.u32 %v640_v40, %v631_v4  ;;  %v650_v24 = vadd.s32 1, %v5000_v37  ;;  %v2263_v60 = vand.u32 8388607, %v2256_v9  ;;  %v2433_v51 = vshll.u32 %v4985_v52, %v2431_v15 }
 0x173   :  { %v2434_v0 = vshrl.u32 %v2416_v41, %v2432_v21  ;;  %v2437_v27 = vadd.s32 127, %v2436_v26  ;;  %vm649_vm12 = vc.u32 %v5003_v63, %v4999_v13  ;;  %v2449_v49 = vsel %vm5007_vm11, 0, %v2447_v6 }
 0x174   :  { %v651_v62 = vsel %vm649_vm12, %v650_v24, %v5000_v37  ;;  %vm2267_vm13 = vcmp.gt.s32.totalorder %v2266_v43, 0  ;;  %vm788_vm14 = vweird.f32 %v4723_v57  ;;  %vm791_vm15 = vcmp.lt.s32.totalorder %v790_v42, 2 }
 0x175   :  { %v2435_v53 = vor.u32 %v2434_v0, %v2433_v51  ;;  %v2438_v46 = vshll.u32 %v2437_v27, 23  ;;  %v652_v54 = vadd.s32 %v651_v62, %v647_v45  ;;  %v2268_v36 = vsel %vm2267_vm13, %v2266_v43, 0 }
 0x176   :  { %v4195_v56 = vpop.eup %4194  ;;  %vm792_vm0 = vcmp.eq.s32.totalorder %v790_v42, 0  ;;  %v2270_v52 = vand.u32 31, %v2268_v36  ;;  %v2264_v10 = vor.u32 8388608, %v2263_v60  ;;  %vm795_vm1 = vcmp.eq.s32.totalorder %v790_v42, 2 }
 0x177   :  { %v4197_v58 = vpop.eup %4196  ;;  %v796_v34 = vxor.u32 2147483648, %v4195_v56  ;;  %v2439_v1 = vor.u32 4788187, %v2438_v46  ;;  %v653_v40 = vadd.s32 536870912, %v652_v54  ;;  %v5027_v5 = vadd.s32 3, %v2449_v49 }
 0x178   :  { %v793_v3 = vxor.u32 2147483648, %v4197_v58  ;;  %v2271_v47 = vsub.s32 32, %v2270_v52  ;;  %v2442_v31 = vcvt.s32.f32 %v2435_v53  ;;  %v5031_v7 = vadd.s32 %v4999_v13, %v5003_v63 }
 0x179   :  { %v797_v48 = vsel %vm795_vm1, %v796_v34, %v4197_v58  ;;  %v2440_v44 = vand.u32 2147483647, %v2439_v1  ;;  %v654_v25 = vshrl.u32 %v653_v40, 30  ;;  %v5035_v17 = vadd.f32 %v4963_v50, %v3985_v55 }
 0x17a   :  { %v794_v8 = vsel %vm792_vm0, %v4195_v56, %v793_v3  ;;  %v2274_v19 = vshrl.u32 %v4334_v16, %v2271_v47  ;;  %v5038_v32 = vshll.u32 %v2264_v10, 8  ;;  %v2273_v4 = vshll.u32 %v4333_v12, %v2270_v52 }
 0x17b   :  { %v798_v28 = vsel %vm791_vm15, %v794_v8, %v797_v48  ;;  %v2443_v11 = vmul.f32 %v2442_v31, %v2440_v44  ;;  %v655_v30 = vshll.u32 %v654_v25, 30  ;;  %v2277_v35 = vshrl.u32 %v4335_v18, %v2271_v47 }
 0x17c   :  { %v799_v23 = vsel %vm788_vm14, nan, %v798_v28  ;;  %v2280_v13 = vshrl.u32 %v4336_v20, %v2271_v47  ;;  %v2269_v63 = vshrl.u32 %v2268_v36, 5  ;;  %v2276_v61 = vshll.u32 %v4334_v16, %v2270_v52 }
 0x17d   :  { %3715 = vst [vmem:[#allocation2 + $0x18] sm:$0xff] %v799_v23  ;;  %v2444_v37 = vxor.u32 2147483648, %v2443_v11  ;;  %v5045_v59 = vsub.s32 %v652_v54, %v655_v30  ;;  %v2275_v41 = vor.u32 %v2274_v19, %v2273_v4  ;;  %v2279_v15 = vshll.u32 %v4335_v18, %v2270_v52 }
 0x17e   :  { %v2282_v21 = vshll.u32 %v4336_v20, %v2270_v52  ;;  %v2283_v57 = vshrl.u32 %v4337_v22, %v2271_v47  ;;  %vm594_vm2 = vcmp.lt.s32.totalorder %v4894_v2, 0  ;;  %v2285_v43 = vshll.u32 %v4337_v22, %v2270_v52 }
 0x17f   :  { %v2445_v26 = vsel %vm2362_vm10, %v2444_v37, %v2443_v11  ;;  %v658_v6 = vsub.s32 0, %v5045_v59  ;;  %v2286_v42 = vshrl.u32 %v4338_v29, %v2271_v47  ;;  %v2278_v24 = vor.u32 %v2277_v35, %v2276_v61 }
 0x180   :  { %v2448_v45 = vsel %vm5007_vm11, %v4818_v39, %v2445_v26  ;;  %v2281_v60 = vor.u32 %v2280_v13, %v2279_v15  ;;  %v2284_v51 = vor.u32 %v2283_v57, %v2282_v21  ;;  %v907_v49 = vand.u32 2139095040, %v5035_v17 }
 0x181   :  { %4198 = vcosq.f32 %v2448_v45  ;;  %v3802_v0 = vmin.u32 %v658_v6, %v5045_v59  ;;  %v2287_v27 = vor.u32 %v2286_v42, %v2285_v43  ;;  %v678_v62 = vsub.s32 4, %v654_v25 }
 0x182   :  { %4200 = vsinq.f32 %v2448_v45  ;;  %v2272_v53 = vshrl.u32 %v4333_v12, %v2271_v47  ;;  %vm2288_vm3 = vcmp.lt.s32.totalorder %v2269_v63, 1  ;;  %vm2289_vm4 = vcmp.lt.s32.totalorder %v2269_v63, 2 }
 0x183   :  { %v660_v46 = vclz %v3802_v0  ;;  %vm2290_vm5 = vcmp.lt.s32.totalorder %v2269_v63, 3  ;;  %vm2291_vm6 = vcmp.lt.s32.totalorder %v2269_v63, 4  ;;  %v2296_v54 = vsel %vm2288_vm3, %v2275_v41, %v2278_v24 }
 0x184   :  { %v2293_v38 = vsel %vm2291_vm6, %v2281_v60, 2102212464  ;;  %v2297_v36 = vsel %vm2291_vm6, %v2284_v51, 920167782  ;;  %v2300_v56 = vsel %vm2288_vm3, %v2278_v24, %v2281_v60  ;;  %v2292_v58 = vsel %vm2288_vm3, %v2272_v53, %v2275_v41  ;;  %v4009_v53 = vpop.f32.mrf.mxu1 }
 0x185   :  { %v3803_v52 = vadd.s32 4294967294, %v660_v46  ;;  %v2298_v34 = vsel %vm2290_vm5, %v2281_v60, %v2297_v36  ;;  %v2301_v1 = vsel %vm2291_vm6, %v2287_v27, 1326507024  ;;  %v2294_v40 = vsel %vm2290_vm5, %v2278_v24, %v2293_v38 }
 0x186   :  { %v2299_v10 = vsel %vm2289_vm4, %v2296_v54, %v2298_v34  ;;  %v2302_v55 = vsel %vm2290_vm5, %v2284_v51, %v2301_v1  ;;  %v908_v3 = vshrl.u32 %v907_v49, 23  ;;  %v679_v8 = vsel %vm594_vm2, %v678_v62, %v654_v25 }
 0x187   :  { %vm3804_vm7 = vcmp.lt.s32.totalorder %v3803_v52, 0  ;;  %v2303_v47 = vsel %vm2289_vm4, %v2300_v56, %v2302_v55  ;;  %v5066_v48 = vmul.u32.u64.low %v5038_v32, %v2299_v10  ;;  %v5067_v44 = vmul.u32.u64.high %v5038_v32, %v2299_v10, %v5066_v48 }
 0x188   :  { %v663_v31 = vsel %vm3804_vm7, 0, %v3803_v52  ;;  %v5073_v19 = vmul.u32.u64.low %v5038_v32, %v2303_v47  ;;  %v5074_v28 = vmul.u32.u64.high %v5038_v32, %v2303_v47, %v5073_v19  ;;  %v2295_v23 = vsel %vm2289_vm4, %v2292_v58, %v2294_v40 }
 0x189   :  { %v664_v11 = vsub.s32 32, %v663_v31  ;;  %v668_v30 = vsub.s32 4294967266, %v663_v31  ;;  %v3813_v4 = vadd.s32 4294967169, %v908_v3  ;;  %vm5079_vm8 = vcmp.le.f32.partialorder %v592_v33, 0.7853982 }
 0x18a   :  { %v665_v13 = vshll.u32 %v5045_v59, %v663_v31  ;;  %v904_v37 = vand.u32 2147483647, %v5035_v17  ;;  %v2314_v41 = vadd.s32 1, %v5067_v44  ;;  %v2454_v63 = vand.u32 3, %v5027_v5 }
 0x18b   :  { %v666_v25 = vshrl.u32 %v5031_v7, %v664_v11  ;;  %v669_v61 = vadd.s32 127, %v668_v30  ;;  %v914_v15 = vadd.s32 1, %v3813_v4  ;;  %v681_v21 = vsel %vm5079_vm8, 0, %v679_v8 }
 0x18c   :  { %v2311_v33 = vmul.u32 %v5038_v32, %v2295_v23  ;;  %vm2313_vm9 = vc.u32 %v5074_v28, %v5066_v48  ;;  %vm2452_vm10 = vweird.f32 %v4818_v39  ;;  %v685_v24 = vadd.s32 3, %v681_v21 }
 0x18d   :  { %v667_v57 = vor.u32 %v666_v25, %v665_v13  ;;  %v670_v59 = vshll.u32 %v669_v61, 23  ;;  %v2315_v26 = vsel %vm2313_vm9, %v2314_v41, %v5067_v44  ;;  %vm915_vm11 = vcmp.gt.s32.totalorder %v914_v15, 0 }
 0x18e   :  { %v4199_v7 = vpop.eup %4198  ;;  %v2316_v6 = vadd.s32 %v2315_v26, %v2311_v33  ;;  %v916_v43 = vsel %vm915_vm11, %v914_v15, 0  ;;  %v911_v32 = vand.u32 8388607, %v904_v37  ;;  %vm2459_vm12 = vcmp.eq.s32.totalorder %v2454_v63, 2 }
 0x18f   :  { %v4201_v42 = vpop.eup %4200  ;;  %v2460_v5 = vxor.u32 2147483648, %v4199_v7  ;;  %v671_v45 = vor.u32 4788187, %v670_v59  ;;  %v918_v0 = vand.u32 31, %v916_v43  ;;  %vm2456_vm13 = vcmp.eq.s32.totalorder %v2454_v63, 0 }
 0x190   :  { %v2457_v60 = vxor.u32 2147483648, %v4201_v42  ;;  %v2317_v51 = vadd.s32 536870912, %v2316_v6  ;;  %v674_v62 = vcvt.s32.f32 %v667_v57  ;;  %vm2455_vm14 = vcmp.lt.s32.totalorder %v2454_v63, 2 }
 0x191   :  { %v2461_v27 = vsel %vm2459_vm12, %v2460_v5, %v4201_v42  ;;  %v672_v49 = vand.u32 2147483647, %v671_v45  ;;  %v919_v54 = vsub.s32 32, %v918_v0  ;;  %v5099_v52 = vand.u32 3, %v685_v24 }
 0x192   :  { %v2458_v46 = vsel %vm2456_vm13, %v4199_v7, %v2457_v60  ;;  %v5097_v38 = vshrl.u32 %v2317_v51, 30  ;;  %v912_v58 = vor.u32 8388608, %v911_v32  ;;  %v921_v40 = vshll.u32 %v4333_v12, %v918_v0 }
 0x193   :  { %v2462_v36 = vsel %vm2455_vm14, %v2458_v46, %v2461_v27  ;;  %v675_v56 = vmul.f32 %v674_v62, %v672_v49  ;;  %v5106_v10 = vadd.f32 %v4963_v50, %v4009_v53  ;;  %v922_v3 = vshrl.u32 %v4334_v16, %v919_v54 }
 0x194   :  { %v2463_v34 = vsel %vm2452_vm10, nan, %v2462_v36  ;;  %v2319_v1 = vshll.u32 %v5097_v38, 30  ;;  %v925_v47 = vshrl.u32 %v4335_v18, %v919_v54  ;;  %v928_v44 = vshrl.u32 %v4336_v20, %v919_v54 }
 0x195   :  { %3731 = vst [vmem:[#allocation2 + $0x98] sm:$0xff] %v2463_v34  ;;  %v676_v55 = vxor.u32 2147483648, %v675_v56  ;;  %v924_v39 = vshll.u32 %v4334_v16, %v918_v0  ;;  %v927_v8 = vshll.u32 %v4335_v18, %v918_v0  ;;  %v931_v19 = vshrl.u32 %v4337_v22, %v919_v54 }
 0x196   :  { %v5111_v31 = vsub.s32 %v2316_v6, %v2319_v1  ;;  %v917_v30 = vshrl.u32 %v916_v43, 5  ;;  %v923_v23 = vor.u32 %v922_v3, %v921_v40  ;;  %v930_v4 = vshll.u32 %v4336_v20, %v918_v0 }
 0x197   :  { %v677_v11 = vsel %vm594_vm2, %v676_v55, %v675_v56  ;;  %v926_v61 = vor.u32 %v925_v47, %v924_v39  ;;  %v929_v41 = vor.u32 %v928_v44, %v927_v8  ;;  %v933_v63 = vshll.u32 %v4337_v22, %v918_v0 }
 0x198   :  { %v680_v13 = vsel %vm5079_vm8, %v4894_v2, %v677_v11  ;;  %v2322_v25 = vsub.s32 0, %v5111_v31  ;;  %v932_v15 = vor.u32 %v931_v19, %v930_v4  ;;  %v934_v21 = vshrl.u32 %v4338_v29, %v919_v54 }
 0x199   :  { %4202 = vcosq.f32 %v680_v13  ;;  %v952_v57 = vshll.u32 %v912_v58, 8  ;;  %v2571_v59 = vand.u32 2139095040, %v5106_v10  ;;  %v920_v26 = vshrl.u32 %v4333_v12, %v919_v54 }
 0x19a   :  { %4204 = vsinq.f32 %v680_v13  ;;  %v3866_v33 = vmin.u32 %v2322_v25, %v5111_v31  ;;  %v935_v35 = vor.u32 %v934_v21, %v933_v63  ;;  %vm936_vm15 = vcmp.lt.s32.totalorder %v917_v30, 1 }
 0x19b   :  { %vm937_vm0 = vcmp.lt.s32.totalorder %v917_v30, 2  ;;  %vm938_vm1 = vcmp.lt.s32.totalorder %v917_v30, 3  ;;  %vm939_vm2 = vcmp.lt.s32.totalorder %v917_v30, 4  ;;  %v944_v6 = vsel %vm936_vm15, %v923_v23, %v926_v61 }
 0x19c   :  { %v2324_v7 = vclz %v3866_v33  ;;  %v941_v43 = vsel %vm939_vm2, %v929_v41, 2102212464  ;;  %v945_v42 = vsel %vm939_vm2, %v932_v15, 920167782  ;;  %v948_v5 = vsel %vm936_vm15, %v926_v61, %v929_v41 }
 0x19d   :  { %v949_v45 = vsel %vm939_vm2, %v935_v35, 1326507024  ;;  %v2342_v32 = vsub.s32 4, %v5097_v38  ;;  %v946_v60 = vsel %vm938_vm1, %v929_v41, %v945_v42  ;;  %v940_v0 = vsel %vm936_vm15, %v920_v26, %v923_v23 }
 0x19e   :  { %v3867_v24 = vadd.s32 4294967294, %v2324_v7  ;;  %v950_v51 = vsel %vm938_vm1, %v932_v15, %v949_v45  ;;  %v947_v27 = vsel %vm937_vm0, %v944_v6, %v946_v60  ;;  %v2572_v62 = vshrl.u32 %v2571_v59, 23 }
 0x19f   :  { %v951_v49 = vsel %vm937_vm0, %v948_v5, %v950_v51  ;;  %v942_v53 = vsel %vm938_vm1, %v926_v61, %v941_v43  ;;  %v5137_v56 = vmul.u32.u64.low %v952_v57, %v947_v27  ;;  %v5138_v58 = vmul.u32.u64.high %v952_v57, %v947_v27, %v5137_v56 }
 0x1a0   :  { %vm3868_vm3 = vcmp.lt.s32.totalorder %v3867_v24, 0  ;;  %v5134_v46 = vmul.u32.u64.low %v952_v57, %v951_v49  ;;  %v5135_v54 = vmul.u32.u64.high %v952_v57, %v951_v49, %v5134_v46  ;;  %v3877_v34 = vadd.s32 4294967169, %v2572_v62 }
 0x1a1   :  { %v2327_v36 = vsel %vm3868_vm3, 0, %v3867_v24  ;;  %vm5143_vm4 = vcmp.le.f32.partialorder %v2256_v9, 0.7853982  ;;  %v2312_v40 = vadd.s32 %v5066_v48, %v5074_v28  ;;  %vm684_vm5 = vweird.f32 %v4894_v2 }
 0x1a2   :  { %v2328_v55 = vsub.s32 32, %v2327_v36  ;;  %v2332_v3 = vsub.s32 4294967266, %v2327_v36  ;;  %vm687_vm6 = vcmp.lt.s32.totalorder %v5099_v52, 2  ;;  %vm2258_vm7 = vcmp.lt.s32.totalorder %v4966_v14, 0 }
 0x1a3   :  { %v943_v47 = vsel %vm937_vm0, %v940_v0, %v942_v53  ;;  %v2578_v44 = vadd.s32 1, %v3877_v34  ;;  %v2329_v39 = vshll.u32 %v5111_v31, %v2327_v36  ;;  %vm961_vm8 = vc.u32 %v5135_v54, %v5137_v56  ;;  %v245_v31 = vpop.f32.mrf.mxu0 }
 0x1a4   :  { %v2330_v9 = vshrl.u32 %v2312_v40, %v2328_v55  ;;  %v2333_v8 = vadd.s32 127, %v2332_v3  ;;  %vm688_vm9 = vcmp.eq.s32.totalorder %v5099_v52, 0  ;;  %v2343_v48 = vsel %vm2258_vm7, %v2342_v32, %v5097_v38 }
 0x1a5   :  { %v962_v28 = vadd.s32 1, %v5138_v58  ;;  %vm2579_vm11 = vcmp.gt.s32.totalorder %v2578_v44, 0  ;;  %v959_v23 = vmul.u32 %v952_v57, %v943_v47  ;;  %v2568_v41 = vand.u32 2147483647, %v5106_v10 }
 0x1a6   :  { %v4203_v19 = vpop.eup %4202  ;;  %v2331_v11 = vor.u32 %v2330_v9, %v2329_v39  ;;  %v2334_v30 = vshll.u32 %v2333_v8, 23  ;;  %v2580_v4 = vsel %vm2579_vm11, %v2578_v44, 0  ;;  %vm691_vm10 = vcmp.eq.s32.totalorder %v5099_v52, 2 }
 0x1a7   :  { %v4205_v13 = vpop.eup %4204  ;;  %v692_v25 = vxor.u32 2147483648, %v4203_v19  ;;  %v963_v61 = vsel %vm961_vm8, %v962_v28, %v5138_v58  ;;  %v2582_v15 = vand.u32 31, %v2580_v4  ;;  %v2345_v59 = vsel %vm5143_vm4, 0, %v2343_v48 }
 0x1a8   :  { %v689_v63 = vxor.u32 2147483648, %v4205_v13  ;;  %v2335_v38 = vor.u32 4788187, %v2334_v30  ;;  %v964_v21 = vadd.s32 %v963_v61, %v959_v23  ;;  %v5167_v57 = vadd.f32 %v4963_v50, %v245_v31 }
 0x1a9   :  { %v693_v33 = vsel %vm691_vm10, %v692_v25, %v4205_v13  ;;  %v2583_v26 = vsub.s32 32, %v2582_v15  ;;  %v2338_v6 = vcvt.s32.f32 %v2331_v11  ;;  %v2575_v5 = vand.u32 8388607, %v2568_v41 }
 0x1aa   :  { %v690_v35 = vsel %vm688_vm9, %v4203_v19, %v689_v63  ;;  %v2336_v7 = vand.u32 2147483647, %v2335_v38  ;;  %v965_v43 = vadd.s32 536870912, %v964_v21  ;;  %v2581_v27 = vshrl.u32 %v2580_v4, 5 }
 0x1ab   :  { %v694_v42 = vsel %vm687_vm6, %v690_v35, %v693_v33  ;;  %v2586_v45 = vshrl.u32 %v4334_v16, %v2583_v26  ;;  %v2589_v24 = vshrl.u32 %v4335_v18, %v2583_v26  ;;  %v2592_v0 = vshrl.u32 %v4336_v20, %v2583_v26 }
 0x1ac   :  { %v695_v32 = vsel %vm684_vm5, nan, %v694_v42  ;;  %v2339_v60 = vmul.f32 %v2338_v6, %v2336_v7  ;;  %v966_v51 = vshrl.u32 %v965_v43, 30  ;;  %v2585_v49 = vshll.u32 %v4333_v12, %v2582_v15 }
 0x1ad   :  { %3714 = vst [vmem:[#allocation2 + $0x10] sm:$0xff] %v695_v32  ;;  %v2591_v52 = vshll.u32 %v4335_v18, %v2582_v15  ;;  %v2595_v62 = vshrl.u32 %v4337_v22, %v2583_v26  ;;  %v2588_v36 = vshll.u32 %v4334_v16, %v2582_v15  ;;  %v2594_v58 = vshll.u32 %v4336_v20, %v2582_v15 }
 0x1ae   :  { %v2340_v53 = vxor.u32 2147483648, %v2339_v60  ;;  %v967_v46 = vshll.u32 %v966_v51, 30  ;;  %v2587_v2 = vor.u32 %v2586_v45, %v2585_v49  ;;  %v2597_v40 = vshll.u32 %v4337_v22, %v2582_v15 }
 0x1af   :  { %v2593_v34 = vor.u32 %v2592_v0, %v2591_v52  ;;  %v2598_v55 = vshrl.u32 %v4338_v29, %v2583_v26  ;;  %v2590_v44 = vor.u32 %v2589_v24, %v2588_v36  ;;  %v2596_v39 = vor.u32 %v2595_v62, %v2594_v58 }
 0x1b0   :  { %v2341_v3 = vsel %vm2258_vm7, %v2340_v53, %v2339_v60  ;;  %v5189_v47 = vsub.s32 %v964_v21, %v967_v46  ;;  %v2349_v8 = vadd.s32 3, %v2345_v59  ;;  %v2576_v48 = vor.u32 8388608, %v2575_v5 }
 0x1b1   :  { %v2344_v9 = vsel %vm5143_vm4, %v4966_v14, %v2341_v3  ;;  %v2599_v28 = vor.u32 %v2598_v55, %v2597_v40  ;;  %vm2603_vm12 = vcmp.lt.s32.totalorder %v2581_v27, 4  ;;  %v803_v11 = vand.u32 2139095040, %v5167_v57 }
 0x1b2   :  { %4206 = vcosq.f32 %v2344_v9  ;;  %v970_v19 = vsub.s32 0, %v5189_v47  ;;  %v2584_v30 = vshrl.u32 %v4333_v12, %v2583_v26  ;;  %vm2600_vm13 = vcmp.lt.s32.totalorder %v2581_v27, 1 }
 0x1b3   :  { %4208 = vsinq.f32 %v2344_v9  ;;  %v2605_v23 = vsel %vm2603_vm12, %v2593_v34, 2102212464  ;;  %vm2602_vm14 = vcmp.lt.s32.totalorder %v2581_v27, 3  ;;  %v2608_v31 = vsel %vm2600_vm13, %v2587_v2, %v2590_v44 }
 0x1b4   :  { %v3814_v4 = vmin.u32 %v970_v19, %v5189_v47  ;;  %v2609_v1 = vsel %vm2603_vm12, %v2596_v39, 920167782  ;;  %v990_v13 = vsub.s32 4, %v966_v51  ;;  %v2612_v61 = vsel %vm2600_vm13, %v2590_v44, %v2593_v34 }
 0x1b5   :  { %v2610_v25 = vsel %vm2602_vm14, %v2593_v34, %v2609_v1  ;;  %v2613_v15 = vsel %vm2603_vm12, %v2599_v28, 1326507024  ;;  %vm2601_vm15 = vcmp.lt.s32.totalorder %v2581_v27, 2  ;;  %v2604_v38 = vsel %vm2600_vm13, %v2584_v30, %v2587_v2 }
 0x1b6   :  { %v972_v63 = vclz %v3814_v4  ;;  %v2606_v21 = vsel %vm2602_vm14, %v2590_v44, %v2605_v23  ;;  %v2611_v33 = vsel %vm2601_vm15, %v2608_v31, %v2610_v25  ;;  %v2614_v59 = vsel %vm2602_vm14, %v2596_v39, %v2613_v15  ;;  %v325_v15 = vpop.f32.mrf.mxu1 }
 0x1b7   :  { %v2616_v35 = vshll.u32 %v2576_v48, 8  ;;  %v804_v7 = vshrl.u32 %v803_v11, 23  ;;  %vm906_vm0 = vcmp.lt.s32.totalorder %v5035_v17, 0  ;;  %v2615_v6 = vsel %vm2601_vm15, %v2612_v61, %v2614_v59 }
 0x1b8   :  { %v3815_v26 = vadd.s32 4294967294, %v972_v63  ;;  %v991_v24 = vsel %vm906_vm0, %v990_v13, %v966_v51  ;;  %v2607_v32 = vsel %vm2601_vm15, %v2604_v38, %v2606_v21  ;;  %v2350_v0 = vand.u32 3, %v2349_v8 }
 0x1b9   :  { %v5199_v43 = vmul.u32.u64.low %v2616_v35, %v2615_v6  ;;  %v5200_v42 = vmul.u32.u64.high %v2616_v35, %v2615_v6, %v5199_v43  ;;  %v5202_v5 = vmul.u32.u64.low %v2616_v35, %v2611_v33  ;;  %v5203_v45 = vmul.u32.u64.high %v2616_v35, %v2611_v33, %v5202_v5 }
 0x1ba   :  { %vm3816_vm1 = vcmp.lt.s32.totalorder %v3815_v26, 0  ;;  %v3809_v60 = vadd.s32 4294967169, %v804_v7  ;;  %vm5210_vm2 = vcmp.le.f32.partialorder %v904_v37, 0.7853982  ;;  %v800_v52 = vand.u32 2147483647, %v5167_v57 }
 0x1bb   :  { %v975_v49 = vsel %vm3816_vm1, 0, %v3815_v26  ;;  %v960_v62 = vadd.s32 %v5137_v56, %v5135_v54  ;;  %v993_v51 = vsel %vm5210_vm2, 0, %v991_v24  ;;  %v2623_v58 = vmul.u32 %v2616_v35, %v2607_v32 }
 0x1bc   :  { %v976_v53 = vsub.s32 32, %v975_v49  ;;  %v980_v46 = vsub.s32 4294967266, %v975_v49  ;;  %v810_v36 = vadd.s32 1, %v3809_v60  ;;  %vm2625_vm3 = vc.u32 %v5200_v42, %v5202_v5 }
 0x1bd   :  { %v2626_v37 = vadd.s32 1, %v5203_v45  ;;  %v977_v2 = vshll.u32 %v5189_v47, %v975_v49  ;;  %vm2355_vm5 = vcmp.eq.s32.totalorder %v2350_v0, 2  ;;  %v997_v28 = vadd.s32 3, %v993_v51 }
 0x1be   :  { %v978_v34 = vshrl.u32 %v960_v62, %v976_v53  ;;  %v981_v40 = vadd.s32 127, %v980_v46  ;;  %vm811_vm4 = vcmp.gt.s32.totalorder %v810_v36, 0  ;;  %v807_v19 = vand.u32 8388607, %v800_v52 }
 0x1bf   :  { %v4207_v55 = vpop.eup %4206  ;;  %v2627_v54 = vsel %vm2625_vm3, %v2626_v37, %v5203_v45  ;;  %v812_v56 = vsel %vm811_vm4, %v810_v36, 0  ;;  %vm2352_vm6 = vcmp.eq.s32.totalorder %v2350_v0, 0  ;;  %vm2348_vm7 = vweird.f32 %v4966_v14 }
 0x1c0   :  { %v4209_v3 = vpop.eup %4208  ;;  %v2356_v44 = vxor.u32 2147483648, %v4207_v55  ;;  %v979_v39 = vor.u32 %v978_v34, %v977_v2  ;;  %v982_v9 = vshll.u32 %v981_v40, 23  ;;  %v2628_v8 = vadd.s32 %v2627_v54, %v2623_v58 }
 0x1c1   :  { %v2353_v48 = vxor.u32 2147483648, %v4209_v3  ;;  %v814_v11 = vand.u32 31, %v812_v56  ;;  %vm2351_vm8 = vcmp.lt.s32.totalorder %v2350_v0, 2  ;;  %v5229_v38 = vand.u32 3, %v997_v28 }
 0x1c2   :  { %v2357_v47 = vsel %vm2355_vm5, %v2356_v44, %v4209_v3  ;;  %v983_v30 = vor.u32 4788187, %v982_v9  ;;  %v2629_v23 = vadd.s32 536870912, %v2628_v8  ;;  %v986_v25 = vcvt.s32.f32 %v979_v39 }
 0x1c3   :  { %v2354_v4 = vsel %vm2352_vm6, %v4207_v55, %v2353_v48  ;;  %v815_v31 = vsub.s32 32, %v814_v11  ;;  %v808_v21 = vor.u32 8388608, %v807_v19  ;;  %v813_v7 = vshrl.u32 %v812_v56, 5 }
 0x1c4   :  { %v2358_v1 = vsel %vm2351_vm8, %v2354_v4, %v2357_v47  ;;  %v984_v13 = vand.u32 2147483647, %v983_v30  ;;  %v5227_v61 = vshrl.u32 %v2629_v23, 30  ;;  %v5237_v43 = vadd.f32 %v4963_v50, %v325_v15 }
 0x1c5   :  { %v2359_v63 = vsel %vm2348_vm7, nan, %v2358_v1  ;;  %v818_v35 = vshrl.u32 %v4334_v16, %v815_v31  ;;  %v821_v14 = vshrl.u32 %v4335_v18, %v815_v31  ;;  %v824_v26 = vshrl.u32 %v4336_v20, %v815_v31 }
 0x1c6   :  { %3730 = vst [vmem:[#allocation2 + $0x90] sm:$0xff] %v2359_v63  ;;  %v987_v33 = vmul.f32 %v986_v25, %v984_v13  ;;  %v2631_v59 = vshll.u32 %v5227_v61, 30  ;;  %v827_v6 = vshrl.u32 %v4337_v22, %v815_v31  ;;  %v817_v32 = vshll.u32 %v4333_v12, %v814_v11 }
 0x1c7   :  { %v820_v60 = vshll.u32 %v4334_v16, %v814_v11  ;;  %v823_v0 = vshll.u32 %v4335_v18, %v814_v11  ;;  %v826_v49 = vshll.u32 %v4336_v20, %v814_v11  ;;  %v829_v62 = vshll.u32 %v4337_v22, %v814_v11 }
 0x1c8   :  { %v988_v45 = vxor.u32 2147483648, %v987_v33  ;;  %v5239_v24 = vsub.s32 %v2628_v8, %v2631_v59  ;;  %v830_v53 = vshrl.u32 %v4338_v29, %v815_v31  ;;  %v819_v36 = vor.u32 %v818_v35, %v817_v32 }
 0x1c9   :  { %v822_v51 = vor.u32 %v821_v14, %v820_v60  ;;  %vm2570_vm9 = vcmp.lt.s32.totalorder %v5106_v10, 0  ;;  %v825_v37 = vor.u32 %v824_v26, %v823_v0  ;;  %v828_v2 = vor.u32 %v827_v6, %v826_v49 }
 0x1ca   :  { %v989_v46 = vsel %vm906_vm0, %v988_v45, %v987_v33  ;;  %v2634_v50 = vsub.s32 0, %v5239_v24  ;;  %v831_v34 = vor.u32 %v830_v53, %v829_v62  ;;  %v848_v55 = vshll.u32 %v808_v21, 8 }
 0x1cb   :  { %v992_v58 = vsel %vm5210_vm2, %v5035_v17, %v989_v46  ;;  %v2467_v54 = vand.u32 2139095040, %v5237_v43  ;;  %v2654_v56 = vsub.s32 4, %v5227_v61  ;;  %v816_v3 = vshrl.u32 %v4333_v12, %v815_v31 }
 0x1cc   :  { %4210 = vcosq.f32 %v992_v58  ;;  %v3878_v40 = vmin.u32 %v2634_v50, %v5239_v24  ;;  %vm832_vm11 = vcmp.lt.s32.totalorder %v813_v7, 1  ;;  %vm834_vm10 = vcmp.lt.s32.totalorder %v813_v7, 3 }
 0x1cd   :  { %4212 = vsinq.f32 %v992_v58  ;;  %vm835_vm12 = vcmp.lt.s32.totalorder %v813_v7, 4  ;;  %v840_v27 = vsel %vm832_vm11, %v819_v36, %v822_v51  ;;  %v844_v8 = vsel %vm832_vm11, %v822_v51, %v825_v37 }
 0x1ce   :  { %v2636_v44 = vclz %v3878_v40  ;;  %v837_v39 = vsel %vm835_vm12, %v825_v37, 2102212464  ;;  %v841_v9 = vsel %vm835_vm12, %v828_v2, 920167782  ;;  %v845_v48 = vsel %vm835_vm12, %v831_v34, 1326507024 }
 0x1cf   :  { %vm833_vm13 = vcmp.lt.s32.totalorder %v813_v7, 2  ;;  %v842_v19 = vsel %vm834_vm10, %v825_v37, %v841_v9  ;;  %v846_v11 = vsel %vm834_vm10, %v828_v2, %v845_v48  ;;  %v836_v47 = vsel %vm832_vm11, %v816_v3, %v819_v36  ;;  %v3988_v7 = vpop.f32.mrf.mxu0  ;;  %v5297_v2 = vld [vmem:[%s6868_s2] ss:$0 sm:$0xff] }
 0x1d0   :  { %v3879_v28 = vadd.s32 4294967294, %v2636_v44  ;;  %v843_v30 = vsel %vm833_vm13, %v840_v27, %v842_v19  ;;  %v847_v23 = vsel %vm833_vm13, %v844_v8, %v846_v11  ;;  %v2468_v4 = vshrl.u32 %v2467_v54, 23 }
 0x1d1   :  { %v838_v31 = vsel %vm834_vm10, %v822_v51, %v837_v39  ;;  %v5263_v1 = vmul.u32.u64.low %v848_v55, %v847_v23  ;;  %v5264_v13 = vmul.u32.u64.high %v848_v55, %v847_v23, %v5263_v1  ;;  %v2624_v33 = vadd.s32 %v5202_v5, %v5200_v42 }
 0x1d2   :  { %vm3880_vm14 = vcmp.lt.s32.totalorder %v3879_v28, 0  ;;  %v5266_v15 = vmul.u32.u64.low %v848_v55, %v843_v30  ;;  %v5267_v63 = vmul.u32.u64.high %v848_v55, %v843_v30, %v5266_v15  ;;  %v3873_v21 = vadd.s32 4294967169, %v2468_v4 }
 0x1d3   :  { %v2639_v25 = vsel %vm3880_vm14, 0, %v3879_v28  ;;  %v2655_v14 = vsel %vm2570_vm9, %v2654_v56, %v5227_v61  ;;  %vm999_vm15 = vcmp.lt.s32.totalorder %v5229_v38, 2  ;;  %vm5278_vm0 = vcmp.le.f32.partialorder %v2568_v41, 0.7853982 }
 0x1d4   :  { %v2640_v59 = vsub.s32 32, %v2639_v25  ;;  %v2644_v35 = vsub.s32 4294967266, %v2639_v25  ;;  %v839_v6 = vsel %vm833_vm13, %v836_v47, %v838_v31  ;;  %v2474_v45 = vadd.s32 1, %v3873_v21 }
 0x1d5   :  { %vm996_vm1 = vweird.f32 %v5035_v17  ;;  %v2641_v42 = vshll.u32 %v5239_v24, %v2639_v25  ;;  %vm857_vm2 = vc.u32 %v5264_v13, %v5266_v15  ;;  %v2657_v61 = vsel %vm5278_vm0, 0, %v2655_v14 }
 0x1d6   :  { %v2642_v5 = vshrl.u32 %v2624_v33, %v2640_v59  ;;  %v2645_v32 = vadd.s32 127, %v2644_v35  ;;  %v858_v41 = vadd.s32 1, %v5267_v63  ;;  %v2464_v60 = vand.u32 2147483647, %v5237_v43 }
 0x1d7   :  { %vm2475_vm3 = vcmp.gt.s32.totalorder %v2474_v45, 0  ;;  %v855_v62 = vmul.u32 %v848_v55, %v839_v6  ;;  %vm1000_vm4 = vcmp.eq.s32.totalorder %v5229_v38, 0  ;;  %vm1003_vm5 = vcmp.eq.s32.totalorder %v5229_v38, 2 }
 0x1d8   :  { %v2643_v0 = vor.u32 %v2642_v5, %v2641_v42  ;;  %v2646_v49 = vshll.u32 %v2645_v32, 23  ;;  %v2476_v53 = vsel %vm2475_vm3, %v2474_v45, 0  ;;  %v859_v24 = vsel %vm857_vm2, %v858_v41, %v5267_v63 }
 0x1d9   :  { %v4211_v46 = vpop.eup %4210  ;;  %v2478_v50 = vand.u32 31, %v2476_v53  ;;  %v860_v37 = vadd.s32 %v859_v24, %v855_v62  ;;  %v5300_v34 = vadd.f32 %v5297_v2, %v3988_v7  ;;  %v5302_v55 = vadd.s32 3, %v2657_v61 }
 0x1da   :  { %v4213_v36 = vpop.eup %4212  ;;  %v1004_v51 = vxor.u32 2147483648, %v4211_v46  ;;  %v2647_v58 = vor.u32 4788187, %v2646_v49  ;;  %v2471_v54 = vand.u32 8388607, %v2464_v60  ;;  %v2650_v27 = vcvt.s32.f32 %v2643_v0 }
 0x1db   :  { %v1001_v40 = vxor.u32 2147483648, %v4213_v36  ;;  %v2479_v56 = vsub.s32 32, %v2478_v50  ;;  %v861_v39 = vadd.s32 536870912, %v860_v37  ;;  %v2481_v8 = vshll.u32 %v4333_v12, %v2478_v50 }
 0x1dc   :  { %v1005_v3 = vsel %vm1003_vm5, %v1004_v51, %v4213_v36  ;;  %v2648_v44 = vand.u32 2147483647, %v2647_v58  ;;  %v2472_v4 = vor.u32 8388608, %v2471_v54  ;;  %v2477_v31 = vshrl.u32 %v2476_v53, 5 }
 0x1dd   :  { %v1002_v9 = vsel %vm1000_vm4, %v4211_v46, %v1001_v40  ;;  %v2482_v48 = vshrl.u32 %v4334_v16, %v2479_v56  ;;  %v2485_v28 = vshrl.u32 %v4335_v18, %v2479_v56  ;;  %v5313_v47 = vshrl.u32 %v861_v39, 30 }
 0x1de   :  { %v1006_v19 = vsel %vm999_vm15, %v1002_v9, %v1005_v3  ;;  %v2651_v11 = vmul.f32 %v2650_v27, %v2648_v44  ;;  %v2488_v30 = vshrl.u32 %v4336_v20, %v2479_v56  ;;  %v2484_v1 = vshll.u32 %v4334_v16, %v2478_v50  ;;  %v4012_v27 = vpop.f32.mrf.mxu1 }
 0x1df   :  { %v1007_v23 = vsel %vm996_vm1, nan, %v1006_v19  ;;  %v863_v63 = vshll.u32 %v5313_v47, 30  ;;  %v2483_v21 = vor.u32 %v2482_v48, %v2481_v8  ;;  %v2487_v38 = vshll.u32 %v4335_v18, %v2478_v50 }
 0x1e0   :  { %3717 = vst [vmem:[#allocation2 + $0x28] sm:$0xff] %v1007_v23  ;;  %v2652_v25 = vxor.u32 2147483648, %v2651_v11  ;;  %v2490_v33 = vshll.u32 %v4336_v20, %v2478_v50  ;;  %v2491_v59 = vshrl.u32 %v4337_v22, %v2479_v56  ;;  %v2493_v35 = vshll.u32 %v4337_v22, %v2478_v50 }
 0x1e1   :  { %v2494_v17 = vshrl.u32 %v4338_v29, %v2479_v56  ;;  %v5327_v6 = vsub.s32 %v860_v37, %v863_v63  ;;  %v2486_v45 = vor.u32 %v2485_v28, %v2484_v1  ;;  %v2489_v42 = vor.u32 %v2488_v30, %v2487_v38 }
 0x1e2   :  { %v2653_v14 = vsel %vm2570_vm9, %v2652_v25, %v2651_v11  ;;  %v2492_v32 = vor.u32 %v2491_v59, %v2490_v33  ;;  %v1112_v41 = vand.u32 2147483647, %v5300_v34  ;;  %v2480_v0 = vshrl.u32 %v4333_v12, %v2479_v56 }
 0x1e3   :  { %v2656_v5 = vsel %vm5278_vm0, %v5106_v10, %v2653_v14  ;;  %v2495_v61 = vor.u32 %v2494_v17, %v2493_v35  ;;  %v866_v7 = vsub.s32 0, %v5327_v6  ;;  %v1115_v49 = vand.u32 2139095040, %v5300_v34 }
 0x1e4   :  { %4214 = vcosq.f32 %v2656_v5  ;;  %vm802_vm6 = vcmp.lt.s32.totalorder %v5167_v57, 0  ;;  %vm2496_vm7 = vcmp.lt.s32.totalorder %v2477_v31, 1  ;;  %vm2498_vm8 = vcmp.lt.s32.totalorder %v2477_v31, 3 }
 0x1e5   :  { %4216 = vsinq.f32 %v2656_v5  ;;  %vm2499_vm9 = vcmp.lt.s32.totalorder %v2477_v31, 4  ;;  %v3810_v26 = vmin.u32 %v866_v7, %v5327_v6  ;;  %v2504_v53 = vsel %vm2496_vm7, %v2483_v21, %v2486_v45 }
 0x1e6   :  { %v2501_v62 = vsel %vm2499_vm9, %v2489_v42, 2102212464  ;;  %v2505_v46 = vsel %vm2499_vm9, %v2492_v32, 920167782  ;;  %v2508_v50 = vsel %vm2496_vm7, %v2486_v45, %v2489_v42  ;;  %v2509_v36 = vsel %vm2499_vm9, %v2495_v61, 1326507024 }
 0x1e7   :  { %v2506_v24 = vsel %vm2498_vm8, %v2489_v42, %v2505_v46  ;;  %v2512_v51 = vshll.u32 %v2472_v4, 8  ;;  %v868_v58 = vclz %v3810_v26  ;;  %v886_v37 = vsub.s32 4, %v5313_v47 }
 0x1e8   :  { %vm2497_vm11 = vcmp.lt.s32.totalorder %v2477_v31, 2  ;;  %v2500_v40 = vsel %vm2496_vm7, %v2480_v0, %v2483_v21  ;;  %v2502_v54 = vsel %vm2498_vm8, %v2486_v45, %v2501_v62  ;;  %v2510_v3 = vsel %vm2498_vm8, %v2492_v32, %v2509_v36 }
 0x1e9   :  { %v2507_v56 = vsel %vm2497_vm11, %v2504_v53, %v2506_v24  ;;  %v1116_v44 = vshrl.u32 %v1115_v49, 23  ;;  %v3811_v39 = vadd.s32 4294967294, %v868_v58  ;;  %v2511_v9 = vsel %vm2497_vm11, %v2508_v50, %v2510_v3 }
 0x1ea   :  { %v5342_v8 = vmul.u32.u64.low %v2512_v51, %v2507_v56  ;;  %v5343_v48 = vmul.u32.u64.high %v2512_v51, %v2507_v56, %v5342_v8  ;;  %vm5347_vm10 = vcmp.le.f32.partialorder %v800_v52, 0.7853982  ;;  %v2662_v23 = vand.u32 3, %v5302_v55 }
 0x1eb   :  { %v5351_v19 = vmul.u32.u64.low %v2512_v51, %v2511_v9  ;;  %v5352_v11 = vmul.u32.u64.high %v2512_v51, %v2511_v9, %v5351_v19  ;;  %v3821_v30 = vadd.s32 4294967169, %v1116_v44  ;;  %vm3812_vm12 = vcmp.lt.s32.totalorder %v3811_v39, 0 }
 0x1ec   :  { %v2503_v4 = vsel %vm2497_vm11, %v2500_v40, %v2502_v54  ;;  %v5356_v31 = vadd.f32 %v5297_v2, %v4012_v27  ;;  %v856_v1 = vadd.s32 %v5266_v15, %v5264_v13  ;;  %v871_v25 = vsel %vm3812_vm12, 0, %v3811_v39 }
 0x1ed   :  { %v5362_v52 = vand.u32 8388607, %v1112_v41  ;;  %v1122_v63 = vadd.s32 1, %v3821_v30  ;;  %vm2660_vm13 = vweird.f32 %v5106_v10  ;;  %v872_v21 = vsub.s32 32, %v871_v25 }
 0x1ee   :  { %v876_v38 = vsub.s32 4294967266, %v871_v25  ;;  %v887_v55 = vsel %vm802_vm6, %v886_v37, %v5313_v47  ;;  %v2522_v33 = vadd.s32 1, %v5343_v48  ;;  %v873_v59 = vshll.u32 %v5327_v6, %v871_v25 }
 0x1ef   :  { %v2519_v35 = vmul.u32 %v2512_v51, %v2503_v4  ;;  %vm2521_vm14 = vc.u32 %v5352_v11, %v5342_v8  ;;  %vm1123_vm15 = vcmp.gt.s32.totalorder %v1122_v63, 0  ;;  %v874_v13 = vshrl.u32 %v856_v1, %v872_v21 }
 0x1f0   :  { %v877_v15 = vadd.s32 127, %v876_v38  ;;  %v2523_v17 = vsel %vm2521_vm14, %v2522_v33, %v5343_v48  ;;  %v1124_v14 = vsel %vm1123_vm15, %v1122_v63, 0  ;;  %vm2663_vm0 = vcmp.lt.s32.totalorder %v2662_v23, 2 }
 0x1f1   :  { %v4215_v45 = vpop.eup %4214  ;;  %v889_v42 = vsel %vm5347_vm10, 0, %v887_v55  ;;  %v2524_v5 = vadd.s32 %v2523_v17, %v2519_v35  ;;  %v1126_v47 = vand.u32 31, %v1124_v14  ;;  %vm2664_vm1 = vcmp.eq.s32.totalorder %v2662_v23, 0 }
 0x1f2   :  { %v4217_v32 = vpop.eup %4216  ;;  %v2668_v61 = vxor.u32 2147483648, %v4215_v45  ;;  %v875_v6 = vor.u32 %v874_v13, %v873_v59  ;;  %v878_v7 = vshll.u32 %v877_v15, 23  ;;  %vm2667_vm2 = vcmp.eq.s32.totalorder %v2662_v23, 2 }
 0x1f3   :  { %v2665_v0 = vxor.u32 2147483648, %v4217_v32  ;;  %v2525_v49 = vadd.s32 536870912, %v2524_v5  ;;  %v1127_v26 = vsub.s32 32, %v1126_v47  ;;  %v5374_v46 = vadd.s32 3, %v889_v42 }
 0x1f4   :  { %v2669_v62 = vsel %vm2667_vm2, %v2668_v61, %v4217_v32  ;;  %v879_v53 = vor.u32 4788187, %v878_v7  ;;  %v1120_v24 = vor.u32 8388608, %v5362_v52  ;;  %v2776_v51 = vand.u32 2147483647, %v5356_v31 }
 0x1f5   :  { %v2666_v50 = vsel %vm2664_vm1, %v4215_v45, %v2665_v0  ;;  %v2526_v36 = vshrl.u32 %v2525_v49, 30  ;;  %v2779_v58 = vand.u32 2139095040, %v5356_v31  ;;  %v882_v54 = vcvt.s32.f32 %v875_v6 }
 0x1f6   :  { %v2670_v37 = vsel %vm2663_vm0, %v2666_v50, %v2669_v62  ;;  %v880_v40 = vand.u32 2147483647, %v879_v53  ;;  %v1130_v56 = vshrl.u32 %v4334_v16, %v1127_v26  ;;  %v5384_v44 = vadd.s32 %v5342_v8, %v5352_v11 }
 0x1f7   :  { %v2671_v3 = vsel %vm2660_vm13, nan, %v2670_v37  ;;  %v2527_v27 = vshll.u32 %v2526_v36, 30  ;;  %v1133_v39 = vshrl.u32 %v4335_v18, %v1127_v26  ;;  %v1125_v48 = vshrl.u32 %v1124_v14, 5 }
 0x1f8   :  { %3733 = vst [vmem:[#allocation2 + $0xa8] sm:$0xff] %v2671_v3  ;;  %v883_v9 = vmul.f32 %v882_v54, %v880_v40  ;;  %v1129_v19 = vshll.u32 %v4333_v12, %v1126_v47  ;;  %v1136_v30 = vshrl.u32 %v4336_v20, %v1127_v26  ;;  %v1132_v4 = vshll.u32 %v4334_v16, %v1126_v47 }
 0x1f9   :  { %v5389_v23 = vsub.s32 %v2524_v5, %v2527_v27  ;;  %v1135_v10 = vshll.u32 %v4335_v18, %v1126_v47  ;;  %v1139_v1 = vshrl.u32 %v4337_v22, %v1127_v26  ;;  %v1138_v25 = vshll.u32 %v4336_v20, %v1126_v47 }
 0x1fa   :  { %v884_v8 = vxor.u32 2147483648, %v883_v9  ;;  %v1131_v11 = vor.u32 %v1130_v56, %v1129_v19  ;;  %v1142_v52 = vshrl.u32 %v4338_v29, %v1127_v26  ;;  %vm2466_vm3 = vcmp.lt.s32.totalorder %v5237_v43, 0 }
 0x1fb   :  { %v2530_v63 = vsub.s32 0, %v5389_v23  ;;  %v1134_v21 = vor.u32 %v1133_v39, %v1132_v4  ;;  %v1137_v38 = vor.u32 %v1136_v30, %v1135_v10  ;;  %v1141_v55 = vshll.u32 %v4337_v22, %v1126_v47 }
 0x1fc   :  { %v885_v33 = vsel %vm802_vm6, %v884_v8, %v883_v9  ;;  %v1140_v59 = vor.u32 %v1139_v1, %v1138_v25  ;;  %v1160_v35 = vshll.u32 %v1120_v24, 8  ;;  %v2780_v13 = vshrl.u32 %v2779_v58, 23 }
 0x1fd   :  { %v888_v15 = vsel %vm5347_vm10, %v5167_v57, %v885_v33  ;;  %v3874_v17 = vmin.u32 %v2530_v63, %v5389_v23  ;;  %v1128_v14 = vshrl.u32 %v4333_v12, %v1127_v26  ;;  %v1143_v45 = vor.u32 %v1142_v52, %v1141_v55 }
 0x1fe   :  { %4218 = vcosq.f32 %v888_v15  ;;  %v2550_v42 = vsub.s32 4, %v2526_v36  ;;  %vm1144_vm4 = vcmp.lt.s32.totalorder %v1125_v48, 1  ;;  %vm1147_vm5 = vcmp.lt.s32.totalorder %v1125_v48, 4 }
 0x1ff   :  { %4220 = vsinq.f32 %v888_v15  ;;  %v2532_v5 = vclz %v3874_v17  ;;  %v1149_v47 = vsel %vm1147_vm5, %v1137_v38, 2102212464  ;;  %v1152_v32 = vsel %vm1144_vm4, %v1131_v11, %v1134_v21 }
 0x200   :  { %vm1145_vm6 = vcmp.lt.s32.totalorder %v1125_v48, 2  ;;  %vm1146_vm7 = vcmp.lt.s32.totalorder %v1125_v48, 3  ;;  %v1153_v61 = vsel %vm1147_vm5, %v1140_v59, 920167782  ;;  %v1156_v6 = vsel %vm1144_vm4, %v1134_v21, %v1137_v38 }
 0x201   :  { %v3875_v7 = vadd.s32 4294967294, %v2532_v5  ;;  %v1148_v28 = vsel %vm1144_vm4, %v1128_v14, %v1131_v11  ;;  %v1154_v0 = vsel %vm1146_vm7, %v1137_v38, %v1153_v61  ;;  %v1157_v49 = vsel %vm1147_vm5, %v1143_v45, 1326507024 }
 0x202   :  { %v1150_v62 = vsel %vm1146_vm7, %v1134_v21, %v1149_v47  ;;  %v1155_v26 = vsel %vm1145_vm6, %v1152_v32, %v1154_v0  ;;  %v1158_v53 = vsel %vm1146_vm7, %v1140_v59, %v1157_v49  ;;  %v3885_v24 = vadd.s32 4294967169, %v2780_v13 }
 0x203   :  { %vm3876_vm8 = vcmp.lt.s32.totalorder %v3875_v7, 0  ;;  %v1159_v50 = vsel %vm1145_vm6, %v1156_v6, %v1158_v53  ;;  %v5408_v58 = vmul.u32.u64.low %v1160_v35, %v1155_v26  ;;  %v5409_v37 = vmul.u32.u64.high %v1160_v35, %v1155_v26, %v5408_v58 }
 0x204   :  { %v2535_v40 = vsel %vm3876_vm8, 0, %v3875_v7  ;;  %v2551_v54 = vsel %vm2466_vm3, %v2550_v42, %v2526_v36  ;;  %v5414_v56 = vmul.u32.u64.low %v1160_v35, %v1159_v50  ;;  %v5415_v3 = vmul.u32.u64.high %v1160_v35, %v1159_v50, %v5414_v56 }
 0x205   :  { %v2536_v27 = vsub.s32 32, %v2535_v40  ;;  %v2540_v39 = vsub.s32 4294967266, %v2535_v40  ;;  %v1151_v9 = vsel %vm1145_vm6, %v1148_v28, %v1150_v62  ;;  %v2786_v19 = vadd.s32 1, %v3885_v24 }
 0x206   :  { %v894_v30 = vand.u32 3, %v5374_v46  ;;  %vm5421_vm9 = vcmp.le.f32.partialorder %v2464_v60, 0.7853982  ;;  %v2537_v10 = vshll.u32 %v5389_v23, %v2535_v40  ;;  %v1170_v8 = vadd.s32 1, %v5409_v37  ;;  %v255_v40 = vpop.f32.mrf.mxu0 }
 0x207   :  { %v2538_v36 = vshrl.u32 %v5384_v44, %v2536_v27  ;;  %v2541_v1 = vadd.s32 127, %v2540_v39  ;;  %vm2787_vm11 = vcmp.gt.s32.totalorder %v2786_v19, 0  ;;  %v2553_v48 = vsel %vm5421_vm9, 0, %v2551_v54 }
 0x208   :  { %v1167_v11 = vmul.u32 %v1160_v35, %v1151_v9  ;;  %vm1169_vm10 = vc.u32 %v5415_v3, %v5408_v58  ;;  %v2788_v46 = vsel %vm2787_vm11, %v2786_v19, 0  ;;  %v2783_v23 = vand.u32 8388607, %v2776_v51 }
 0x209   :  { %v2539_v60 = vor.u32 %v2538_v36, %v2537_v10  ;;  %v2542_v25 = vshll.u32 %v2541_v1, 23  ;;  %v1171_v52 = vsel %vm1169_vm10, %v1170_v8, %v5409_v37  ;;  %vm892_vm12 = vweird.f32 %v5167_v57 }
 0x20a   :  { %v1172_v44 = vadd.s32 %v1171_v52, %v1167_v11  ;;  %v2790_v63 = vand.u32 31, %v2788_v46  ;;  %vm895_vm13 = vcmp.lt.s32.totalorder %v894_v30, 2  ;;  %vm896_vm14 = vcmp.eq.s32.totalorder %v894_v30, 0 }
 0x20b   :  { %v4219_v21 = vpop.eup %4218  ;;  %vm899_vm15 = vcmp.eq.s32.totalorder %v894_v30, 2  ;;  %v2543_v38 = vor.u32 4788187, %v2542_v25  ;;  %v5436_v59 = vadd.s32 3, %v2553_v48  ;;  %v2546_v14 = vcvt.s32.f32 %v2539_v60 }
 0x20c   :  { %v4221_v55 = vpop.eup %4220  ;;  %v900_v33 = vxor.u32 2147483648, %v4219_v21  ;;  %v1173_v35 = vadd.s32 536870912, %v1172_v44  ;;  %v2791_v13 = vsub.s32 32, %v2790_v63  ;;  %v2784_v45 = vor.u32 8388608, %v2783_v23 }
 0x20d   :  { %v897_v15 = vxor.u32 2147483648, %v4221_v55  ;;  %v2544_v17 = vand.u32 2147483647, %v2543_v38  ;;  %v2793_v47 = vshll.u32 %v4333_v12, %v2790_v63  ;;  %v2789_v62 = vshrl.u32 %v2788_v46, 5 }
 0x20e   :  { %v901_v42 = vsel %vm899_vm15, %v900_v33, %v4221_v55  ;;  %v1174_v5 = vshrl.u32 %v1173_v35, 30  ;;  %v2794_v32 = vshrl.u32 %v4334_v16, %v2791_v13  ;;  %v2797_v7 = vshrl.u32 %v4335_v18, %v2791_v13 }
 0x20f   :  { %v898_v61 = vsel %vm896_vm14, %v4219_v21, %v897_v15  ;;  %v2547_v6 = vmul.f32 %v2546_v14, %v2544_v17  ;;  %v2800_v28 = vshrl.u32 %v4336_v20, %v2791_v13  ;;  %v2796_v26 = vshll.u32 %v4334_v16, %v2790_v63  ;;  %v335_v14 = vpop.f32.mrf.mxu1 }
 0x210   :  { %v902_v0 = vsel %vm895_vm13, %v898_v61, %v901_v42  ;;  %v1175_v49 = vshll.u32 %v1174_v5, 30  ;;  %vm1114_vm0 = vcmp.lt.s32.totalorder %v5300_v34, 0  ;;  %v2795_v50 = vor.u32 %v2794_v32, %v2793_v47 }
 0x211   :  { %v903_v53 = vsel %vm892_vm12, nan, %v902_v0  ;;  %v2548_v24 = vxor.u32 2147483648, %v2547_v6  ;;  %v2799_v37 = vshll.u32 %v4335_v18, %v2790_v63  ;;  %v2798_v56 = vor.u32 %v2797_v7, %v2796_v26 }
 0x212   :  { %3716 = vst [vmem:[#allocation2 + $0x20] sm:$0xff] %v903_v53  ;;  %v5449_v54 = vsub.s32 %v1172_v44, %v1175_v49  ;;  %v2802_v27 = vshll.u32 %v4336_v20, %v2790_v63  ;;  %v2803_v39 = vshrl.u32 %v4337_v22, %v2791_v13  ;;  %v2805_v19 = vshll.u32 %v4337_v22, %v2790_v63 }
 0x213   :  { %v2549_v9 = vsel %vm2466_vm3, %v2548_v24, %v2547_v6  ;;  %v2801_v57 = vor.u32 %v2800_v28, %v2799_v37  ;;  %v2806_v30 = vshrl.u32 %v4338_v29, %v2791_v13  ;;  %v5462_v8 = vadd.f32 %v5297_v2, %v255_v40 }
 0x214   :  { %v2552_v10 = vsel %vm5421_vm9, %v5237_v43, %v2549_v9  ;;  %v1178_v36 = vsub.s32 0, %v5449_v54  ;;  %v2804_v1 = vor.u32 %v2803_v39, %v2802_v27  ;;  %v2792_v48 = vshrl.u32 %v4333_v12, %v2791_v13 }
 0x215   :  { %4222 = vcosq.f32 %v2552_v10  ;;  %v2807_v11 = vor.u32 %v2806_v30, %v2805_v19  ;;  %vm2808_vm1 = vcmp.lt.s32.totalorder %v2789_v62, 1  ;;  %v1198_v60 = vsub.s32 4, %v1174_v5 }
 0x216   :  { %4224 = vsinq.f32 %v2552_v10  ;;  %v3822_v46 = vmin.u32 %v1178_v36, %v5449_v54  ;;  %vm2811_vm2 = vcmp.lt.s32.totalorder %v2789_v62, 4  ;;  %v2816_v52 = vsel %vm2808_vm1, %v2795_v50, %v2798_v56 }
 0x217   :  { %v2813_v25 = vsel %vm2811_vm2, %v2801_v57, 2102212464  ;;  %v2817_v4 = vsel %vm2811_vm2, %v2804_v1, 920167782  ;;  %v2824_v23 = vshll.u32 %v2784_v45, 8  ;;  %vm2810_vm3 = vcmp.lt.s32.totalorder %v2789_v62, 3 }
 0x218   :  { %v1180_v44 = vclz %v3822_v46  ;;  %v2812_v63 = vsel %vm2808_vm1, %v2792_v48, %v2795_v50  ;;  %v2820_v21 = vsel %vm2808_vm1, %v2798_v56, %v2801_v57  ;;  %vm2809_vm4 = vcmp.lt.s32.totalorder %v2789_v62, 2 }
 0x219   :  { %v2814_v38 = vsel %vm2810_vm3, %v2798_v56, %v2813_v25  ;;  %v2818_v55 = vsel %vm2810_vm3, %v2801_v57, %v2817_v4  ;;  %v2821_v33 = vsel %vm2811_vm2, %v2807_v11, 1326507024  ;;  %v1199_v13 = vsel %vm1114_vm0, %v1198_v60, %v1174_v5 }
 0x21a   :  { %v3823_v35 = vadd.s32 4294967294, %v1180_v44  ;;  %v2819_v15 = vsel %vm2809_vm4, %v2816_v52, %v2818_v55  ;;  %v2822_v17 = vsel %vm2810_vm3, %v2804_v1, %v2821_v33  ;;  %v2815_v42 = vsel %vm2809_vm4, %v2812_v63, %v2814_v38 }
 0x21b   :  { %v2823_v47 = vsel %vm2809_vm4, %v2820_v21, %v2822_v17  ;;  %v5468_v32 = vmul.u32.u64.low %v2824_v23, %v2819_v15  ;;  %v5469_v61 = vmul.u32.u64.high %v2824_v23, %v2819_v15, %v5468_v32  ;;  %v1011_v7 = vand.u32 2139095040, %v5462_v8 }
 0x21c   :  { %vm3824_vm5 = vcmp.lt.s32.totalorder %v3823_v35, 0  ;;  %v5472_v45 = vmul.u32.u64.low %v2824_v23, %v2823_v47  ;;  %v5473_v6 = vmul.u32.u64.high %v2824_v23, %v2823_v47, %v5472_v45  ;;  %v2558_v28 = vand.u32 3, %v5436_v59 }
 0x21d   :  { %vm5479_vm6 = vcmp.le.f32.partialorder %v1112_v41, 0.7853982  ;;  %v1183_v0 = vsel %vm3824_vm5, 0, %v3823_v35  ;;  %v5484_v49 = vadd.f32 %v5297_v2, %v335_v14  ;;  %v1168_v62 = vadd.s32 %v5408_v58, %v5415_v3 }
 0x21e   :  { %v1184_v26 = vsub.s32 32, %v1183_v0  ;;  %v1188_v53 = vsub.s32 4294967266, %v1183_v0  ;;  %v1012_v24 = vshrl.u32 %v1011_v7, 23  ;;  %v1201_v50 = vsel %vm5479_vm6, 0, %v1199_v13 }
 0x21f   :  { %v2831_v59 = vmul.u32 %v2824_v23, %v2815_v42  ;;  %v2834_v37 = vadd.s32 1, %v5469_v61  ;;  %v1008_v41 = vand.u32 2147483647, %v5462_v8  ;;  %v1185_v40 = vshll.u32 %v5449_v54, %v1183_v0 }
 0x220   :  { %v1186_v56 = vshrl.u32 %v1168_v62, %v1184_v26  ;;  %v1189_v27 = vadd.s32 127, %v1188_v53  ;;  %vm2833_vm7 = vc.u32 %v5473_v6, %v5468_v32  ;;  %vm2559_vm8 = vcmp.lt.s32.totalorder %v2558_v28, 2 }
 0x221   :  { %v2835_v58 = vsel %vm2833_vm7, %v2834_v37, %v5469_v61  ;;  %v3817_v3 = vadd.s32 4294967169, %v1012_v24  ;;  %v2675_v39 = vand.u32 2139095040, %v5484_v49  ;;  %vm2560_vm9 = vcmp.eq.s32.totalorder %v2558_v28, 0 }
 0x222   :  { %v4223_v9 = vpop.eup %4222  ;;  %v1187_v57 = vor.u32 %v1186_v56, %v1185_v40  ;;  %v1190_v19 = vshll.u32 %v1189_v27, 23  ;;  %v2836_v30 = vadd.s32 %v2835_v58, %v2831_v59  ;;  %vm2563_vm11 = vcmp.eq.s32.totalorder %v2558_v28, 2 }
 0x223   :  { %v4225_v10 = vpop.eup %4224  ;;  %v2564_v36 = vxor.u32 2147483648, %v4223_v9  ;;  %v1205_v54 = vadd.s32 3, %v1201_v50  ;;  %v1018_v1 = vadd.s32 1, %v3817_v3  ;;  %v1015_v60 = vand.u32 8388607, %v1008_v41 }
 0x224   :  { %v2561_v48 = vxor.u32 2147483648, %v4225_v10  ;;  %v1191_v11 = vor.u32 4788187, %v1190_v19  ;;  %v2837_v46 = vadd.s32 536870912, %v2836_v30  ;;  %v1194_v52 = vcvt.s32.f32 %v1187_v57 }
 0x225   :  { %v2565_v25 = vsel %vm2563_vm11, %v2564_v36, %v4225_v10  ;;  %vm1019_vm10 = vcmp.gt.s32.totalorder %v1018_v1, 0  ;;  %v2676_v4 = vshrl.u32 %v2675_v39, 23  ;;  %vm2556_vm12 = vweird.f32 %v5237_v43 }
 0x226   :  { %v2562_v23 = vsel %vm2560_vm9, %v4223_v9, %v2561_v48  ;;  %v1192_v44 = vand.u32 2147483647, %v1191_v11  ;;  %v2838_v63 = vshrl.u32 %v2837_v46, 30  ;;  %v1020_v21 = vsel %vm1019_vm10, %v1018_v1, 0 }
 0x227   :  { %v2566_v38 = vsel %vm2559_vm8, %v2562_v23, %v2565_v25  ;;  %v1022_v55 = vand.u32 31, %v1020_v21  ;;  %v5502_v13 = vand.u32 3, %v1205_v54  ;;  %vm2778_vm13 = vcmp.lt.s32.totalorder %v5356_v31, 0 }
 0x228   :  { %v2567_v33 = vsel %vm2556_vm12, nan, %v2566_v38  ;;  %v1195_v35 = vmul.f32 %v1194_v52, %v1192_v44  ;;  %v2839_v15 = vshll.u32 %v2838_v63, 30  ;;  %v1016_v17 = vor.u32 8388608, %v1015_v60 }
 0x229   :  { %3732 = vst [vmem:[#allocation2 + $0xa0] sm:$0xff] %v2567_v33  ;;  %v1023_v14 = vsub.s32 32, %v1022_v55  ;;  %v2672_v42 = vand.u32 2147483647, %v5484_v49  ;;  %v3881_v47 = vadd.s32 4294967169, %v2676_v4  ;;  %v2862_v43 = vsub.s32 4, %v2838_v63 }
 0x22a   :  { %v1196_v61 = vxor.u32 2147483648, %v1195_v35  ;;  %v5506_v45 = vsub.s32 %v2836_v30, %v2839_v15  ;;  %v1021_v7 = vshrl.u32 %v1020_v21, 5  ;;  %v1025_v28 = vshll.u32 %v4333_v12, %v1022_v55 }
 0x22b   :  { %v1026_v0 = vshrl.u32 %v4334_v16, %v1023_v14  ;;  %v1028_v62 = vshll.u32 %v4334_v16, %v1022_v55  ;;  %v1029_v26 = vshrl.u32 %v4335_v18, %v1023_v14  ;;  %vm5516_vm14 = vcmp.le.f32.partialorder %v2776_v51, 0.7853982 }
 0x22c   :  { %v1197_v53 = vsel %vm1114_vm0, %v1196_v61, %v1195_v35  ;;  %v2842_v50 = vsub.s32 0, %v5506_v45  ;;  %v1031_v59 = vshll.u32 %v4335_v18, %v1022_v55  ;;  %v1032_v37 = vshrl.u32 %v4336_v20, %v1023_v14 }
 0x22d   :  { %v1200_v40 = vsel %vm5479_vm6, %v5300_v34, %v1197_v53  ;;  %v1027_v56 = vor.u32 %v1026_v0, %v1025_v28  ;;  %v1034_v27 = vshll.u32 %v4336_v20, %v1022_v55  ;;  %v1035_v58 = vshrl.u32 %v4337_v22, %v1023_v14 }
 0x22e   :  { %4226 = vcosq.f32 %v1200_v40  ;;  %v3886_v51 = vmin.u32 %v2842_v50, %v5506_v45  ;;  %v1030_v3 = vor.u32 %v1029_v26, %v1028_v62  ;;  %v1033_v39 = vor.u32 %v1032_v37, %v1031_v59 }
 0x22f   :  { %4228 = vsinq.f32 %v1200_v40  ;;  %v1036_v9 = vor.u32 %v1035_v58, %v1034_v27  ;;  %v1037_v57 = vshll.u32 %v4337_v22, %v1022_v55  ;;  %v1038_v19 = vshrl.u32 %v4338_v29, %v1023_v14 }
 0x230   :  { %v2832_v5 = vadd.s32 %v5468_v32, %v5473_v6  ;;  %v2844_v30 = vclz %v3886_v51  ;;  %v1056_v10 = vshll.u32 %v1016_v17, 8  ;;  %v2682_v36 = vadd.s32 1, %v3881_v47 }
 0x231   :  { %v2863_v54 = vsel %vm2778_vm13, %v2862_v43, %v2838_v63  ;;  %v1024_v1 = vshrl.u32 %v4333_v12, %v1023_v14  ;;  %v1039_v48 = vor.u32 %v1038_v19, %v1037_v57  ;;  %vm1040_vm15 = vcmp.lt.s32.totalorder %v1021_v7, 1 }
 0x232   :  { %v3887_v11 = vadd.s32 4294967294, %v2844_v30  ;;  %vm1042_vm0 = vcmp.lt.s32.totalorder %v1021_v7, 3  ;;  %vm1043_vm1 = vcmp.lt.s32.totalorder %v1021_v7, 4  ;;  %v1048_v46 = vsel %vm1040_vm15, %v1027_v56, %v1030_v3 }
 0x233   :  { %v1045_v60 = vsel %vm1043_vm1, %v1033_v39, 2102212464  ;;  %v1049_v25 = vsel %vm1043_vm1, %v1036_v9, 920167782  ;;  %v1052_v52 = vsel %vm1040_vm15, %v1030_v3, %v1033_v39  ;;  %v1053_v32 = vsel %vm1043_vm1, %v1039_v48, 1326507024 }
 0x234   :  { %vm3888_vm2 = vcmp.lt.s32.totalorder %v3887_v11, 0  ;;  %vm1041_vm3 = vcmp.lt.s32.totalorder %v1021_v7, 2  ;;  %v1050_v6 = vsel %vm1042_vm0, %v1033_v39, %v1049_v25  ;;  %v1054_v4 = vsel %vm1042_vm0, %v1036_v9, %v1053_v32 }
 0x235   :  { %v2847_v23 = vsel %vm3888_vm2, 0, %v3887_v11  ;;  %v2865_v44 = vsel %vm5516_vm14, 0, %v2863_v54  ;;  %v1051_v63 = vsel %vm1041_vm3, %v1048_v46, %v1050_v6  ;;  %v1055_v21 = vsel %vm1041_vm3, %v1052_v52, %v1054_v4 }
 0x236   :  { %v2848_v38 = vsub.s32 32, %v2847_v23  ;;  %v2852_v55 = vsub.s32 4294967266, %v2847_v23  ;;  %v1044_v33 = vsel %vm1040_vm15, %v1024_v1, %v1027_v56  ;;  %v1046_v35 = vsel %vm1042_vm0, %v1030_v3, %v1045_v60 }
 0x237   :  { %v5546_v15 = vmul.u32.u64.low %v1056_v10, %v1055_v21  ;;  %v5547_v17 = vmul.u32.u64.high %v1056_v10, %v1055_v21, %v5546_v15  ;;  %v5549_v14 = vmul.u32.u64.low %v1056_v10, %v1051_v63  ;;  %v5550_v47 = vmul.u32.u64.high %v1056_v10, %v1051_v63, %v5549_v14  ;;  %v3991_v21 = vpop.f32.mrf.mxu0 }
 0x238   :  { %vm1204_vm4 = vweird.f32 %v5300_v34  ;;  %v2849_v61 = vshll.u32 %v5506_v45, %v2847_v23  ;;  %v2850_v43 = vshrl.u32 %v2832_v5, %v2848_v38  ;;  %v2853_v28 = vadd.s32 127, %v2852_v55 }
 0x239   :  { %vm2683_vm5 = vcmp.gt.s32.totalorder %v2682_v36, 0  ;;  %v2869_v0 = vadd.s32 3, %v2865_v44  ;;  %v1047_v62 = vsel %vm1041_vm3, %v1044_v33, %v1046_v35  ;;  %v2679_v26 = vand.u32 8388607, %v2672_v42 }
 0x23a   :  { %v2684_v53 = vsel %vm2683_vm5, %v2682_v36, 0  ;;  %vm1207_vm6 = vcmp.lt.s32.totalorder %v5502_v13, 2  ;;  %v2851_v50 = vor.u32 %v2850_v43, %v2849_v61  ;;  %v2854_v59 = vshll.u32 %v2853_v28, 23 }
 0x23b   :  { %v2686_v37 = vand.u32 31, %v2684_v53  ;;  %v4227_v40 = vpop.eup %4226  ;;  %vm1208_vm7 = vcmp.eq.s32.totalorder %v5502_v13, 0  ;;  %vm1211_vm8 = vcmp.eq.s32.totalorder %v5502_v13, 2  ;;  %vm1065_vm9 = vc.u32 %v5547_v17, %v5549_v14 }
 0x23c   :  { %v1066_v45 = vadd.s32 1, %v5550_v47  ;;  %v4229_v7 = vpop.eup %4228  ;;  %v1212_v56 = vxor.u32 2147483648, %v4227_v40  ;;  %v2855_v27 = vor.u32 4788187, %v2854_v59  ;;  %v1063_v58 = vmul.u32 %v1056_v10, %v1047_v62 }
 0x23d   :  { %v2687_v51 = vsub.s32 32, %v2686_v37  ;;  %v1209_v3 = vxor.u32 2147483648, %v4229_v7  ;;  %v5564_v39 = vand.u32 3, %v2869_v0  ;;  %v2680_v57 = vor.u32 8388608, %v2679_v26 }
 0x23e   :  { %v1067_v9 = vsel %vm1065_vm9, %v1066_v45, %v5550_v47  ;;  %v1213_v19 = vsel %vm1211_vm8, %v1212_v56, %v4229_v7  ;;  %v2856_v5 = vand.u32 2147483647, %v2855_v27  ;;  %v2858_v30 = vcvt.s32.f32 %v2851_v50 }
 0x23f   :  { %v1068_v36 = vadd.s32 %v1067_v9, %v1063_v58  ;;  %v1210_v54 = vsel %vm1208_vm7, %v4227_v40, %v1209_v3  ;;  %v2685_v1 = vshrl.u32 %v2684_v53, 5  ;;  %v2690_v48 = vshrl.u32 %v4334_v16, %v2687_v51  ;;  %v4015_v9 = vpop.f32.mrf.mxu1 }
 0x240   :  { %v2693_v11 = vshrl.u32 %v4335_v18, %v2687_v51  ;;  %v1214_v10 = vsel %vm1207_vm6, %v1210_v54, %v1213_v19  ;;  %v2859_v46 = vmul.f32 %v2858_v30, %v2856_v5  ;;  %v2696_v25 = vshrl.u32 %v4336_v20, %v2687_v51 }
 0x241   :  { %v1069_v60 = vadd.s32 536870912, %v1068_v36  ;;  %v1215_v52 = vsel %vm1204_vm4, nan, %v1214_v10  ;;  %v2689_v32 = vshll.u32 %v4333_v12, %v2686_v37  ;;  %v2692_v6 = vshll.u32 %v4334_v16, %v2686_v37 }
 0x242   :  { %v2695_v4 = vshll.u32 %v4335_v18, %v2686_v37  ;;  %3719 = vst [vmem:[#allocation2 + $0x38] sm:$0xff] %v1215_v52  ;;  %v2860_v23 = vxor.u32 2147483648, %v2859_v46  ;;  %v2698_v63 = vshll.u32 %v4336_v20, %v2686_v37  ;;  %v2699_v13 = vshrl.u32 %v4337_v22, %v2687_v51 }
 0x243   :  { %v1070_v44 = vshrl.u32 %v1069_v60, 30  ;;  %v2691_v38 = vor.u32 %v2690_v48, %v2689_v32  ;;  %v2694_v55 = vor.u32 %v2693_v11, %v2692_v6  ;;  %v2701_v33 = vshll.u32 %v4337_v22, %v2686_v37 }
 0x244   :  { %v2702_v34 = vshrl.u32 %v4338_v29, %v2687_v51  ;;  %v2861_v35 = vsel %vm2778_vm13, %v2860_v23, %v2859_v46  ;;  %v2697_v47 = vor.u32 %v2696_v25, %v2695_v4  ;;  %v2700_v61 = vor.u32 %v2699_v13, %v2698_v63 }
 0x245   :  { %v1071_v15 = vshll.u32 %v1070_v44, 30  ;;  %v2864_v43 = vsel %vm5516_vm14, %v5356_v31, %v2861_v35  ;;  %v2720_v0 = vshll.u32 %v2680_v57, 8  ;;  %v5589_v62 = vadd.f32 %v5297_v2, %v3991_v21 }
 0x246   :  { %v2703_v28 = vor.u32 %v2702_v34, %v2701_v33  ;;  %4230 = vcosq.f32 %v2864_v43  ;;  %v2688_v53 = vshrl.u32 %v4333_v12, %v2687_v51  ;;  %vm2704_vm11 = vcmp.lt.s32.totalorder %v2685_v1, 1 }
 0x247   :  { %v5591_v26 = vsub.s32 %v1068_v36, %v1071_v15  ;;  %4232 = vsinq.f32 %v2864_v43  ;;  %vm2705_vm10 = vcmp.lt.s32.totalorder %v2685_v1, 2  ;;  %vm2707_vm12 = vcmp.lt.s32.totalorder %v2685_v1, 4 }
 0x248   :  { %v2712_v50 = vsel %vm2704_vm11, %v2691_v38, %v2694_v55  ;;  %vm2706_vm13 = vcmp.lt.s32.totalorder %v2685_v1, 3  ;;  %v2709_v24 = vsel %vm2707_vm12, %v2697_v47, 2102212464  ;;  %v2713_v37 = vsel %vm2707_vm12, %v2700_v61, 920167782 }
 0x249   :  { %v1074_v59 = vsub.s32 0, %v5591_v26  ;;  %v1094_v40 = vsub.s32 4, %v1070_v44  ;;  %v2714_v45 = vsel %vm2706_vm13, %v2697_v47, %v2713_v37  ;;  %v2716_v7 = vsel %vm2704_vm11, %v2694_v55, %v2697_v47 }
 0x24a   :  { %v2717_v56 = vsel %vm2707_vm12, %v2703_v28, 1326507024  ;;  %v2708_v58 = vsel %vm2704_vm11, %v2688_v53, %v2691_v38  ;;  %v2715_v3 = vsel %vm2705_vm10, %v2712_v50, %v2714_v45  ;;  %v2710_v57 = vsel %vm2706_vm13, %v2694_v55, %v2709_v24 }
 0x24b   :  { %v3818_v27 = vmin.u32 %v1074_v59, %v5591_v26  ;;  %v2718_v51 = vsel %vm2706_vm13, %v2700_v61, %v2717_v56  ;;  %v5598_v5 = vmul.u32.u64.low %v2720_v0, %v2715_v3  ;;  %v5599_v30 = vmul.u32.u64.high %v2720_v0, %v2715_v3, %v5598_v5  ;;  %v265_v3 = vpop.f32.mrf.mxu0 }
 0x24c   :  { %v2719_v19 = vsel %vm2705_vm10, %v2716_v7, %v2718_v51  ;;  %vm1010_vm14 = vcmp.lt.s32.totalorder %v5462_v8, 0  ;;  %v5607_v11 = vadd.f32 %v5297_v2, %v4015_v9  ;;  %vm5611_vm15 = vcmp.le.f32.partialorder %v1008_v41, 0.7853982 }
 0x24d   :  { %v1076_v36 = vclz %v3818_v27  ;;  %v5603_v54 = vmul.u32.u64.low %v2720_v0, %v2719_v19  ;;  %v5604_v48 = vmul.u32.u64.high %v2720_v0, %v2719_v19, %v5603_v54  ;;  %v2711_v60 = vsel %vm2705_vm10, %v2708_v58, %v2710_v57 }
 0x24e   :  { %v1323_v25 = vand.u32 2139095040, %v5589_v62  ;;  %vm2871_vm0 = vcmp.lt.s32.totalorder %v5564_v39, 2  ;;  %vm2872_vm1 = vcmp.eq.s32.totalorder %v5564_v39, 0  ;;  %v1095_v52 = vsel %vm1010_vm14, %v1094_v40, %v1070_v44 }
 0x24f   :  { %v3819_v46 = vadd.s32 4294967294, %v1076_v36  ;;  %v2730_v2 = vadd.s32 1, %v5599_v30  ;;  %v1320_v32 = vand.u32 2147483647, %v5589_v62  ;;  %vm2868_vm2 = vweird.f32 %v5356_v31 }
 0x250   :  { %vm2875_vm3 = vcmp.eq.s32.totalorder %v5564_v39, 2  ;;  %v1064_v41 = vadd.s32 %v5549_v14, %v5547_v17  ;;  %v1324_v1 = vshrl.u32 %v1323_v25, 23  ;;  %v2727_v4 = vmul.u32 %v2720_v0, %v2711_v60  ;;  %v5661_v60 = vld [vmem:[%s6868_s2] ss:$0 sm:$0xff] }
 0x251   :  { %vm3820_vm4 = vcmp.lt.s32.totalorder %v3819_v46, 0  ;;  %vm2729_vm5 = vc.u32 %v5604_v48, %v5598_v5  ;;  %v2987_v23 = vand.u32 2139095040, %v5607_v11  ;;  %v1097_v13 = vsel %vm5611_vm15, 0, %v1095_v52 }
 0x252   :  { %v1079_v6 = vsel %vm3820_vm4, 0, %v3819_v46  ;;  %v2731_v21 = vsel %vm2729_vm5, %v2730_v2, %v5599_v30  ;;  %v3829_v33 = vadd.s32 4294967169, %v1324_v1  ;;  %v1327_v17 = vand.u32 8388607, %v1320_v32 }
 0x253   :  { %v1080_v44 = vsub.s32 32, %v1079_v6  ;;  %v1084_v63 = vsub.s32 4294967266, %v1079_v6  ;;  %v4231_v38 = vpop.eup %4230  ;;  %v2732_v55 = vadd.s32 %v2731_v21, %v2727_v4  ;;  %v2984_v14 = vand.u32 2147483647, %v5607_v11 }
 0x254   :  { %v4233_v34 = vpop.eup %4232  ;;  %v2876_v35 = vxor.u32 2147483648, %v4231_v38  ;;  %v1081_v15 = vshll.u32 %v5591_v26, %v1079_v6  ;;  %v1330_v0 = vadd.s32 1, %v3829_v33  ;;  %v2988_v53 = vshrl.u32 %v2987_v23, 23 }
 0x255   :  { %v1082_v47 = vshrl.u32 %v1064_v41, %v1080_v44  ;;  %v1085_v61 = vadd.s32 127, %v1084_v63  ;;  %v2873_v43 = vxor.u32 2147483648, %v4233_v34  ;;  %v2733_v28 = vadd.s32 536870912, %v2732_v55 }
 0x256   :  { %v2877_v50 = vsel %vm2875_vm3, %v2876_v35, %v4233_v34  ;;  %v1101_v37 = vadd.s32 3, %v1097_v13  ;;  %v1328_v7 = vor.u32 8388608, %v1327_v17  ;;  %vm1331_vm6 = vcmp.gt.s32.totalorder %v1330_v0, 0 }
 0x257   :  { %v1083_v59 = vor.u32 %v1082_v47, %v1081_v15  ;;  %v1086_v24 = vshll.u32 %v1085_v61, 23  ;;  %v2874_v40 = vsel %vm2872_vm1, %v4231_v38, %v2873_v43  ;;  %v5641_v45 = vshrl.u32 %v2733_v28, 30 }
 0x258   :  { %v2878_v26 = vsel %vm2871_vm0, %v2874_v40, %v2877_v50  ;;  %v1332_v27 = vsel %vm1331_vm6, %v1330_v0, 0  ;;  %v5647_v58 = vand.u32 8388607, %v2984_v14  ;;  %v3893_v57 = vadd.s32 4294967169, %v2988_v53 }
 0x259   :  { %v1087_v56 = vor.u32 4788187, %v1086_v24  ;;  %v2879_v51 = vsel %vm2868_vm2, nan, %v2878_v26  ;;  %v2735_v9 = vshll.u32 %v5641_v45, 30  ;;  %v1090_v30 = vcvt.s32.f32 %v1083_v59 }
 0x25a   :  { %3735 = vst [vmem:[#allocation2 + $0xb8] sm:$0xff] %v2879_v51  ;;  %v1334_v36 = vand.u32 31, %v1332_v27  ;;  %v5652_v54 = vand.u32 3, %v1101_v37  ;;  %v2728_v39 = vadd.s32 %v5598_v5, %v5604_v48  ;;  %v5664_v31 = vadd.f32 %v5661_v60, %v265_v3 }
 0x25b   :  { %v1088_v19 = vand.u32 2147483647, %v1087_v56  ;;  %v5656_v46 = vsub.s32 %v2732_v55, %v2735_v9  ;;  %v5666_v2 = vshll.u32 %v1328_v7, 8  ;;  %v2992_v41 = vor.u32 8388608, %v5647_v58 }
 0x25c   :  { %v1335_v52 = vsub.s32 32, %v1334_v36  ;;  %v1333_v6 = vshrl.u32 %v1332_v27, 5  ;;  %v1337_v5 = vshll.u32 %v4333_v12, %v1334_v36  ;;  %v2994_v48 = vadd.s32 1, %v3893_v57 }
 0x25d   :  { %v1091_v25 = vmul.f32 %v1090_v30, %v1088_v19  ;;  %v2738_v1 = vsub.s32 0, %v5656_v46  ;;  %v1340_v44 = vshll.u32 %v4334_v16, %v1334_v36  ;;  %v1343_v21 = vshll.u32 %v4335_v18, %v1334_v36 }
 0x25e   :  { %v1338_v23 = vshrl.u32 %v4334_v16, %v1335_v52  ;;  %v1341_v63 = vshrl.u32 %v4335_v18, %v1335_v52  ;;  %v1344_v38 = vshrl.u32 %v4336_v20, %v1335_v52  ;;  %v1346_v55 = vshll.u32 %v4336_v20, %v1334_v36 }
 0x25f   :  { %v1092_v4 = vxor.u32 2147483648, %v1091_v25  ;;  %v3882_v13 = vmin.u32 %v2738_v1, %v5656_v46  ;;  %v1347_v35 = vshrl.u32 %v4337_v22, %v1335_v52  ;;  %v2758_v61 = vsub.s32 4, %v5641_v45 }
 0x260   :  { %v1339_v17 = vor.u32 %v1338_v23, %v1337_v5  ;;  %v1342_v34 = vor.u32 %v1341_v63, %v1340_v44  ;;  %vm2995_vm7 = vcmp.gt.s32.totalorder %v2994_v48, 0  ;;  %v1345_v43 = vor.u32 %v1344_v38, %v1343_v21 }
 0x261   :  { %v1093_v33 = vsel %vm1010_vm14, %v1092_v4, %v1091_v25  ;;  %v2740_v47 = vclz %v3882_v13  ;;  %v1348_v28 = vor.u32 %v1347_v35, %v1346_v55  ;;  %vm1352_vm8 = vcmp.lt.s32.totalorder %v1333_v6, 1 }
 0x262   :  { %v1096_v15 = vsel %vm5611_vm15, %v5462_v8, %v1093_v33  ;;  %vm2674_vm9 = vcmp.lt.s32.totalorder %v5484_v49, 0  ;;  %v1349_v53 = vshll.u32 %v4337_v22, %v1334_v36  ;;  %v1350_v50 = vshrl.u32 %v4338_v29, %v1335_v52 }
 0x263   :  { %4234 = vcosq.f32 %v1096_v15  ;;  %v3883_v0 = vadd.s32 4294967294, %v2740_v47  ;;  %v1336_v59 = vshrl.u32 %v4333_v12, %v1335_v52  ;;  %vm1354_vm11 = vcmp.lt.s32.totalorder %v1333_v6, 3 }
 0x264   :  { %4236 = vsinq.f32 %v1096_v15  ;;  %vm1355_vm10 = vcmp.lt.s32.totalorder %v1333_v6, 4  ;;  %v1360_v10 = vsel %vm1352_vm8, %v1339_v17, %v1342_v34  ;;  %v1351_v24 = vor.u32 %v1350_v50, %v1349_v53 }
 0x265   :  { %vm3884_vm12 = vcmp.lt.s32.totalorder %v3883_v0, 0  ;;  %v1357_v37 = vsel %vm1355_vm10, %v1345_v43, 2102212464  ;;  %v1361_v40 = vsel %vm1355_vm10, %v1348_v28, 920167782  ;;  %v1356_v26 = vsel %vm1352_vm8, %v1336_v59, %v1339_v17 }
 0x266   :  { %v2743_v7 = vsel %vm3884_vm12, 0, %v3883_v0  ;;  %v1358_v56 = vsel %vm1354_vm11, %v1342_v34, %v1357_v37  ;;  %v1362_v27 = vsel %vm1354_vm11, %v1345_v43, %v1361_v40  ;;  %vm1353_vm13 = vcmp.lt.s32.totalorder %v1333_v6, 2 }
 0x267   :  { %v2744_v3 = vsub.s32 32, %v2743_v7  ;;  %v2748_v51 = vsub.s32 4294967266, %v2743_v7  ;;  %v1364_v9 = vsel %vm1352_vm8, %v1342_v34, %v1345_v43  ;;  %v2745_v57 = vshll.u32 %v5656_v46, %v2743_v7 }
 0x268   :  { %v1363_v19 = vsel %vm1353_vm13, %v1360_v10, %v1362_v27  ;;  %v1365_v30 = vsel %vm1355_vm10, %v1351_v24, 1326507024  ;;  %v2996_v36 = vsel %vm2995_vm7, %v2994_v48, 0  ;;  %v1359_v1 = vsel %vm1353_vm13, %v1356_v26, %v1358_v56 }
 0x269   :  { %v2746_v25 = vshrl.u32 %v2728_v39, %v2744_v3  ;;  %v2749_v52 = vadd.s32 127, %v2748_v51  ;;  %v1366_v5 = vsel %vm1354_vm11, %v1348_v28, %v1365_v30  ;;  %vm1104_vm14 = vcmp.eq.s32.totalorder %v5652_v54, 0 }
 0x26a   :  { %v1367_v4 = vsel %vm1353_vm13, %v1364_v9, %v1366_v5  ;;  %v5702_v23 = vmul.u32.u64.low %v5666_v2, %v1363_v19  ;;  %v5703_v44 = vmul.u32.u64.high %v5666_v2, %v1363_v19, %v5702_v23  ;;  %v2998_v63 = vand.u32 31, %v2996_v36 }
 0x26b   :  { %vm1103_vm15 = vcmp.lt.s32.totalorder %v5652_v54, 2  ;;  %vm5709_vm0 = vcmp.le.f32.partialorder %v2672_v42, 0.7853982  ;;  %v2747_v39 = vor.u32 %v2746_v25, %v2745_v57  ;;  %v2750_v6 = vshll.u32 %v2749_v52, 23 }
 0x26c   :  { %v5714_v48 = vmul.u32.u64.low %v5666_v2, %v1367_v4  ;;  %v5715_v13 = vmul.u32.u64.high %v5666_v2, %v1367_v4, %v5714_v48  ;;  %vm1100_vm1 = vweird.f32 %v5462_v8  ;;  %vm1107_vm2 = vcmp.eq.s32.totalorder %v5652_v54, 2 }
 0x26d   :  { %v2759_v21 = vsel %vm2674_vm9, %v2758_v61, %v5641_v45  ;;  %v2999_v38 = vsub.s32 32, %v2998_v63  ;;  %v5724_v42 = vshll.u32 %v2992_v41, 8  ;;  %v2751_v55 = vor.u32 4788187, %v2750_v6 }
 0x26e   :  { %v1375_v33 = vmul.u32 %v5666_v2, %v1359_v1  ;;  %v5727_v17 = vshrl.u32 %v2996_v36, 5  ;;  %v3001_v34 = vshll.u32 %v4333_v12, %v2998_v63  ;;  %v1378_v35 = vadd.s32 1, %v5703_v44 }
 0x26f   :  { %v3002_v15 = vshrl.u32 %v4334_v16, %v2999_v38  ;;  %v3004_v47 = vshll.u32 %v4334_v16, %v2998_v63  ;;  %v3007_v45 = vshll.u32 %v4335_v18, %v2998_v63  ;;  %v2752_v43 = vand.u32 2147483647, %v2751_v55 }
 0x270   :  { %v4235_v61 = vpop.eup %4234  ;;  %v2754_v58 = vcvt.s32.f32 %v2747_v39  ;;  %vm1377_vm3 = vc.u32 %v5715_v13, %v5702_v23  ;;  %v3005_v2 = vshrl.u32 %v4335_v18, %v2999_v38  ;;  %v3008_v53 = vshrl.u32 %v4336_v20, %v2999_v38 }
 0x271   :  { %v4237_v41 = vpop.eup %4236  ;;  %v1108_v28 = vxor.u32 2147483648, %v4235_v61  ;;  %v1379_v0 = vsel %vm1377_vm3, %v1378_v35, %v5703_v44  ;;  %v3010_v50 = vshll.u32 %v4336_v20, %v2998_v63  ;;  %v3013_v37 = vshll.u32 %v4337_v22, %v2998_v63 }
 0x272   :  { %v1105_v59 = vxor.u32 2147483648, %v4237_v41  ;;  %v2755_v10 = vmul.f32 %v2754_v58, %v2752_v43  ;;  %v1380_v24 = vadd.s32 %v1379_v0, %v1375_v33  ;;  %v3003_v7 = vor.u32 %v3002_v15, %v3001_v34 }
 0x273   :  { %v1109_v40 = vsel %vm1107_vm2, %v1108_v28, %v4237_v41  ;;  %v3011_v26 = vshrl.u32 %v4337_v22, %v2999_v38  ;;  %v3014_v56 = vshrl.u32 %v4338_v29, %v2999_v38  ;;  %v3006_v9 = vor.u32 %v3005_v2, %v3004_v47 }
 0x274   :  { %v1106_v27 = vsel %vm1104_vm14, %v4235_v61, %v1105_v59  ;;  %v2756_v3 = vxor.u32 2147483648, %v2755_v10  ;;  %v1381_v51 = vadd.s32 536870912, %v1380_v24  ;;  %v2761_v19 = vsel %vm5709_vm0, 0, %v2759_v21 }
 0x275   :  { %v1110_v57 = vsel %vm1103_vm15, %v1106_v27, %v1109_v40  ;;  %v3009_v30 = vor.u32 %v3008_v53, %v3007_v45  ;;  %v3012_v36 = vor.u32 %v3011_v26, %v3010_v50  ;;  %v3015_v5 = vor.u32 %v3014_v56, %v3013_v37  ;;  %v345_v56 = vpop.f32.mrf.mxu1 }
 0x276   :  { %v1111_v25 = vsel %vm1100_vm1, nan, %v1110_v57  ;;  %v2757_v52 = vsel %vm2674_vm9, %v2756_v3, %v2755_v10  ;;  %v1382_v1 = vshrl.u32 %v1381_v51, 30  ;;  %v3000_v54 = vshrl.u32 %v4333_v12, %v2999_v38 }
 0x277   :  { %3718 = vst [vmem:[#allocation2 + $0x30] sm:$0xff] %v1111_v25  ;;  %v2760_v4 = vsel %vm5709_vm0, %v5484_v49, %v2757_v52  ;;  %vm3016_vm4 = vcmp.lt.s32.totalorder %v5727_v17, 1  ;;  %vm3018_vm5 = vcmp.lt.s32.totalorder %v5727_v17, 3  ;;  %vm3019_vm6 = vcmp.lt.s32.totalorder %v5727_v17, 4 }
 0x278   :  { %4238 = vcosq.f32 %v2760_v4  ;;  %v1383_v44 = vshll.u32 %v1382_v1, 30  ;;  %v3024_v8 = vsel %vm3016_vm4, %v3003_v7, %v3006_v9  ;;  %v3021_v63 = vsel %vm3019_vm6, %v3009_v30, 2102212464 }
 0x279   :  { %4240 = vsinq.f32 %v2760_v4  ;;  %v3025_v39 = vsel %vm3019_vm6, %v3012_v36, 920167782  ;;  %v3028_v46 = vsel %vm3016_vm4, %v3006_v9, %v3009_v30  ;;  %vm3017_vm7 = vcmp.lt.s32.totalorder %v5727_v17, 2 }
 0x27a   :  { %v5766_v6 = vsub.s32 %v1380_v24, %v1383_v44  ;;  %v3026_v48 = vsel %vm3018_vm5, %v3009_v30, %v3025_v39  ;;  %v3029_v21 = vsel %vm3019_vm6, %v3015_v5, 1326507024  ;;  %v2765_v38 = vadd.s32 3, %v2761_v19 }
 0x27b   :  { %v1406_v55 = vsub.s32 4, %v1382_v1  ;;  %v3027_v33 = vsel %vm3017_vm7, %v3024_v8, %v3026_v48  ;;  %v3030_v34 = vsel %vm3018_vm5, %v3012_v36, %v3029_v21  ;;  %v3020_v15 = vsel %vm3016_vm4, %v3000_v54, %v3003_v7 }
 0x27c   :  { %v1386_v35 = vsub.s32 0, %v5766_v6  ;;  %v3022_v47 = vsel %vm3018_vm5, %v3006_v9, %v3021_v63  ;;  %v3031_v45 = vsel %vm3017_vm7, %v3028_v46, %v3030_v34  ;;  %vm1322_vm8 = vcmp.lt.s32.totalorder %v5589_v62, 0 }
 0x27d   :  { %v5783_v61 = vmul.u32.u64.low %v5724_v42, %v3031_v45  ;;  %v5784_v43 = vmul.u32.u64.high %v5724_v42, %v3031_v45, %v5783_v61  ;;  %v5787_v58 = vmul.u32.u64.low %v5724_v42, %v3027_v33  ;;  %v5788_v2 = vmul.u32.u64.high %v5724_v42, %v3027_v33, %v5787_v58 }
 0x27e   :  { %v3830_v41 = vmin.u32 %v1386_v35, %v5766_v6  ;;  %v2766_v28 = vand.u32 3, %v2765_v38  ;;  %v1407_v0 = vsel %vm1322_vm8, %v1406_v55, %v1382_v1  ;;  %v3023_v53 = vsel %vm3017_vm7, %v3020_v15, %v3022_v47 }
 0x27f   :  { %v1219_v50 = vand.u32 2139095040, %v5664_v31  ;;  %vm5799_vm9 = vcmp.le.f32.partialorder %v1320_v32, 0.7853982  ;;  %vm3041_vm11 = vc.u32 %v5784_v43, %v5787_v58  ;;  %v3042_v24 = vadd.s32 1, %v5788_v2 }
 0x280   :  { %v1388_v59 = vclz %v3830_v41  ;;  %v1409_v7 = vsel %vm5799_vm9, 0, %v1407_v0  ;;  %v3039_v17 = vmul.u32 %v5724_v42, %v3023_v53  ;;  %v1216_v26 = vand.u32 2147483647, %v5664_v31 }
 0x281   :  { %v1220_v37 = vshrl.u32 %v1219_v50, 23  ;;  %vm2767_vm10 = vcmp.lt.s32.totalorder %v2766_v28, 2  ;;  %vm2768_vm12 = vcmp.eq.s32.totalorder %v2766_v28, 0  ;;  %v3043_v32 = vsel %vm3041_vm11, %v3042_v24, %v5788_v2 }
 0x282   :  { %v3831_v40 = vadd.s32 4294967294, %v1388_v59  ;;  %vm2771_vm13 = vcmp.eq.s32.totalorder %v2766_v28, 2  ;;  %v1376_v3 = vadd.s32 %v5702_v23, %v5715_v13  ;;  %v3044_v51 = vadd.s32 %v3043_v32, %v3039_v17 }
 0x283   :  { %v3825_v27 = vadd.s32 4294967169, %v1220_v37  ;;  %v1413_v19 = vadd.s32 3, %v1409_v7  ;;  %v5813_v42 = vadd.f32 %v5661_v60, %v345_v56  ;;  %v1223_v5 = vand.u32 8388607, %v1216_v26 }
 0x284   :  { %vm3832_vm14 = vcmp.lt.s32.totalorder %v3831_v40, 0  ;;  %v3045_v23 = vadd.s32 536870912, %v3044_v51  ;;  %vm2764_vm0 = vweird.f32 %v5484_v49  ;;  %vm2986_vm1 = vcmp.lt.s32.totalorder %v5607_v11, 0 }
 0x285   :  { %v4239_v9 = vpop.eup %4238  ;;  %v1391_v57 = vsel %vm3832_vm14, 0, %v3831_v40  ;;  %v1226_v30 = vadd.s32 1, %v3825_v27  ;;  %v2883_v21 = vand.u32 2139095040, %v5813_v42  ;;  %v5824_v47 = vand.u32 3, %v1413_v19 }
 0x286   :  { %v4241_v36 = vpop.eup %4240  ;;  %v2772_v25 = vxor.u32 2147483648, %v4239_v9  ;;  %v1392_v52 = vsub.s32 32, %v1391_v57  ;;  %v1396_v1 = vsub.s32 4294967266, %v1391_v57  ;;  %v1393_v54 = vshll.u32 %v5766_v6, %v1391_v57 }
 0x287   :  { %v2769_v4 = vxor.u32 2147483648, %v4241_v36  ;;  %vm1227_vm15 = vcmp.gt.s32.totalorder %v1226_v30, 0  ;;  %v3046_v46 = vshrl.u32 %v3045_v23, 30  ;;  %v3040_v45 = vadd.s32 %v5787_v58, %v5784_v43 }
 0x288   :  { %v2773_v13 = vsel %vm2771_vm13, %v2772_v25, %v4241_v36  ;;  %v1394_v44 = vshrl.u32 %v1376_v3, %v1392_v52  ;;  %v1397_v8 = vadd.s32 127, %v1396_v1  ;;  %v1228_v63 = vsel %vm1227_vm15, %v1226_v30, 0 }
 0x289   :  { %v2770_v39 = vsel %vm2768_vm12, %v4239_v9, %v2769_v4  ;;  %v1230_v48 = vand.u32 31, %v1228_v63  ;;  %v3047_v34 = vshll.u32 %v3046_v46, 30  ;;  %v1224_v61 = vor.u32 8388608, %v1223_v5 }
 0x28a   :  { %v2774_v38 = vsel %vm2767_vm10, %v2770_v39, %v2773_v13  ;;  %v1395_v55 = vor.u32 %v1394_v44, %v1393_v54  ;;  %v1398_v33 = vshll.u32 %v1397_v8, 23  ;;  %v3070_v41 = vsub.s32 4, %v3046_v46 }
 0x28b   :  { %v2775_v6 = vsel %vm2764_vm0, nan, %v2774_v38  ;;  %v1231_v35 = vsub.s32 32, %v1230_v48  ;;  %v5827_v2 = vsub.s32 %v3044_v51, %v3047_v34  ;;  %v2884_v28 = vshrl.u32 %v2883_v21, 23 }
 0x28c   :  { %3734 = vst [vmem:[#allocation2 + $0xb0] sm:$0xff] %v2775_v6  ;;  %v1399_v15 = vor.u32 4788187, %v1398_v33  ;;  %v1402_v53 = vcvt.s32.f32 %v1395_v55  ;;  %v1233_v50 = vshll.u32 %v4333_v12, %v1230_v48  ;;  %v1236_v37 = vshll.u32 %v4334_v16, %v1230_v48 }
 0x28d   :  { %v1234_v49 = vshrl.u32 %v4334_v16, %v1231_v35  ;;  %v1237_v59 = vshrl.u32 %v4335_v18, %v1231_v35  ;;  %v3050_v24 = vsub.s32 0, %v5827_v2  ;;  %v1239_v40 = vshll.u32 %v4335_v18, %v1230_v48 }
 0x28e   :  { %v1400_v0 = vand.u32 2147483647, %v1399_v15  ;;  %v1240_v43 = vshrl.u32 %v4336_v20, %v1231_v35  ;;  %v1229_v7 = vshrl.u32 %v1228_v63, 5  ;;  %v1242_v17 = vshll.u32 %v4336_v20, %v1230_v48 }
 0x28f   :  { %v1243_v56 = vshrl.u32 %v4337_v22, %v1231_v35  ;;  %v3894_v32 = vmin.u32 %v3050_v24, %v5827_v2  ;;  %v1235_v27 = vor.u32 %v1234_v49, %v1233_v50  ;;  %v1238_v3 = vor.u32 %v1237_v59, %v1236_v37 }
 0x290   :  { %v1403_v58 = vmul.f32 %v1402_v53, %v1400_v0  ;;  %v1241_v51 = vor.u32 %v1240_v43, %v1239_v40  ;;  %v1245_v19 = vshll.u32 %v4337_v22, %v1230_v48  ;;  %v1246_v30 = vshrl.u32 %v4338_v29, %v1231_v35 }
 0x291   :  { %v1244_v57 = vor.u32 %v1243_v56, %v1242_v17  ;;  %vm5843_vm2 = vcmp.le.f32.partialorder %v2984_v14, 0.7853982  ;;  %v3052_v25 = vclz %v3894_v32  ;;  %v3071_v52 = vsel %vm2986_vm1, %v3070_v41, %v3046_v46  ;;  %v3994_v56 = vpop.f32.mrf.mxu0 }
 0x292   :  { %v1404_v9 = vxor.u32 2147483648, %v1403_v58  ;;  %v1264_v1 = vshll.u32 %v1224_v61, 8  ;;  %v3889_v5 = vadd.s32 4294967169, %v2884_v28  ;;  %v1232_v54 = vshrl.u32 %v4333_v12, %v1231_v35 }
 0x293   :  { %v1247_v23 = vor.u32 %v1246_v30, %v1245_v19  ;;  %vm1248_vm3 = vcmp.lt.s32.totalorder %v1229_v7, 1  ;;  %v3895_v13 = vadd.s32 4294967294, %v3052_v25  ;;  %vm1250_vm4 = vcmp.lt.s32.totalorder %v1229_v7, 3 }
 0x294   :  { %v1405_v4 = vsel %vm1322_vm8, %v1404_v9, %v1403_v58  ;;  %vm1251_vm5 = vcmp.lt.s32.totalorder %v1229_v7, 4  ;;  %v1256_v8 = vsel %vm1248_vm3, %v1235_v27, %v1238_v3  ;;  %vm1249_vm7 = vcmp.lt.s32.totalorder %v1229_v7, 2 }
 0x295   :  { %v1408_v14 = vsel %vm5799_vm9, %v5589_v62, %v1405_v4  ;;  %v1253_v44 = vsel %vm1251_vm5, %v1241_v51, 2102212464  ;;  %v1257_v63 = vsel %vm1251_vm5, %v1244_v57, 920167782  ;;  %vm3896_vm6 = vcmp.lt.s32.totalorder %v3895_v13, 0 }
 0x296   :  { %4242 = vcosq.f32 %v1408_v14  ;;  %v1258_v39 = vsel %vm1250_vm4, %v1241_v51, %v1257_v63  ;;  %v3055_v46 = vsel %vm3896_vm6, 0, %v3895_v13  ;;  %v1252_v48 = vsel %vm1248_vm3, %v1232_v54, %v1235_v27 }
 0x297   :  { %4244 = vsinq.f32 %v1408_v14  ;;  %v1259_v10 = vsel %vm1249_vm7, %v1256_v8, %v1258_v39  ;;  %v1260_v21 = vsel %vm1248_vm3, %v1238_v3, %v1241_v51  ;;  %v3056_v38 = vsub.s32 32, %v3055_v46 }
 0x298   :  { %v3060_v55 = vsub.s32 4294967266, %v3055_v46  ;;  %v1254_v33 = vsel %vm1250_vm4, %v1238_v3, %v1253_v44  ;;  %v1261_v6 = vsel %vm1251_vm5, %v1247_v23, 1326507024  ;;  %v3057_v34 = vshll.u32 %v5827_v2, %v3055_v46 }
 0x299   :  { %v1262_v35 = vsel %vm1250_vm4, %v1244_v57, %v1261_v6  ;;  %v5866_v15 = vmul.u32.u64.low %v1264_v1, %v1259_v10  ;;  %v5867_v61 = vmul.u32.u64.high %v1264_v1, %v1259_v10, %v5866_v15  ;;  %v3058_v41 = vshrl.u32 %v3040_v45, %v3056_v38 }
 0x29a   :  { %v3061_v49 = vadd.s32 127, %v3060_v55  ;;  %v1263_v28 = vsel %vm1249_vm7, %v1260_v21, %v1262_v35  ;;  %v2890_v0 = vadd.s32 1, %v3889_v5  ;;  %v3073_v53 = vsel %vm5843_vm2, 0, %v3071_v52 }
 0x29b   :  { %v5873_v50 = vmul.u32.u64.low %v1264_v1, %v1263_v28  ;;  %v5874_v59 = vmul.u32.u64.high %v1264_v1, %v1263_v28, %v5873_v50  ;;  %v2880_v24 = vand.u32 2147483647, %v5813_v42  ;;  %v3059_v2 = vor.u32 %v3058_v41, %v3057_v34 }
 0x29c   :  { %v3062_v37 = vshll.u32 %v3061_v49, 23  ;;  %v1255_v40 = vsel %vm1249_vm7, %v1252_v48, %v1254_v33  ;;  %vm2891_vm8 = vcmp.gt.s32.totalorder %v2890_v0, 0  ;;  %v1274_v43 = vadd.s32 1, %v5867_v61 }
 0x29d   :  { %v2892_v45 = vsel %vm2891_vm8, %v2890_v0, 0  ;;  %vm1415_vm9 = vcmp.lt.s32.totalorder %v5824_v47, 2  ;;  %vm1416_vm11 = vcmp.eq.s32.totalorder %v5824_v47, 0  ;;  %vm1419_vm10 = vcmp.eq.s32.totalorder %v5824_v47, 2 }
 0x29e   :  { %v3063_v58 = vor.u32 4788187, %v3062_v37  ;;  %v2894_v17 = vand.u32 31, %v2892_v45  ;;  %vm1412_vm12 = vweird.f32 %v5589_v62  ;;  %v3077_v32 = vadd.s32 3, %v3073_v53 }
 0x29f   :  { %v1271_v27 = vmul.u32 %v1264_v1, %v1255_v40  ;;  %vm1273_vm13 = vc.u32 %v5874_v59, %v5866_v15  ;;  %v2887_v7 = vand.u32 8388607, %v2880_v24  ;;  %v3066_v51 = vcvt.s32.f32 %v3059_v2 }
 0x2a0   :  { %v3064_v3 = vand.u32 2147483647, %v3063_v58  ;;  %v1275_v9 = vsel %vm1273_vm13, %v1274_v43, %v5867_v61  ;;  %v2895_v57 = vsub.s32 32, %v2894_v17  ;;  %v5888_v30 = vshrl.u32 %v2892_v45, 5 }
 0x2a1   :  { %v1276_v19 = vadd.s32 %v1275_v9, %v1271_v27  ;;  %v2897_v25 = vshll.u32 %v4333_v12, %v2894_v17  ;;  %v5892_v52 = vadd.f32 %v5661_v60, %v3994_v56  ;;  %v2900_v54 = vshll.u32 %v4334_v16, %v2894_v17 }
 0x2a2   :  { %v3067_v5 = vmul.f32 %v3066_v51, %v3064_v3  ;;  %v2898_v4 = vshrl.u32 %v4334_v16, %v2895_v57  ;;  %v2901_v23 = vshrl.u32 %v4335_v18, %v2895_v57  ;;  %v2903_v8 = vshll.u32 %v4335_v18, %v2894_v17 }
 0x2a3   :  { %v4243_v1 = vpop.eup %4242  ;;  %v1277_v44 = vadd.s32 536870912, %v1276_v19  ;;  %v2904_v63 = vshrl.u32 %v4336_v20, %v2895_v57  ;;  %v2906_v48 = vshll.u32 %v4336_v20, %v2894_v17  ;;  %v2907_v10 = vshrl.u32 %v4337_v22, %v2895_v57 }
 0x2a4   :  { %v4245_v14 = vpop.eup %4244  ;;  %v1420_v13 = vxor.u32 2147483648, %v4243_v1  ;;  %v3068_v46 = vxor.u32 2147483648, %v3067_v5  ;;  %v2899_v55 = vor.u32 %v2898_v4, %v2897_v25  ;;  %v2902_v33 = vor.u32 %v2901_v23, %v2900_v54 }
 0x2a5   :  { %v1417_v39 = vxor.u32 2147483648, %v4245_v14  ;;  %v5903_v38 = vshrl.u32 %v1277_v44, 30  ;;  %v2909_v35 = vshll.u32 %v4337_v22, %v2894_v17  ;;  %v2910_v61 = vshrl.u32 %v4338_v29, %v2895_v57 }
 0x2a6   :  { %v1421_v21 = vsel %vm1419_vm10, %v1420_v13, %v4245_v14  ;;  %v3069_v34 = vsel %vm2986_vm1, %v3068_v46, %v3067_v5  ;;  %v2905_v0 = vor.u32 %v2904_v63, %v2903_v8  ;;  %v2908_v50 = vor.u32 %v2907_v10, %v2906_v48  ;;  %v4018_v14 = vpop.f32.mrf.mxu1 }
 0x2a7   :  { %v1418_v6 = vsel %vm1416_vm11, %v4243_v1, %v1417_v39  ;;  %v3072_v49 = vsel %vm5843_vm2, %v5607_v11, %v3069_v34  ;;  %v1279_v28 = vshll.u32 %v5903_v38, 30  ;;  %v2911_v2 = vor.u32 %v2910_v61, %v2909_v35 }
 0x2a8   :  { %v1422_v41 = vsel %vm1415_vm9, %v1418_v6, %v1421_v21  ;;  %4246 = vcosq.f32 %v3072_v49  ;;  %v5921_v40 = vand.u32 3, %v3077_v32  ;;  %v2888_v47 = vor.u32 8388608, %v2887_v7 }
 0x2a9   :  { %v1423_v53 = vsel %vm1412_vm12, nan, %v1422_v41  ;;  %4248 = vsinq.f32 %v3072_v49  ;;  %v5919_v37 = vsub.s32 %v1276_v19, %v1279_v28  ;;  %vm2912_vm14 = vcmp.lt.s32.totalorder %v5888_v30, 1 }
 0x2aa   :  { %3721 = vst [vmem:[#allocation2 + $0x48] sm:$0xff] %v1423_v53  ;;  %v1531_v36 = vand.u32 2139095040, %v5892_v52  ;;  %vm2914_vm15 = vcmp.lt.s32.totalorder %v5888_v30, 3  ;;  %vm2915_vm0 = vcmp.lt.s32.totalorder %v5888_v30, 4  ;;  %v2920_v62 = vsel %vm2912_vm14, %v2899_v55, %v2902_v33 }
 0x2ab   :  { %v1282_v43 = vsub.s32 0, %v5919_v37  ;;  %v2896_v45 = vshrl.u32 %v4333_v12, %v2895_v57  ;;  %v2917_v58 = vsel %vm2915_vm0, %v2905_v0, 2102212464  ;;  %v2921_v17 = vsel %vm2915_vm0, %v2908_v50, 920167782 }
 0x2ac   :  { %v2925_v56 = vsel %vm2915_vm0, %v2911_v2, 1326507024  ;;  %vm2913_vm1 = vcmp.lt.s32.totalorder %v5888_v30, 2  ;;  %v2922_v27 = vsel %vm2914_vm15, %v2905_v0, %v2921_v17  ;;  %v2924_v7 = vsel %vm2912_vm14, %v2902_v33, %v2905_v0 }
 0x2ad   :  { %v3826_v32 = vmin.u32 %v1282_v43, %v5919_v37  ;;  %v2923_v3 = vsel %vm2913_vm1, %v2920_v62, %v2922_v27  ;;  %v2926_v51 = vsel %vm2914_vm15, %v2908_v50, %v2925_v56  ;;  %v2928_v9 = vshll.u32 %v2888_v47, 8 }
 0x2ae   :  { %v1532_v57 = vshrl.u32 %v1531_v36, 23  ;;  %v2916_v25 = vsel %vm2912_vm14, %v2896_v45, %v2899_v55  ;;  %v2918_v1 = vsel %vm2914_vm15, %v2902_v33, %v2917_v58  ;;  %v2927_v5 = vsel %vm2913_vm1, %v2924_v7, %v2926_v51 }
 0x2af   :  { %v1284_v19 = vclz %v3826_v32  ;;  %v5947_v4 = vmul.u32.u64.low %v2928_v9, %v2923_v3  ;;  %v5948_v54 = vmul.u32.u64.high %v2928_v9, %v2923_v3, %v5947_v4  ;;  %v1302_v44 = vsub.s32 4, %v5903_v38 }
 0x2b0   :  { %v3837_v23 = vadd.s32 4294967169, %v1532_v57  ;;  %v5952_v8 = vmul.u32.u64.low %v2928_v9, %v2927_v5  ;;  %v5953_v63 = vmul.u32.u64.high %v2928_v9, %v2927_v5, %v5952_v8  ;;  %vm3076_vm2 = vweird.f32 %v5607_v11 }
 0x2b1   :  { %v3827_v13 = vadd.s32 4294967294, %v1284_v19  ;;  %vm3080_vm3 = vcmp.eq.s32.totalorder %v5921_v40, 0  ;;  %vm1218_vm4 = vcmp.lt.s32.totalorder %v5664_v31, 0  ;;  %v2919_v39 = vsel %vm2913_vm1, %v2916_v25, %v2918_v1 }
 0x2b2   :  { %v1538_v46 = vadd.s32 1, %v3837_v23  ;;  %vm3083_vm5 = vcmp.eq.s32.totalorder %v5921_v40, 2  ;;  %v1528_v48 = vand.u32 2147483647, %v5892_v52  ;;  %v5963_v10 = vadd.f32 %v5661_v60, %v4018_v14 }
 0x2b3   :  { %vm3828_vm6 = vcmp.lt.s32.totalorder %v3827_v13, 0  ;;  %v1272_v21 = vadd.s32 %v5866_v15, %v5874_v59  ;;  %v2938_v33 = vadd.s32 1, %v5948_v54  ;;  %v1303_v35 = vsel %vm1218_vm4, %v1302_v44, %v5903_v38 }
 0x2b4   :  { %v1287_v55 = vsel %vm3828_vm6, 0, %v3827_v13  ;;  %vm1539_vm7 = vcmp.gt.s32.totalorder %v1538_v46, 0  ;;  %v2935_v61 = vmul.u32 %v2928_v9, %v2919_v39  ;;  %vm2937_vm8 = vc.u32 %v5953_v63, %v5947_v4 }
 0x2b5   :  { %v4247_v6 = vpop.eup %4246  ;;  %v1288_v34 = vsub.s32 32, %v1287_v55  ;;  %v1292_v30 = vsub.s32 4294967266, %v1287_v55  ;;  %v1289_v28 = vshll.u32 %v5919_v37, %v1287_v55  ;;  %v1540_v15 = vsel %vm1539_vm7, %v1538_v46, 0 }
 0x2b6   :  { %v4249_v41 = vpop.eup %4248  ;;  %v3084_v49 = vxor.u32 2147483648, %v4247_v6  ;;  %v2939_v50 = vsel %vm2937_vm8, %v2938_v33, %v5948_v54  ;;  %v1535_v38 = vand.u32 8388607, %v1528_v48  ;;  %v1542_v36 = vand.u32 31, %v1540_v15 }
 0x2b7   :  { %v3081_v59 = vxor.u32 2147483648, %v4249_v41  ;;  %v1290_v0 = vshrl.u32 %v1272_v21, %v1288_v34  ;;  %v1293_v53 = vadd.s32 127, %v1292_v30  ;;  %v2940_v47 = vadd.s32 %v2939_v50, %v2935_v61 }
 0x2b8   :  { %v3085_v2 = vsel %vm3083_vm5, %v3084_v49, %v4249_v41  ;;  %vm3079_vm9 = vcmp.lt.s32.totalorder %v5921_v40, 2  ;;  %vm5984_vm11 = vcmp.le.f32.partialorder %v1216_v26, 0.7853982  ;;  %v1543_v56 = vsub.s32 32, %v1542_v36 }
 0x2b9   :  { %v3082_v37 = vsel %vm3080_vm3, %v4247_v6, %v3081_v59  ;;  %v1291_v43 = vor.u32 %v1290_v0, %v1289_v28  ;;  %v1294_v62 = vshll.u32 %v1293_v53, 23  ;;  %v2941_v17 = vadd.s32 536870912, %v2940_v47 }
 0x2ba   :  { %v3086_v45 = vsel %vm3079_vm9, %v3082_v37, %v3085_v2  ;;  %v1305_v7 = vsel %vm5984_vm11, 0, %v1303_v35  ;;  %v1536_v3 = vor.u32 8388608, %v1535_v38  ;;  %v1546_v51 = vshrl.u32 %v4334_v16, %v1543_v56 }
 0x2bb   :  { %v3087_v32 = vsel %vm3076_vm2, nan, %v3086_v45  ;;  %v1295_v27 = vor.u32 4788187, %v1294_v62  ;;  %v5992_v40 = vshrl.u32 %v2941_v17, 30  ;;  %v3195_v26 = vand.u32 2139095040, %v5963_v10 }
 0x2bc   :  { %3737 = vst [vmem:[#allocation2 + $0xc8] sm:$0xff] %v3087_v32  ;;  %v1298_v57 = vcvt.s32.f32 %v1291_v43  ;;  %v1549_v19 = vshrl.u32 %v4335_v18, %v1543_v56  ;;  %v1552_v25 = vshrl.u32 %v4336_v20, %v1543_v56  ;;  %v1541_v1 = vshrl.u32 %v1540_v15, 5 }
 0x2bd   :  { %v1296_v9 = vand.u32 2147483647, %v1295_v27  ;;  %v2943_v11 = vshll.u32 %v5992_v40, 30  ;;  %v1545_v5 = vshll.u32 %v4333_v12, %v1542_v36  ;;  %v1551_v54 = vshll.u32 %v4335_v18, %v1542_v36 }
 0x2be   :  { %v1548_v14 = vshll.u32 %v4334_v16, %v1542_v36  ;;  %v1554_v13 = vshll.u32 %v4336_v20, %v1542_v36  ;;  %v1555_v44 = vshrl.u32 %v4337_v22, %v1543_v56  ;;  %v1558_v21 = vshrl.u32 %v4338_v29, %v1543_v56 }
 0x2bf   :  { %v1299_v23 = vmul.f32 %v1298_v57, %v1296_v9  ;;  %v6004_v8 = vsub.s32 %v2940_v47, %v2943_v11  ;;  %v1547_v39 = vor.u32 %v1546_v51, %v1545_v5  ;;  %v1553_v46 = vor.u32 %v1552_v25, %v1551_v54 }
 0x2c0   :  { %v1550_v33 = vor.u32 %v1549_v19, %v1548_v14  ;;  %v1556_v6 = vor.u32 %v1555_v44, %v1554_v13  ;;  %v1557_v34 = vshll.u32 %v4337_v22, %v1542_v36  ;;  %v1309_v30 = vadd.s32 3, %v1305_v7 }
 0x2c1   :  { %v1300_v55 = vxor.u32 2147483648, %v1299_v23  ;;  %v2946_v35 = vsub.s32 0, %v6004_v8  ;;  %v1576_v61 = vshll.u32 %v1536_v3, 8  ;;  %v3196_v41 = vshrl.u32 %v3195_v26, 23 }
 0x2c2   :  { %v1544_v28 = vshrl.u32 %v4333_v12, %v1543_v56  ;;  %v1559_v15 = vor.u32 %v1558_v21, %v1557_v34  ;;  %vm1563_vm10 = vcmp.lt.s32.totalorder %v1541_v1, 4  ;;  %vm1560_vm12 = vcmp.lt.s32.totalorder %v1541_v1, 1 }
 0x2c3   :  { %v1301_v49 = vsel %vm1218_vm4, %v1300_v55, %v1299_v23  ;;  %v3890_v0 = vmin.u32 %v2946_v35, %v6004_v8  ;;  %v1565_v53 = vsel %vm1563_vm10, %v1553_v46, 2102212464  ;;  %vm1561_vm13 = vcmp.lt.s32.totalorder %v1541_v1, 2 }
 0x2c4   :  { %v1304_v59 = vsel %vm5984_vm11, %v5664_v31, %v1301_v49  ;;  %v1568_v50 = vsel %vm1560_vm12, %v1547_v39, %v1550_v33  ;;  %v1569_v2 = vsel %vm1563_vm10, %v1556_v6, 920167782  ;;  %vm1562_vm14 = vcmp.lt.s32.totalorder %v1541_v1, 3 }
 0x2c5   :  { %4250 = vcosq.f32 %v1304_v59  ;;  %v2948_v47 = vclz %v3890_v0  ;;  %v1572_v38 = vsel %vm1560_vm12, %v1550_v33, %v1553_v46  ;;  %v1564_v36 = vsel %vm1560_vm12, %v1544_v28, %v1547_v39 }
 0x2c6   :  { %4252 = vsinq.f32 %v1304_v59  ;;  %v1566_v37 = vsel %vm1562_vm14, %v1550_v33, %v1565_v53  ;;  %v1570_v43 = vsel %vm1562_vm14, %v1553_v46, %v1569_v2  ;;  %v1573_v62 = vsel %vm1563_vm10, %v1559_v15, 1326507024 }
 0x2c7   :  { %v3891_v45 = vadd.s32 4294967294, %v2948_v47  ;;  %v2966_v58 = vsub.s32 4, %v5992_v40  ;;  %v1571_v17 = vsel %vm1561_vm13, %v1568_v50, %v1570_v43  ;;  %v1574_v56 = vsel %vm1562_vm14, %v1556_v6, %v1573_v62 }
 0x2c8   :  { %v1575_v32 = vsel %vm1561_vm13, %v1572_v38, %v1574_v56  ;;  %v6022_v27 = vmul.u32.u64.low %v1576_v61, %v1571_v17  ;;  %v6023_v7 = vmul.u32.u64.high %v1576_v61, %v1571_v17, %v6022_v27  ;;  %v3901_v3 = vadd.s32 4294967169, %v3196_v41 }
 0x2c9   :  { %vm3892_vm15 = vcmp.lt.s32.totalorder %v3891_v45, 0  ;;  %v1567_v51 = vsel %vm1561_vm13, %v1564_v36, %v1566_v37  ;;  %v6027_v26 = vmul.u32.u64.low %v1576_v61, %v1575_v32  ;;  %v6028_v9 = vmul.u32.u64.high %v1576_v61, %v1575_v32, %v6027_v26 }
 0x2ca   :  { %v1310_v57 = vand.u32 3, %v1309_v30  ;;  %vm2882_vm0 = vcmp.lt.s32.totalorder %v5813_v42, 0  ;;  %v2951_v19 = vsel %vm3892_vm15, 0, %v3891_v45  ;;  %v3202_v25 = vadd.s32 1, %v3901_v3 }
 0x2cb   :  { %v2936_v11 = vadd.s32 %v5947_v4, %v5953_v63  ;;  %v2952_v5 = vsub.s32 32, %v2951_v19  ;;  %v2956_v54 = vsub.s32 4294967266, %v2951_v19  ;;  %v3192_v23 = vand.u32 2147483647, %v5963_v10 }
 0x2cc   :  { %v2967_v1 = vsel %vm2882_vm0, %v2966_v58, %v5992_v40  ;;  %v1583_v14 = vmul.u32 %v1576_v61, %v1567_v51  ;;  %v1586_v13 = vadd.s32 1, %v6023_v7  ;;  %vm3203_vm1 = vcmp.gt.s32.totalorder %v3202_v25, 0  ;;  %v275_v61 = vpop.f32.mrf.mxu0 }
 0x2cd   :  { %v2953_v44 = vshll.u32 %v6004_v8, %v2951_v19  ;;  %v2954_v39 = vshrl.u32 %v2936_v11, %v2952_v5  ;;  %v2957_v46 = vadd.s32 127, %v2956_v54  ;;  %vm1585_vm2 = vc.u32 %v6028_v9, %v6022_v27 }
 0x2ce   :  { %vm6043_vm3 = vcmp.le.f32.partialorder %v2880_v24, 0.7853982  ;;  %v1587_v63 = vsel %vm1585_vm2, %v1586_v13, %v6023_v7  ;;  %v3204_v40 = vsel %vm3203_vm1, %v3202_v25, 0  ;;  %vm1308_vm4 = vweird.f32 %v5664_v31 }
 0x2cf   :  { %v2955_v21 = vor.u32 %v2954_v39, %v2953_v44  ;;  %v2958_v55 = vshll.u32 %v2957_v46, 23  ;;  %v2969_v33 = vsel %vm6043_vm3, 0, %v2967_v1  ;;  %v1588_v8 = vadd.s32 %v1587_v63, %v1583_v14 }
 0x2d0   :  { %v3199_v6 = vand.u32 8388607, %v3192_v23  ;;  %v3206_v34 = vand.u32 31, %v3204_v40  ;;  %vm1311_vm5 = vcmp.lt.s32.totalorder %v1310_v57, 2  ;;  %vm1312_vm6 = vcmp.eq.s32.totalorder %v1310_v57, 0 }
 0x2d1   :  { %v2959_v24 = vor.u32 4788187, %v2958_v55  ;;  %v1589_v35 = vadd.s32 536870912, %v1588_v8  ;;  %vm1315_vm7 = vcmp.eq.s32.totalorder %v1310_v57, 2  ;;  %v6053_v28 = vadd.s32 3, %v2969_v33 }
 0x2d2   :  { %v4251_v30 = vpop.eup %4250  ;;  %v3207_v15 = vsub.s32 32, %v3206_v34  ;;  %v2962_v53 = vcvt.s32.f32 %v2955_v21  ;;  %v3200_v47 = vor.u32 8388608, %v3199_v6  ;;  %v6059_v36 = vadd.f32 %v5661_v60, %v275_v61 }
 0x2d3   :  { %v4253_v41 = vpop.eup %4252  ;;  %v1316_v49 = vxor.u32 2147483648, %v4251_v30  ;;  %v2960_v0 = vand.u32 2147483647, %v2959_v24  ;;  %v6055_v50 = vshrl.u32 %v1589_v35, 30  ;;  %v3209_v17 = vshll.u32 %v4333_v12, %v3206_v34 }
 0x2d4   :  { %v1313_v59 = vxor.u32 2147483648, %v4253_v41  ;;  %v3210_v38 = vshrl.u32 %v4334_v16, %v3207_v15  ;;  %v3213_v45 = vshrl.u32 %v4335_v18, %v3207_v15  ;;  %v3212_v56 = vshll.u32 %v4334_v16, %v3206_v34 }
 0x2d5   :  { %v1317_v2 = vsel %vm1315_vm7, %v1316_v49, %v4253_v41  ;;  %v2963_v43 = vmul.f32 %v2962_v53, %v2960_v0  ;;  %v1591_v62 = vshll.u32 %v6055_v50, 30  ;;  %v3216_v32 = vshrl.u32 %v4336_v20, %v3207_v15 }
 0x2d6   :  { %v1314_v37 = vsel %vm1312_vm6, %v4251_v30, %v1313_v59  ;;  %v3215_v51 = vshll.u32 %v4335_v18, %v3206_v34  ;;  %v3205_v26 = vshrl.u32 %v3204_v40, 5  ;;  %v3211_v19 = vor.u32 %v3210_v38, %v3209_v17  ;;  %v355_v17 = vpop.f32.mrf.mxu1 }
 0x2d7   :  { %v1318_v58 = vsel %vm1311_vm5, %v1314_v37, %v1317_v2  ;;  %v2964_v60 = vxor.u32 2147483648, %v2963_v43  ;;  %v6070_v3 = vsub.s32 %v1588_v8, %v1591_v62  ;;  %v3218_v57 = vshll.u32 %v4336_v20, %v3206_v34 }
 0x2d8   :  { %v1319_v7 = vsel %vm1308_vm4, nan, %v1318_v58  ;;  %v3219_v25 = vshrl.u32 %v4337_v22, %v3207_v15  ;;  %v3214_v54 = vor.u32 %v3213_v45, %v3212_v56  ;;  %v3217_v31 = vor.u32 %v3216_v32, %v3215_v51 }
 0x2d9   :  { %3720 = vst [vmem:[#allocation2 + $0x40] sm:$0xff] %v1319_v7  ;;  %v2965_v11 = vsel %vm2882_vm0, %v2964_v60, %v2963_v43  ;;  %v1594_v5 = vsub.s32 0, %v6070_v3  ;;  %v3221_v13 = vshll.u32 %v4337_v22, %v3206_v34  ;;  %v3222_v44 = vshrl.u32 %v4338_v29, %v3207_v15 }
 0x2da   :  { %v2968_v1 = vsel %vm6043_vm3, %v5813_v42, %v2965_v11  ;;  %v3220_v14 = vor.u32 %v3219_v25, %v3218_v57  ;;  %v3240_v46 = vshll.u32 %v3200_v47, 8  ;;  %v1427_v63 = vand.u32 2139095040, %v6059_v36 }
 0x2db   :  { %4254 = vcosq.f32 %v2968_v1  ;;  %v3838_v39 = vmin.u32 %v1594_v5, %v6070_v3  ;;  %v3208_v40 = vshrl.u32 %v4333_v12, %v3207_v15  ;;  %v3223_v21 = vor.u32 %v3222_v44, %v3221_v13 }
 0x2dc   :  { %4256 = vsinq.f32 %v2968_v1  ;;  %vm3224_vm8 = vcmp.lt.s32.totalorder %v3205_v26, 1  ;;  %vm3225_vm9 = vcmp.lt.s32.totalorder %v3205_v26, 2  ;;  %vm3226_vm11 = vcmp.lt.s32.totalorder %v3205_v26, 3 }
 0x2dd   :  { %v1596_v55 = vclz %v3838_v39  ;;  %vm3227_vm10 = vcmp.lt.s32.totalorder %v3205_v26, 4  ;;  %v3232_v33 = vsel %vm3224_vm8, %v3211_v19, %v3214_v54  ;;  %v3236_v6 = vsel %vm3224_vm8, %v3214_v54, %v3217_v31 }
 0x2de   :  { %v3229_v4 = vsel %vm3227_vm10, %v3217_v31, 2102212464  ;;  %v3233_v8 = vsel %vm3227_vm10, %v3220_v14, 920167782  ;;  %v3228_v30 = vsel %vm3224_vm8, %v3208_v40, %v3211_v19  ;;  %v3237_v35 = vsel %vm3227_vm10, %v3223_v21, 1326507024 }
 0x2df   :  { %v3839_v34 = vadd.s32 4294967294, %v1596_v55  ;;  %v3234_v24 = vsel %vm3226_vm11, %v3217_v31, %v3233_v8  ;;  %v3230_v61 = vsel %vm3226_vm11, %v3214_v54, %v3229_v4  ;;  %v3238_v49 = vsel %vm3226_vm11, %v3220_v14, %v3237_v35 }
 0x2e0   :  { %v3235_v41 = vsel %vm3225_vm9, %v3232_v33, %v3234_v24  ;;  %v1428_v59 = vshrl.u32 %v1427_v63, 23  ;;  %v3239_v15 = vsel %vm3225_vm9, %v3236_v6, %v3238_v49  ;;  %v1584_v2 = vadd.s32 %v6022_v27, %v6028_v9 }
 0x2e1   :  { %vm3840_vm12 = vcmp.lt.s32.totalorder %v3839_v34, 0  ;;  %v6088_v0 = vmul.u32.u64.low %v3240_v46, %v3235_v41  ;;  %v6089_v53 = vmul.u32.u64.high %v3240_v46, %v3235_v41, %v6088_v0  ;;  %v3231_v45 = vsel %vm3225_vm9, %v3228_v30, %v3230_v61 }
 0x2e2   :  { %v1599_v47 = vsel %vm3840_vm12, 0, %v3839_v34  ;;  %v6094_v38 = vmul.u32.u64.low %v3240_v46, %v3239_v15  ;;  %v6095_v37 = vmul.u32.u64.high %v3240_v46, %v3239_v15, %v6094_v38  ;;  %v3833_v58 = vadd.s32 4294967169, %v1428_v59 }
 0x2e3   :  { %v1600_v43 = vsub.s32 32, %v1599_v47  ;;  %v1604_v62 = vsub.s32 4294967266, %v1599_v47  ;;  %v2974_v56 = vand.u32 3, %v6053_v28  ;;  %v1601_v32 = vshll.u32 %v6070_v3, %v1599_v47  ;;  %v6110_v28 = vld [vmem:[%s6868_s2] ss:$0 sm:$0xff] }
 0x2e4   :  { %v1614_v7 = vsub.s32 4, %v6055_v50  ;;  %v1424_v60 = vand.u32 2147483647, %v6059_v36  ;;  %vm2972_vm13 = vweird.f32 %v5813_v42  ;;  %v3250_v51 = vadd.s32 1, %v6089_v53 }
 0x2e5   :  { %v1602_v27 = vshrl.u32 %v1584_v2, %v1600_v43  ;;  %v1605_v9 = vadd.s32 127, %v1604_v62  ;;  %v1434_v19 = vadd.s32 1, %v3833_v58  ;;  %vm1530_vm14 = vcmp.lt.s32.totalorder %v5892_v52, 0 }
 0x2e6   :  { %v3247_v26 = vmul.u32 %v3240_v46, %v3231_v45  ;;  %vm3249_vm15 = vc.u32 %v6095_v37, %v6088_v0  ;;  %v6113_v3 = vadd.f32 %v6110_v28, %v355_v17  ;;  %vm2979_vm1 = vcmp.eq.s32.totalorder %v2974_v56, 2 }
 0x2e7   :  { %v1603_v57 = vor.u32 %v1602_v27, %v1601_v32  ;;  %v1606_v25 = vshll.u32 %v1605_v9, 23  ;;  %v3251_v11 = vsel %vm3249_vm15, %v3250_v51, %v6089_v53  ;;  %vm1435_vm0 = vcmp.gt.s32.totalorder %v1434_v19, 0 }
 0x2e8   :  { %v4255_v5 = vpop.eup %4254  ;;  %vm6118_vm2 = vcmp.le.f32.partialorder %v1528_v48, 0.7853982  ;;  %v3252_v31 = vadd.s32 %v3251_v11, %v3247_v26  ;;  %v1436_v1 = vsel %vm1435_vm0, %v1434_v19, 0  ;;  %v6125_v39 = vsel %vm1530_vm14, %v1614_v7, %v6055_v50 }
 0x2e9   :  { %v4257_v14 = vpop.eup %4256  ;;  %v2980_v13 = vxor.u32 2147483648, %v4255_v5  ;;  %v1607_v44 = vor.u32 4788187, %v1606_v25  ;;  %v1431_v46 = vand.u32 8388607, %v1424_v60  ;;  %v1438_v21 = vand.u32 31, %v1436_v1 }
 0x2ea   :  { %v2977_v63 = vxor.u32 2147483648, %v4257_v14  ;;  %v3253_v40 = vadd.s32 536870912, %v3252_v31  ;;  %v3091_v48 = vand.u32 2139095040, %v6113_v3  ;;  %vm2976_vm3 = vcmp.eq.s32.totalorder %v2974_v56, 0 }
 0x2eb   :  { %v2981_v55 = vsel %vm2979_vm1, %v2980_v13, %v4257_v14  ;;  %v1608_v4 = vand.u32 2147483647, %v1607_v44  ;;  %v1610_v33 = vcvt.s32.f32 %v1603_v57  ;;  %vm2975_vm4 = vcmp.lt.s32.totalorder %v2974_v56, 2 }
 0x2ec   :  { %v2978_v8 = vsel %vm2976_vm3, %v4255_v5, %v2977_v63  ;;  %v6130_v6 = vshrl.u32 %v3253_v40, 30  ;;  %v1439_v34 = vsub.s32 32, %v1438_v21  ;;  %v1617_v24 = vsel %vm6118_vm2, 0, %v6125_v39 }
 0x2ed   :  { %v2982_v30 = vsel %vm2975_vm4, %v2978_v8, %v2981_v55  ;;  %v1611_v50 = vmul.f32 %v1610_v33, %v1608_v4  ;;  %v1432_v35 = vor.u32 8388608, %v1431_v46  ;;  %v1441_v49 = vshll.u32 %v4333_v12, %v1438_v21 }
 0x2ee   :  { %v2983_v61 = vsel %vm2972_vm13, nan, %v2982_v30  ;;  %v3255_v41 = vshll.u32 %v6130_v6, 30  ;;  %v3092_v59 = vshrl.u32 %v3091_v48, 23  ;;  %v1442_v53 = vshrl.u32 %v4334_v16, %v1439_v34 }
 0x2ef   :  { %3736 = vst [vmem:[#allocation2 + $0xc0] sm:$0xff] %v2983_v61  ;;  %v1612_v15 = vxor.u32 2147483648, %v1611_v50  ;;  %v1445_v2 = vshrl.u32 %v4335_v18, %v1439_v34  ;;  %v1448_v47 = vshrl.u32 %v4336_v20, %v1439_v34  ;;  %v1444_v43 = vshll.u32 %v4334_v16, %v1438_v21 }
 0x2f0   :  { %v6142_v38 = vsub.s32 %v3252_v31, %v3255_v41  ;;  %v1447_v42 = vshll.u32 %v4335_v18, %v1438_v21  ;;  %v1451_v62 = vshrl.u32 %v4337_v22, %v1439_v34  ;;  %v1437_v58 = vshrl.u32 %v1436_v1, 5 }
 0x2f1   :  { %v1613_v45 = vsel %vm1530_vm14, %v1612_v15, %v1611_v50  ;;  %v1443_v17 = vor.u32 %v1442_v53, %v1441_v49  ;;  %v1450_v56 = vshll.u32 %v4336_v20, %v1438_v21  ;;  %v1446_v27 = vor.u32 %v1445_v2, %v1444_v43 }
 0x2f2   :  { %v1616_v32 = vsel %vm6118_vm2, %v5892_v52, %v1613_v45  ;;  %v3258_v7 = vsub.s32 0, %v6142_v38  ;;  %v1449_v9 = vor.u32 %v1448_v47, %v1447_v42  ;;  %vm3194_vm5 = vcmp.lt.s32.totalorder %v5963_v10, 0 }
 0x2f3   :  { %4258 = vcosq.f32 %v1616_v32  ;;  %v1452_v51 = vor.u32 %v1451_v62, %v1450_v56  ;;  %v1453_v19 = vshll.u32 %v4337_v22, %v1438_v21  ;;  %v1454_v26 = vshrl.u32 %v4338_v29, %v1439_v34 }
 0x2f4   :  { %4260 = vsinq.f32 %v1616_v32  ;;  %v3902_v57 = vmin.u32 %v3258_v7, %v6142_v38  ;;  %v1472_v25 = vshll.u32 %v1432_v35, 8  ;;  %v3897_v11 = vadd.s32 4294967169, %v3092_v59 }
 0x2f5   :  { %v1440_v5 = vshrl.u32 %v4333_v12, %v1439_v34  ;;  %v1455_v54 = vor.u32 %v1454_v26, %v1453_v19  ;;  %vm1456_vm6 = vcmp.lt.s32.totalorder %v1437_v58, 1  ;;  %vm1457_vm7 = vcmp.lt.s32.totalorder %v1437_v58, 2  ;;  %v3997_v26 = vpop.f32.mrf.mxu0 }
 0x2f6   :  { %v3260_v31 = vclz %v3902_v57  ;;  %vm1458_vm8 = vcmp.lt.s32.totalorder %v1437_v58, 3  ;;  %vm1459_vm9 = vcmp.lt.s32.totalorder %v1437_v58, 4  ;;  %v1464_v1 = vsel %vm1456_vm6, %v1443_v17, %v1446_v27 }
 0x2f7   :  { %v1461_v14 = vsel %vm1459_vm9, %v1449_v9, 2102212464  ;;  %v1465_v13 = vsel %vm1459_vm9, %v1452_v51, 920167782  ;;  %v1468_v44 = vsel %vm1456_vm6, %v1446_v27, %v1449_v9  ;;  %v1469_v39 = vsel %vm1459_vm9, %v1455_v54, 1326507024 }
 0x2f8   :  { %v3903_v46 = vadd.s32 4294967294, %v3260_v31  ;;  %v3278_v63 = vsub.s32 4, %v6130_v6  ;;  %v1466_v40 = vsel %vm1458_vm8, %v1449_v9, %v1465_v13  ;;  %v1470_v21 = vsel %vm1458_vm8, %v1452_v51, %v1469_v39 }
 0x2f9   :  { %v1621_v48 = vadd.s32 3, %v1617_v24  ;;  %v1460_v55 = vsel %vm1456_vm6, %v1440_v5, %v1443_v17  ;;  %v1467_v4 = vsel %vm1457_vm7, %v1464_v1, %v1466_v40  ;;  %v1471_v33 = vsel %vm1457_vm7, %v1468_v44, %v1470_v21 }
 0x2fa   :  { %vm3904_vm11 = vcmp.lt.s32.totalorder %v3903_v46, 0  ;;  %v1462_v8 = vsel %vm1458_vm8, %v1446_v27, %v1461_v14  ;;  %v6165_v34 = vmul.u32.u64.low %v1472_v25, %v1471_v33  ;;  %v6166_v30 = vmul.u32.u64.high %v1472_v25, %v1471_v33, %v6165_v34 }
 0x2fb   :  { %v3263_v50 = vsel %vm3904_vm11, 0, %v3903_v46  ;;  %v6168_v35 = vmul.u32.u64.low %v1472_v25, %v1467_v4  ;;  %v6169_v61 = vmul.u32.u64.high %v1472_v25, %v1467_v4, %v6168_v35  ;;  %v3098_v41 = vadd.s32 1, %v3897_v11 }
 0x2fc   :  { %v3248_v24 = vadd.s32 %v6088_v0, %v6095_v37  ;;  %v3264_v49 = vsub.s32 32, %v3263_v50  ;;  %v3268_v59 = vsub.s32 4294967266, %v3263_v50  ;;  %v3279_v15 = vsel %vm3194_vm5, %v3278_v63, %v6130_v6 }
 0x2fd   :  { %vm1620_vm10 = vweird.f32 %v5892_v52  ;;  %v1622_v53 = vand.u32 3, %v1621_v48  ;;  %vm6180_vm12 = vcmp.le.f32.partialorder %v3192_v23, 0.7853982  ;;  %v1463_v47 = vsel %vm1457_vm7, %v1460_v55, %v1462_v8 }
 0x2fe   :  { %vm3099_vm13 = vcmp.gt.s32.totalorder %v3098_v41, 0  ;;  %v3265_v0 = vshll.u32 %v6142_v38, %v3263_v50  ;;  %v3266_v37 = vshrl.u32 %v3248_v24, %v3264_v49  ;;  %v3269_v43 = vadd.s32 127, %v3268_v59 }
 0x2ff   :  { %vm1481_vm14 = vc.u32 %v6166_v30, %v6168_v35  ;;  %v3281_v6 = vsel %vm6180_vm12, 0, %v3279_v15  ;;  %v1482_v42 = vadd.s32 1, %v6169_v61  ;;  %v3088_v23 = vand.u32 2147483647, %v6113_v3 }
 0x300   :  { %v3100_v62 = vsel %vm3099_vm13, %v3098_v41, 0  ;;  %v4259_v45 = vpop.eup %4258  ;;  %v3267_v17 = vor.u32 %v3266_v37, %v3265_v0  ;;  %v3270_v58 = vshll.u32 %v3269_v43, 23  ;;  %v1479_v56 = vmul.u32 %v1472_v25, %v1463_v47 }
 0x301   :  { %v3102_v32 = vand.u32 31, %v3100_v62  ;;  %v4261_v7 = vpop.eup %4260  ;;  %vm1623_vm15 = vcmp.lt.s32.totalorder %v1622_v53, 2  ;;  %vm1624_vm0 = vcmp.eq.s32.totalorder %v1622_v53, 0  ;;  %v1628_v38 = vxor.u32 2147483648, %v4259_v45 }
 0x302   :  { %v1483_v27 = vsel %vm1481_vm14, %v1482_v42, %v6169_v61  ;;  %v1625_v9 = vxor.u32 2147483648, %v4261_v7  ;;  %vm1627_vm1 = vcmp.eq.s32.totalorder %v1622_v53, 2  ;;  %v3271_v51 = vor.u32 4788187, %v3270_v58 }
 0x303   :  { %v1484_v19 = vadd.s32 %v1483_v27, %v1479_v56  ;;  %v1629_v57 = vsel %vm1627_vm1, %v1628_v38, %v4261_v7  ;;  %v3285_v11 = vadd.s32 3, %v3281_v6  ;;  %v3095_v5 = vand.u32 8388607, %v3088_v23 }
 0x304   :  { %v3103_v54 = vsub.s32 32, %v3102_v32  ;;  %v1626_v31 = vsel %vm1624_vm0, %v4259_v45, %v1625_v9  ;;  %v3272_v25 = vand.u32 2147483647, %v3271_v51  ;;  %v3274_v1 = vcvt.s32.f32 %v3267_v17 }
 0x305   :  { %v1485_v14 = vadd.s32 536870912, %v1484_v19  ;;  %v1630_v13 = vsel %vm1623_vm15, %v1626_v31, %v1629_v57  ;;  %v6199_v46 = vadd.f32 %v6110_v28, %v3997_v26  ;;  %v3101_v55 = vshrl.u32 %v3100_v62, 5  ;;  %v4021_v31 = vpop.f32.mrf.mxu1 }
 0x306   :  { %v3106_v44 = vshrl.u32 %v4334_v16, %v3103_v54  ;;  %v3109_v39 = vshrl.u32 %v4335_v18, %v3103_v54  ;;  %v1631_v63 = vsel %vm1620_vm10, nan, %v1630_v13  ;;  %v3275_v40 = vmul.f32 %v3274_v1, %v3272_v25 }
 0x307   :  { %v6203_v21 = vshrl.u32 %v1485_v14, 30  ;;  %v3112_v48 = vshrl.u32 %v4336_v20, %v3103_v54  ;;  %3723 = vst [vmem:[#allocation2 + $0x58] sm:$0xff] %v1631_v63  ;;  %v3105_v4 = vshll.u32 %v4333_v12, %v3102_v32  ;;  %v3108_v33 = vshll.u32 %v4334_v16, %v3102_v32 }
 0x308   :  { %v3115_v8 = vshrl.u32 %v4337_v22, %v3103_v54  ;;  %v3276_v34 = vxor.u32 2147483648, %v3275_v40  ;;  %v3111_v61 = vshll.u32 %v4335_v18, %v3102_v32  ;;  %v3114_v52 = vshll.u32 %v4336_v20, %v3102_v32 }
 0x309   :  { %v1487_v50 = vshll.u32 %v6203_v21, 30  ;;  %v3107_v41 = vor.u32 %v3106_v44, %v3105_v4  ;;  %v3110_v24 = vor.u32 %v3109_v39, %v3108_v33  ;;  %v3117_v49 = vshll.u32 %v4337_v22, %v3102_v32 }
 0x30a   :  { %v3118_v59 = vshrl.u32 %v4338_v29, %v3103_v54  ;;  %v3277_v15 = vsel %vm3194_vm5, %v3276_v34, %v3275_v40  ;;  %v3113_v47 = vor.u32 %v3112_v48, %v3111_v61  ;;  %v3116_v0 = vor.u32 %v3115_v8, %v3114_v52 }
 0x30b   :  { %v6216_v53 = vsub.s32 %v1484_v19, %v1487_v50  ;;  %v3280_v37 = vsel %vm6180_vm12, %v5963_v10, %v3277_v15  ;;  %v6221_v43 = vand.u32 3, %v3285_v11  ;;  %v3096_v6 = vor.u32 8388608, %v3095_v5 }
 0x30c   :  { %v3119_v42 = vor.u32 %v3118_v59, %v3117_v49  ;;  %4262 = vcosq.f32 %v3280_v37  ;;  %v3104_v45 = vshrl.u32 %v4333_v12, %v3103_v54  ;;  %v1739_v17 = vand.u32 2139095040, %v6199_v46 }
 0x30d   :  { %v1490_v62 = vsub.s32 0, %v6216_v53  ;;  %4264 = vsinq.f32 %v3280_v37  ;;  %vm3120_vm2 = vcmp.lt.s32.totalorder %v3101_v55, 1  ;;  %vm3122_vm3 = vcmp.lt.s32.totalorder %v3101_v55, 3 }
 0x30e   :  { %vm3123_vm4 = vcmp.lt.s32.totalorder %v3101_v55, 4  ;;  %v3128_v2 = vsel %vm3120_vm2, %v3107_v41, %v3110_v24  ;;  %v3132_v38 = vsel %vm3120_vm2, %v3110_v24, %v3113_v47  ;;  %v3136_v9 = vshll.u32 %v3096_v6, 8 }
 0x30f   :  { %v3834_v58 = vmin.u32 %v1490_v62, %v6216_v53  ;;  %v3125_v56 = vsel %vm3123_vm4, %v3113_v47, 2102212464  ;;  %v3129_v32 = vsel %vm3123_vm4, %v3116_v0, 920167782  ;;  %v3133_v27 = vsel %vm3123_vm4, %v3119_v42, 1326507024 }
 0x310   :  { %v3130_v7 = vsel %vm3122_vm3, %v3113_v47, %v3129_v32  ;;  %v1510_v19 = vsub.s32 4, %v6203_v21  ;;  %vm3121_vm5 = vcmp.lt.s32.totalorder %v3101_v55, 2  ;;  %v3124_v26 = vsel %vm3120_vm2, %v3104_v45, %v3107_v41 }
 0x311   :  { %v1492_v51 = vclz %v3834_v58  ;;  %v3126_v57 = vsel %vm3122_vm3, %v3110_v24, %v3125_v56  ;;  %v3131_v11 = vsel %vm3121_vm5, %v3128_v2, %v3130_v7  ;;  %v3134_v5 = vsel %vm3122_vm3, %v3116_v0, %v3133_v27 }
 0x312   :  { %v1740_v54 = vshrl.u32 %v1739_v17, 23  ;;  %v3135_v1 = vsel %vm3121_vm5, %v3132_v38, %v3134_v5  ;;  %v6231_v14 = vmul.u32.u64.low %v3136_v9, %v3131_v11  ;;  %v6232_v13 = vmul.u32.u64.high %v3136_v9, %v3131_v11, %v6231_v14 }
 0x313   :  { %v3835_v25 = vadd.s32 4294967294, %v1492_v51  ;;  %vm1426_vm6 = vcmp.lt.s32.totalorder %v6059_v36, 0  ;;  %v6235_v44 = vmul.u32.u64.low %v3136_v9, %v3135_v1  ;;  %v6236_v39 = vmul.u32.u64.high %v3136_v9, %v3135_v1, %v6235_v44 }
 0x314   :  { %v3845_v63 = vadd.s32 4294967169, %v1740_v54  ;;  %vm6240_vm7 = vcmp.le.f32.partialorder %v1424_v60, 0.7853982  ;;  %v3127_v48 = vsel %vm3121_vm5, %v3124_v26, %v3126_v57  ;;  %v6245_v55 = vadd.f32 %v6110_v28, %v4021_v31 }
 0x315   :  { %vm3836_vm8 = vcmp.lt.s32.totalorder %v3835_v25, 0  ;;  %vm3287_vm9 = vcmp.lt.s32.totalorder %v6221_v43, 2  ;;  %v1480_v4 = vadd.s32 %v6168_v35, %v6166_v30  ;;  %v1736_v8 = vand.u32 2147483647, %v6199_v46 }
 0x316   :  { %v1495_v33 = vsel %vm3836_vm8, 0, %v3835_v25  ;;  %v1746_v34 = vadd.s32 1, %v3845_v63  ;;  %vm3284_vm11 = vweird.f32 %v5963_v10  ;;  %v1511_v61 = vsel %vm1426_vm6, %v1510_v19, %v6203_v21 }
 0x317   :  { %v1496_v60 = vsub.s32 32, %v1495_v33  ;;  %v1500_v50 = vsub.s32 4294967266, %v1495_v33  ;;  %v3146_v52 = vadd.s32 1, %v6232_v13  ;;  %v1497_v41 = vshll.u32 %v6216_v53, %v1495_v33 }
 0x318   :  { %v3143_v24 = vmul.u32 %v3136_v9, %v3127_v48  ;;  %vm3145_vm10 = vc.u32 %v6236_v39, %v6231_v14  ;;  %vm1747_vm12 = vcmp.gt.s32.totalorder %v1746_v34, 0  ;;  %v1513_v47 = vsel %vm6240_vm7, 0, %v1511_v61 }
 0x319   :  { %v1498_v30 = vshrl.u32 %v1480_v4, %v1496_v60  ;;  %v1501_v35 = vadd.s32 127, %v1500_v50  ;;  %v3147_v49 = vsel %vm3145_vm10, %v3146_v52, %v6232_v13  ;;  %v1748_v59 = vsel %vm1747_vm12, %v1746_v34, 0  ;;  %v4263_v15 = vpop.eup %4262 }
 0x31a   :  { %v3148_v0 = vadd.s32 %v3147_v49, %v3143_v24  ;;  %v1743_v21 = vand.u32 8388607, %v1736_v8  ;;  %v1750_v37 = vand.u32 31, %v1748_v59  ;;  %v4265_v6 = vpop.eup %4264  ;;  %vm3288_vm13 = vcmp.eq.s32.totalorder %v6221_v43, 0 }
 0x31b   :  { %v3292_v53 = vxor.u32 2147483648, %v4263_v15  ;;  %v1499_v42 = vor.u32 %v1498_v30, %v1497_v41  ;;  %v1502_v62 = vshll.u32 %v1501_v35, 23  ;;  %v3289_v45 = vxor.u32 2147483648, %v4265_v6 }
 0x31c   :  { %vm3291_vm14 = vcmp.eq.s32.totalorder %v6221_v43, 2  ;;  %v3149_v17 = vadd.s32 536870912, %v3148_v0  ;;  %v1751_v58 = vsub.s32 32, %v1750_v37  ;;  %v6265_v32 = vadd.s32 3, %v1513_v47 }
 0x31d   :  { %v3293_v56 = vsel %vm3291_vm14, %v3292_v53, %v4265_v6  ;;  %v1503_v2 = vor.u32 4788187, %v1502_v62  ;;  %v3400_v7 = vand.u32 2147483647, %v6245_v55  ;;  %v3290_v38 = vsel %vm3288_vm13, %v4263_v15, %v3289_v45 }
 0x31e   :  { %v3150_v27 = vshrl.u32 %v3149_v17, 30  ;;  %v1744_v9 = vor.u32 8388608, %v1743_v21  ;;  %v3403_v51 = vand.u32 2139095040, %v6245_v55  ;;  %v3294_v19 = vsel %vm3287_vm9, %v3290_v38, %v3293_v56 }
 0x31f   :  { %v1504_v26 = vand.u32 2147483647, %v1503_v2  ;;  %v1506_v57 = vcvt.s32.f32 %v1499_v42  ;;  %v1754_v11 = vshrl.u32 %v4334_v16, %v1751_v58  ;;  %v3295_v5 = vsel %vm3284_vm11, nan, %v3294_v19 }
 0x320   :  { %v6275_v54 = vadd.s32 %v6231_v14, %v6236_v39  ;;  %v3151_v31 = vshll.u32 %v3150_v27, 30  ;;  %v1757_v25 = vshrl.u32 %v4335_v18, %v1751_v58  ;;  %3739 = vst [vmem:[#allocation2 + $0xd8] sm:$0xff] %v3295_v5  ;;  %v1749_v13 = vshrl.u32 %v1748_v59, 5 }
 0x321   :  { %v1507_v1 = vmul.f32 %v1506_v57, %v1504_v26  ;;  %v1753_v44 = vshll.u32 %v4333_v12, %v1750_v37  ;;  %v1760_v43 = vshrl.u32 %v4336_v20, %v1751_v58  ;;  %v1756_v48 = vshll.u32 %v4334_v16, %v1750_v37 }
 0x322   :  { %v6280_v63 = vsub.s32 %v3148_v0, %v3151_v31  ;;  %v1759_v10 = vshll.u32 %v4335_v18, %v1750_v37  ;;  %v1763_v4 = vshrl.u32 %v4337_v22, %v1751_v58  ;;  %v1762_v33 = vshll.u32 %v4336_v20, %v1750_v37 }
 0x323   :  { %v1508_v14 = vxor.u32 2147483648, %v1507_v1  ;;  %v1755_v39 = vor.u32 %v1754_v11, %v1753_v44  ;;  %v1766_v34 = vshrl.u32 %v4338_v29, %v1751_v58  ;;  %vm3090_vm15 = vcmp.lt.s32.totalorder %v6113_v3, 0 }
 0x324   :  { %v3154_v60 = vsub.s32 0, %v6280_v63  ;;  %v1758_v50 = vor.u32 %v1757_v25, %v1756_v48  ;;  %v1761_v61 = vor.u32 %v1760_v43, %v1759_v10  ;;  %v1765_v52 = vshll.u32 %v4337_v22, %v1750_v37 }
 0x325   :  { %v1509_v41 = vsel %vm1426_vm6, %v1508_v14, %v1507_v1  ;;  %v1764_v24 = vor.u32 %v1763_v4, %v1762_v33  ;;  %v1784_v30 = vshll.u32 %v1744_v9, 8  ;;  %v3404_v35 = vshrl.u32 %v3403_v51, 23 }
 0x326   :  { %v1512_v49 = vsel %vm6240_vm7, %v6059_v36, %v1509_v41  ;;  %v3898_v59 = vmin.u32 %v3154_v60, %v6280_v63  ;;  %v1752_v15 = vshrl.u32 %v4333_v12, %v1751_v58  ;;  %v1767_v47 = vor.u32 %v1766_v34, %v1765_v52 }
 0x327   :  { %4266 = vcosq.f32 %v1512_v49  ;;  %v3174_v0 = vsub.s32 4, %v3150_v27  ;;  %vm1768_vm0 = vcmp.lt.s32.totalorder %v1749_v13, 1  ;;  %vm1771_vm1 = vcmp.lt.s32.totalorder %v1749_v13, 4 }
 0x328   :  { %4268 = vsinq.f32 %v1512_v49  ;;  %v3156_v21 = vclz %v3898_v59  ;;  %v1773_v37 = vsel %vm1771_vm1, %v1761_v61, 2102212464  ;;  %v1776_v6 = vsel %vm1768_vm0, %v1755_v39, %v1758_v50 }
 0x329   :  { %vm1769_vm2 = vcmp.lt.s32.totalorder %v1749_v13, 2  ;;  %vm1770_vm3 = vcmp.lt.s32.totalorder %v1749_v13, 3  ;;  %v1777_v53 = vsel %vm1771_vm1, %v1764_v24, 920167782  ;;  %v1780_v42 = vsel %vm1768_vm0, %v1758_v50, %v1761_v61 }
 0x32a   :  { %v3899_v62 = vadd.s32 4294967294, %v3156_v21  ;;  %v1772_v40 = vsel %vm1768_vm0, %v1752_v15, %v1755_v39  ;;  %v1778_v45 = vsel %vm1770_vm3, %v1761_v61, %v1777_v53  ;;  %v1781_v17 = vsel %vm1771_vm1, %v1767_v47, 1326507024 }
 0x32b   :  { %v1774_v56 = vsel %vm1770_vm3, %v1758_v50, %v1773_v37  ;;  %v1779_v58 = vsel %vm1769_vm2, %v1776_v6, %v1778_v45  ;;  %v1782_v2 = vsel %vm1770_vm3, %v1764_v24, %v1781_v17  ;;  %v3909_v38 = vadd.s32 4294967169, %v3404_v35 }
 0x32c   :  { %vm3900_vm4 = vcmp.lt.s32.totalorder %v3899_v62, 0  ;;  %v1783_v9 = vsel %vm1769_vm2, %v1780_v42, %v1782_v2  ;;  %v6299_v51 = vmul.u32.u64.low %v1784_v30, %v1779_v58  ;;  %v6300_v19 = vmul.u32.u64.high %v1784_v30, %v1779_v58, %v6299_v51 }
 0x32d   :  { %v3159_v26 = vsel %vm3900_vm4, 0, %v3899_v62  ;;  %v3175_v57 = vsel %vm3090_vm15, %v3174_v0, %v3150_v27  ;;  %v6305_v11 = vmul.u32.u64.low %v1784_v30, %v1783_v9  ;;  %v6306_v5 = vmul.u32.u64.high %v1784_v30, %v1783_v9, %v6305_v11 }
 0x32e   :  { %v3160_v31 = vsub.s32 32, %v3159_v26  ;;  %v3164_v25 = vsub.s32 4294967266, %v3159_v26  ;;  %v1775_v1 = vsel %vm1769_vm2, %v1772_v40, %v1774_v56  ;;  %v3410_v44 = vadd.s32 1, %v3909_v38 }
 0x32f   :  { %v1518_v43 = vand.u32 3, %v6265_v32  ;;  %vm6312_vm5 = vcmp.le.f32.partialorder %v3088_v23, 0.7853982  ;;  %v3161_v10 = vshll.u32 %v6280_v63, %v3159_v26  ;;  %v1794_v14 = vadd.s32 1, %v6300_v19  ;;  %v285_v26 = vpop.f32.mrf.mxu0 }
 0x330   :  { %v3162_v27 = vshrl.u32 %v6275_v54, %v3160_v31  ;;  %v3165_v4 = vadd.s32 127, %v3164_v25  ;;  %vm3411_vm6 = vcmp.gt.s32.totalorder %v3410_v44, 0  ;;  %v3177_v13 = vsel %vm6312_vm5, 0, %v3175_v57 }
 0x331   :  { %v1791_v39 = vmul.u32 %v1784_v30, %v1775_v1  ;;  %vm1793_vm7 = vc.u32 %v6306_v5, %v6299_v51  ;;  %v3412_v32 = vsel %vm3411_vm6, %v3410_v44, 0  ;;  %v3407_v63 = vand.u32 8388607, %v3400_v7 }
 0x332   :  { %v3163_v23 = vor.u32 %v3162_v27, %v3161_v10  ;;  %v3166_v33 = vshll.u32 %v3165_v4, 23  ;;  %v1795_v34 = vsel %vm1793_vm7, %v1794_v14, %v6300_v19  ;;  %vm1516_vm8 = vweird.f32 %v6059_v36 }
 0x333   :  { %v1796_v54 = vadd.s32 %v1795_v34, %v1791_v39  ;;  %v3414_v60 = vand.u32 31, %v3412_v32  ;;  %vm1519_vm9 = vcmp.lt.s32.totalorder %v1518_v43, 2  ;;  %vm1520_vm11 = vcmp.eq.s32.totalorder %v1518_v43, 0 }
 0x334   :  { %v4267_v50 = vpop.eup %4266  ;;  %vm1523_vm10 = vcmp.eq.s32.totalorder %v1518_v43, 2  ;;  %v3167_v61 = vor.u32 4788187, %v3166_v33  ;;  %v6327_v24 = vadd.s32 3, %v3177_v13  ;;  %v3170_v15 = vcvt.s32.f32 %v3163_v23 }
 0x335   :  { %v4269_v52 = vpop.eup %4268  ;;  %v1524_v41 = vxor.u32 2147483648, %v4267_v50  ;;  %v1797_v30 = vadd.s32 536870912, %v1796_v54  ;;  %v3415_v35 = vsub.s32 32, %v3414_v60  ;;  %v3408_v47 = vor.u32 8388608, %v3407_v63 }
 0x336   :  { %v1521_v49 = vxor.u32 2147483648, %v4269_v52  ;;  %v3168_v59 = vand.u32 2147483647, %v3167_v61  ;;  %v3417_v37 = vshll.u32 %v4333_v12, %v3414_v60  ;;  %v3413_v56 = vshrl.u32 %v3412_v32, 5 }
 0x337   :  { %v1525_v0 = vsel %vm1523_vm10, %v1524_v41, %v4269_v52  ;;  %v1798_v21 = vshrl.u32 %v1797_v30, 30  ;;  %v3418_v6 = vshrl.u32 %v4334_v16, %v3415_v35  ;;  %v3421_v62 = vshrl.u32 %v4335_v18, %v3415_v35 }
 0x338   :  { %v1522_v53 = vsel %vm1520_vm11, %v4267_v50, %v1521_v49  ;;  %v3171_v42 = vmul.f32 %v3170_v15, %v3168_v59  ;;  %v3424_v40 = vshrl.u32 %v4336_v20, %v3415_v35  ;;  %v3420_v58 = vshll.u32 %v4334_v16, %v3414_v60  ;;  %v365_v15 = vpop.f32.mrf.mxu1 }
 0x339   :  { %v1526_v45 = vsel %vm1519_vm9, %v1522_v53, %v1525_v0  ;;  %v1799_v17 = vshll.u32 %v1798_v21, 30  ;;  %vm1738_vm12 = vcmp.lt.s32.totalorder %v6199_v46, 0  ;;  %v3419_v9 = vor.u32 %v3418_v6, %v3417_v37 }
 0x33a   :  { %v1527_v2 = vsel %vm1516_vm8, nan, %v1526_v45  ;;  %v3172_v38 = vxor.u32 2147483648, %v3171_v42  ;;  %v3423_v19 = vshll.u32 %v4335_v18, %v3414_v60  ;;  %v3422_v11 = vor.u32 %v3421_v62, %v3420_v58 }
 0x33b   :  { %3722 = vst [vmem:[#allocation2 + $0x50] sm:$0xff] %v1527_v2  ;;  %v6340_v57 = vsub.s32 %v1796_v54, %v1799_v17  ;;  %v3426_v31 = vshll.u32 %v4336_v20, %v3414_v60  ;;  %v3427_v25 = vshrl.u32 %v4337_v22, %v3415_v35  ;;  %v3429_v44 = vshll.u32 %v4337_v22, %v3414_v60 }
 0x33c   :  { %v3173_v1 = vsel %vm3090_vm15, %v3172_v38, %v3171_v42  ;;  %v3425_v36 = vor.u32 %v3424_v40, %v3423_v19  ;;  %v3430_v43 = vshrl.u32 %v4338_v29, %v3415_v35  ;;  %v6353_v14 = vadd.f32 %v6110_v28, %v285_v26 }
 0x33d   :  { %v3176_v10 = vsel %vm6312_vm5, %v6113_v3, %v3173_v1  ;;  %v1802_v27 = vsub.s32 0, %v6340_v57  ;;  %v3428_v4 = vor.u32 %v3427_v25, %v3426_v31  ;;  %v3416_v13 = vshrl.u32 %v4333_v12, %v3415_v35 }
 0x33e   :  { %4270 = vcosq.f32 %v3176_v10  ;;  %v3431_v39 = vor.u32 %v3430_v43, %v3429_v44  ;;  %vm3432_vm13 = vcmp.lt.s32.totalorder %v3413_v56, 1  ;;  %v1822_v23 = vsub.s32 4, %v1798_v21 }
 0x33f   :  { %4272 = vsinq.f32 %v3176_v10  ;;  %v3846_v32 = vmin.u32 %v1802_v27, %v6340_v57  ;;  %vm3435_vm14 = vcmp.lt.s32.totalorder %v3413_v56, 4  ;;  %v3440_v34 = vsel %vm3432_vm13, %v3419_v9, %v3422_v11 }
 0x340   :  { %v3437_v33 = vsel %vm3435_vm14, %v3425_v36, 2102212464  ;;  %v3441_v48 = vsel %vm3435_vm14, %v3428_v4, 920167782  ;;  %v3448_v63 = vshll.u32 %v3408_v47, 8  ;;  %vm3434_vm15 = vcmp.lt.s32.totalorder %v3413_v56, 3 }
 0x341   :  { %v1804_v54 = vclz %v3846_v32  ;;  %v3436_v60 = vsel %vm3432_vm13, %v3416_v13, %v3419_v9  ;;  %v3444_v50 = vsel %vm3432_vm13, %v3422_v11, %v3425_v36  ;;  %vm3433_vm0 = vcmp.lt.s32.totalorder %v3413_v56, 2 }
 0x342   :  { %v3438_v61 = vsel %vm3434_vm15, %v3422_v11, %v3437_v33  ;;  %v3442_v52 = vsel %vm3434_vm15, %v3425_v36, %v3441_v48  ;;  %v3445_v41 = vsel %vm3435_vm14, %v3431_v39, 1326507024  ;;  %v1823_v35 = vsel %vm1738_vm12, %v1822_v23, %v1798_v21 }
 0x343   :  { %v3847_v30 = vadd.s32 4294967294, %v1804_v54  ;;  %v3443_v49 = vsel %vm3433_vm0, %v3440_v34, %v3442_v52  ;;  %v3446_v59 = vsel %vm3434_vm15, %v3428_v4, %v3445_v41  ;;  %v3439_v0 = vsel %vm3433_vm0, %v3436_v60, %v3438_v61 }
 0x344   :  { %v3447_v37 = vsel %vm3433_vm0, %v3444_v50, %v3446_v59  ;;  %v6359_v6 = vmul.u32.u64.low %v3448_v63, %v3443_v49  ;;  %v6360_v53 = vmul.u32.u64.high %v3448_v63, %v3443_v49, %v6359_v6  ;;  %v1635_v62 = vand.u32 2139095040, %v6353_v14 }
 0x345   :  { %vm3848_vm1 = vcmp.lt.s32.totalorder %v3847_v30, 0  ;;  %v6363_v47 = vmul.u32.u64.low %v3448_v63, %v3447_v37  ;;  %v6364_v42 = vmul.u32.u64.high %v3448_v63, %v3447_v37, %v6363_v47  ;;  %v3182_v40 = vand.u32 3, %v6327_v24 }
 0x346   :  { %vm6370_vm2 = vcmp.le.f32.partialorder %v1736_v8, 0.7853982  ;;  %v1807_v45 = vsel %vm3848_vm1, 0, %v3847_v30  ;;  %v6375_v17 = vadd.f32 %v6110_v28, %v365_v15  ;;  %v1792_v56 = vadd.s32 %v6299_v51, %v6306_v5 }
 0x347   :  { %v1808_v58 = vsub.s32 32, %v1807_v45  ;;  %v1812_v2 = vsub.s32 4294967266, %v1807_v45  ;;  %v1636_v38 = vshrl.u32 %v1635_v62, 23  ;;  %v1825_v9 = vsel %vm6370_vm2, 0, %v1823_v35 }
 0x348   :  { %v3455_v24 = vmul.u32 %v3448_v63, %v3439_v0  ;;  %v3458_v19 = vadd.s32 1, %v6360_v53  ;;  %v1632_v8 = vand.u32 2147483647, %v6353_v14  ;;  %v1809_v26 = vshll.u32 %v6340_v57, %v1807_v45 }
 0x349   :  { %v1810_v11 = vshrl.u32 %v1792_v56, %v1808_v58  ;;  %v1813_v31 = vadd.s32 127, %v1812_v2  ;;  %vm3457_vm3 = vc.u32 %v6364_v42, %v6359_v6  ;;  %vm3183_vm4 = vcmp.lt.s32.totalorder %v3182_v40, 2 }
 0x34a   :  { %v3459_v28 = vsel %vm3457_vm3, %v3458_v19, %v6360_v53  ;;  %v3841_v51 = vadd.s32 4294967169, %v1636_v38  ;;  %v3299_v5 = vand.u32 2139095040, %v6375_v17  ;;  %vm3184_vm5 = vcmp.eq.s32.totalorder %v3182_v40, 0 }
 0x34b   :  { %v4271_v25 = vpop.eup %4270  ;;  %v1811_v1 = vor.u32 %v1810_v11, %v1809_v26  ;;  %v1814_v36 = vshll.u32 %v1813_v31, 23  ;;  %v3460_v44 = vadd.s32 %v3459_v28, %v3455_v24  ;;  %vm3187_vm6 = vcmp.eq.s32.totalorder %v3182_v40, 2 }
 0x34c   :  { %v4273_v43 = vpop.eup %4272  ;;  %v3188_v10 = vxor.u32 2147483648, %v4271_v25  ;;  %v1829_v57 = vadd.s32 3, %v1825_v9  ;;  %v1642_v27 = vadd.s32 1, %v3841_v51  ;;  %v1639_v32 = vand.u32 8388607, %v1632_v8 }
 0x34d   :  { %v3185_v4 = vxor.u32 2147483648, %v4273_v43  ;;  %v1815_v13 = vor.u32 4788187, %v1814_v36  ;;  %v3461_v39 = vadd.s32 536870912, %v3460_v44  ;;  %v1818_v33 = vcvt.s32.f32 %v1811_v1 }
 0x34e   :  { %v3189_v23 = vsel %vm3187_vm6, %v3188_v10, %v4273_v43  ;;  %vm1643_vm7 = vcmp.gt.s32.totalorder %v1642_v27, 0  ;;  %v3300_v34 = vshrl.u32 %v3299_v5, 23  ;;  %vm3180_vm8 = vweird.f32 %v6113_v3 }
 0x34f   :  { %v3186_v48 = vsel %vm3184_vm5, %v4271_v25, %v3185_v4  ;;  %v1816_v63 = vand.u32 2147483647, %v1815_v13  ;;  %v3462_v54 = vshrl.u32 %v3461_v39, 30  ;;  %v1644_v60 = vsel %vm1643_vm7, %v1642_v27, 0 }
 0x350   :  { %v3190_v50 = vsel %vm3183_vm4, %v3186_v48, %v3189_v23  ;;  %v1646_v61 = vand.u32 31, %v1644_v60  ;;  %v6393_v30 = vand.u32 3, %v1829_v57  ;;  %vm3402_vm9 = vcmp.lt.s32.totalorder %v6245_v55, 0 }
 0x351   :  { %v3191_v52 = vsel %vm3180_vm8, nan, %v3190_v50  ;;  %v1819_v41 = vmul.f32 %v1818_v33, %v1816_v63  ;;  %v3463_v35 = vshll.u32 %v3462_v54, 30  ;;  %v1640_v49 = vor.u32 8388608, %v1639_v32 }
 0x352   :  { %3738 = vst [vmem:[#allocation2 + $0xd0] sm:$0xff] %v3191_v52  ;;  %v1647_v59 = vsub.s32 32, %v1646_v61  ;;  %v3296_v15 = vand.u32 2147483647, %v6375_v17  ;;  %v3905_v0 = vadd.s32 4294967169, %v3300_v34  ;;  %v3486_v3 = vsub.s32 4, %v3462_v54 }
 0x353   :  { %v1820_v37 = vxor.u32 2147483648, %v1819_v41  ;;  %v6397_v53 = vsub.s32 %v3460_v44, %v3463_v35  ;;  %v1645_v47 = vshrl.u32 %v1644_v60, 5  ;;  %v1649_v62 = vshll.u32 %v4333_v12, %v1646_v61 }
 0x354   :  { %v1650_v40 = vshrl.u32 %v4334_v16, %v1647_v59  ;;  %v1652_v45 = vshll.u32 %v4334_v16, %v1646_v61  ;;  %v1653_v56 = vshrl.u32 %v4335_v18, %v1647_v59  ;;  %vm6407_vm11 = vcmp.le.f32.partialorder %v3400_v7, 0.7853982 }
 0x355   :  { %v1821_v58 = vsel %vm1738_vm12, %v1820_v37, %v1819_v41  ;;  %v3466_v38 = vsub.s32 0, %v6397_v53  ;;  %v1655_v9 = vshll.u32 %v4335_v18, %v1646_v61  ;;  %v1656_v24 = vshrl.u32 %v4336_v20, %v1647_v59 }
 0x356   :  { %v1824_v19 = vsel %vm6370_vm2, %v6199_v46, %v1821_v58  ;;  %v1651_v26 = vor.u32 %v1650_v40, %v1649_v62  ;;  %v1658_v11 = vshll.u32 %v4336_v20, %v1646_v61  ;;  %v1659_v31 = vshrl.u32 %v4337_v22, %v1647_v59 }
 0x357   :  { %4274 = vcosq.f32 %v1824_v19  ;;  %v3910_v7 = vmin.u32 %v3466_v38, %v6397_v53  ;;  %v1654_v28 = vor.u32 %v1653_v56, %v1652_v45  ;;  %v1657_v51 = vor.u32 %v1656_v24, %v1655_v9 }
 0x358   :  { %4276 = vsinq.f32 %v1824_v19  ;;  %v1660_v5 = vor.u32 %v1659_v31, %v1658_v11  ;;  %v1661_v25 = vshll.u32 %v4337_v22, %v1646_v61  ;;  %v1662_v1 = vshrl.u32 %v4338_v29, %v1647_v59 }
 0x359   :  { %v3456_v21 = vadd.s32 %v6359_v6, %v6364_v42  ;;  %v3468_v36 = vclz %v3910_v7  ;;  %v1680_v44 = vshll.u32 %v1640_v49, 8  ;;  %v3306_v43 = vadd.s32 1, %v3905_v0 }
 0x35a   :  { %v3487_v10 = vsel %vm3402_vm9, %v3486_v3, %v3462_v54  ;;  %v1648_v57 = vshrl.u32 %v4333_v12, %v1647_v59  ;;  %v1663_v27 = vor.u32 %v1662_v1, %v1661_v25  ;;  %vm1664_vm10 = vcmp.lt.s32.totalorder %v1645_v47, 1 }
 0x35b   :  { %v3911_v4 = vadd.s32 4294967294, %v3468_v36  ;;  %vm1666_vm12 = vcmp.lt.s32.totalorder %v1645_v47, 3  ;;  %vm1667_vm13 = vcmp.lt.s32.totalorder %v1645_v47, 4  ;;  %v1672_v13 = vsel %vm1664_vm10, %v1651_v26, %v1654_v28 }
 0x35c   :  { %v1669_v39 = vsel %vm1667_vm13, %v1657_v51, 2102212464  ;;  %v1673_v32 = vsel %vm1667_vm13, %v1660_v5, 920167782  ;;  %v1676_v23 = vsel %vm1664_vm10, %v1654_v28, %v1657_v51  ;;  %v1677_v6 = vsel %vm1667_vm13, %v1663_v27, 1326507024 }
 0x35d   :  { %vm3912_vm14 = vcmp.lt.s32.totalorder %v3911_v4, 0  ;;  %vm1665_vm15 = vcmp.lt.s32.totalorder %v1645_v47, 2  ;;  %v1674_v42 = vsel %vm1666_vm12, %v1657_v51, %v1673_v32  ;;  %v1678_v33 = vsel %vm1666_vm12, %v1660_v5, %v1677_v6 }
 0x35e   :  { %v3471_v34 = vsel %vm3912_vm14, 0, %v3911_v4  ;;  %v3489_v48 = vsel %vm6407_vm11, 0, %v3487_v10  ;;  %v1675_v63 = vsel %vm1665_vm15, %v1672_v13, %v1674_v42  ;;  %v1679_v54 = vsel %vm1665_vm15, %v1676_v23, %v1678_v33 }
 0x35f   :  { %v3472_v60 = vsub.s32 32, %v3471_v34  ;;  %v3476_v50 = vsub.s32 4294967266, %v3471_v34  ;;  %v1668_v61 = vsel %vm1664_vm10, %v1648_v57, %v1651_v26  ;;  %v1670_v52 = vsel %vm1666_vm12, %v1654_v28, %v1669_v39 }
 0x360   :  { %v6437_v41 = vmul.u32.u64.low %v1680_v44, %v1679_v54  ;;  %v6438_v35 = vmul.u32.u64.high %v1680_v44, %v1679_v54, %v6437_v41  ;;  %v6440_v49 = vmul.u32.u64.low %v1680_v44, %v1675_v63  ;;  %v6441_v59 = vmul.u32.u64.high %v1680_v44, %v1675_v63, %v6440_v49  ;;  %v4000_v63 = vpop.f32.mrf.mxu0 }
 0x361   :  { %vm1828_vm0 = vweird.f32 %v6199_v46  ;;  %v3473_v0 = vshll.u32 %v6397_v53, %v3471_v34  ;;  %v3474_v37 = vshrl.u32 %v3456_v21, %v3472_v60  ;;  %v3477_v3 = vadd.s32 127, %v3476_v50 }
 0x362   :  { %vm3307_vm1 = vcmp.gt.s32.totalorder %v3306_v43, 0  ;;  %v3493_v62 = vadd.s32 3, %v3489_v48  ;;  %v1671_v40 = vsel %vm1665_vm15, %v1668_v61, %v1670_v52  ;;  %v3303_v45 = vand.u32 8388607, %v3296_v15 }
 0x363   :  { %v3308_v56 = vsel %vm3307_vm1, %v3306_v43, 0  ;;  %vm1831_vm2 = vcmp.lt.s32.totalorder %v6393_v30, 2  ;;  %v3475_v58 = vor.u32 %v3474_v37, %v3473_v0  ;;  %v3478_v38 = vshll.u32 %v3477_v3, 23 }
 0x364   :  { %v3310_v9 = vand.u32 31, %v3308_v56  ;;  %v4275_v24 = vpop.eup %4274  ;;  %vm1832_vm3 = vcmp.eq.s32.totalorder %v6393_v30, 0  ;;  %vm1835_vm4 = vcmp.eq.s32.totalorder %v6393_v30, 2  ;;  %vm1689_vm5 = vc.u32 %v6438_v35, %v6440_v49 }
 0x365   :  { %v1690_v53 = vadd.s32 1, %v6441_v59  ;;  %v4277_v47 = vpop.eup %4276  ;;  %v1836_v19 = vxor.u32 2147483648, %v4275_v24  ;;  %v3479_v26 = vor.u32 4788187, %v3478_v38  ;;  %v1687_v11 = vmul.u32 %v1680_v44, %v1671_v40 }
 0x366   :  { %v3311_v31 = vsub.s32 32, %v3310_v9  ;;  %v1833_v7 = vxor.u32 2147483648, %v4277_v47  ;;  %v6455_v28 = vand.u32 3, %v3493_v62  ;;  %v3304_v5 = vor.u32 8388608, %v3303_v45  ;;  %v6484_v62 = vld [vmem:[%s6868_s2] ss:$0 sm:$0xff] }
 0x367   :  { %v1691_v51 = vsel %vm1689_vm5, %v1690_v53, %v6441_v59  ;;  %v1837_v25 = vsel %vm1835_vm4, %v1836_v19, %v4277_v47  ;;  %v3480_v1 = vand.u32 2147483647, %v3479_v26  ;;  %v3482_v21 = vcvt.s32.f32 %v3475_v58  ;;  %s4339_s2 = smov [#allocation2]  }
 0x368   :  { %v1692_v36 = vadd.s32 %v1691_v51, %v1687_v11  ;;  %v1834_v43 = vsel %vm1832_vm3, %v4275_v24, %v1833_v7  ;;  %v6460_v10 = vshrl.u32 %v3308_v56, 5  ;;  %v3314_v57 = vshrl.u32 %v4334_v16, %v3311_v31  ;;  %v4024_v51 = vpop.f32.mrf.mxu1  ;;  %s3749_s19 = sshll.u32 %s4339_s2, 4  ;;  %s3750_s19 = int_to_ptr.vmem [resolvable:$true] %s3749_s19 }
 0x369   :  { %v3317_v44 = vshrl.u32 %v4335_v18, %v3311_v31  ;;  %v1838_v27 = vsel %vm1831_vm2, %v1834_v43, %v1837_v25  ;;  %v3483_v4 = vmul.f32 %v3482_v21, %v3480_v1  ;;  %v3320_v39 = vshrl.u32 %v4336_v20, %v3311_v31  ;;  %s4311_s20 = scalar_lea.vmem %s3750_s19, 4096  ;;  %p4316_p1 = scmp.lt.s32.totalorder %s3750_s19, %s3750_s19 }
 0x36a   :  { %v1693_v13 = vadd.s32 536870912, %v1692_v36  ;;  %v1839_v32 = vsel %vm1828_vm0, nan, %v1838_v27  ;;  %v3313_v23 = vshll.u32 %v4333_v12, %v3310_v9  ;;  %v3316_v6 = vshll.u32 %v4334_v16, %v3310_v9  ;;  %p4312_p0 = scmp.ne.s32.totalorder %s3750_s19, %s4311_s20  ;;  %p4317_p2 = scmp.lt.s32.totalorder %s4311_s20, %s4311_s20 }
 0x36b   :  { %v3319_v42 = vshll.u32 %v4335_v18, %v3310_v9  ;;  %3725 = vst [vmem:[#allocation2 + $0x68] sm:$0xff] %v1839_v32  ;;  %v3484_v33 = vxor.u32 2147483648, %v3483_v4  ;;  %v3322_v48 = vshll.u32 %v4336_v20, %v3310_v9  ;;  %v3323_v30 = vshrl.u32 %v4337_v22, %v3311_v31 }
 0x36c   :  { %v1694_v34 = vshrl.u32 %v1693_v13, 30  ;;  %v3315_v54 = vor.u32 %v3314_v57, %v3313_v23  ;;  %v3318_v60 = vor.u32 %v3317_v44, %v3316_v6  ;;  %v3325_v50 = vshll.u32 %v4337_v22, %v3310_v9  ;;  %p4318_p3 = por %p4317_p2, %p4316_p1 }
 0x36d   :  { %v3326_v46 = vshrl.u32 %v4338_v29, %v3311_v31  ;;  %v3485_v61 = vsel %vm3402_vm9, %v3484_v33, %v3483_v4  ;;  %v3321_v41 = vor.u32 %v3320_v39, %v3319_v42  ;;  %v3324_v59 = vor.u32 %v3323_v30, %v3322_v48 }
 0x36e   :  { %v1695_v52 = vshll.u32 %v1694_v34, 30  ;;  %v3488_v0 = vsel %vm6407_vm11, %v6245_v55, %v3485_v61  ;;  %v3344_v3 = vshll.u32 %v3304_v5, 8  ;;  %v6487_v40 = vadd.f32 %v6484_v62, %v4000_v63  ;;  %p4319_p4 = pnand %p4318_p3, %p4312_p0 }
 0x36f   :  { %v3327_v37 = vor.u32 %v3326_v46, %v3325_v50  ;;  %4278 = vcosq.f32 %v3488_v0  ;;  %v3312_v56 = vshrl.u32 %v4333_v12, %v3311_v31  ;;  %vm3328_vm6 = vcmp.lt.s32.totalorder %v6460_v10, 1 }
 0x370   :  { %v6489_v45 = vsub.s32 %v1692_v36, %v1695_v52  ;;  %4280 = vsinq.f32 %v3488_v0  ;;  %vm3329_vm7 = vcmp.lt.s32.totalorder %v6460_v10, 2  ;;  %vm3331_vm8 = vcmp.lt.s32.totalorder %v6460_v10, 4 }
 0x371   :  { %v3336_v2 = vsel %vm3328_vm6, %v3315_v54, %v3318_v60  ;;  %vm3330_vm9 = vcmp.lt.s32.totalorder %v6460_v10, 3  ;;  %v3333_v38 = vsel %vm3331_vm8, %v3321_v41, 2102212464  ;;  %v3337_v9 = vsel %vm3331_vm8, %v3324_v59, 920167782 }
 0x372   :  { %v1698_v58 = vsub.s32 0, %v6489_v45  ;;  %v1718_v24 = vsub.s32 4, %v1694_v34  ;;  %v3338_v53 = vsel %vm3330_vm9, %v3321_v41, %v3337_v9  ;;  %v3340_v47 = vsel %vm3328_vm6, %v3318_v60, %v3321_v41 }
 0x373   :  { %v3341_v19 = vsel %vm3331_vm8, %v3327_v37, 1326507024  ;;  %v3332_v11 = vsel %vm3328_vm6, %v3312_v56, %v3315_v54  ;;  %v3339_v31 = vsel %vm3329_vm7, %v3336_v2, %v3338_v53  ;;  %v3334_v5 = vsel %vm3330_vm9, %v3318_v60, %v3333_v38 }
 0x374   :  { %v3842_v26 = vmin.u32 %v1698_v58, %v6489_v45  ;;  %v3342_v7 = vsel %vm3330_vm9, %v3324_v59, %v3341_v19  ;;  %v6502_v1 = vmul.u32.u64.low %v3344_v3, %v3339_v31  ;;  %v6503_v21 = vmul.u32.u64.high %v3344_v3, %v3339_v31, %v6502_v1 }
 0x375   :  { %v3343_v25 = vsel %vm3329_vm7, %v3340_v47, %v3342_v7  ;;  %vm1634_vm11 = vcmp.lt.s32.totalorder %v6353_v14, 0  ;;  %v6511_v44 = vadd.f32 %v6484_v62, %v4024_v51  ;;  %vm6515_vm10 = vcmp.le.f32.partialorder %v1632_v8, 0.7853982  ;;  %v295_v7 = vpop.f32.mrf.mxu0 }
 0x376   :  { %v1700_v36 = vclz %v3842_v26  ;;  %v6507_v43 = vmul.u32.u64.low %v3344_v3, %v3343_v25  ;;  %v6508_v57 = vmul.u32.u64.high %v3344_v3, %v3343_v25, %v6507_v43  ;;  %v3335_v13 = vsel %vm3329_vm7, %v3332_v11, %v3334_v5 }
 0x377   :  { %v1947_v39 = vand.u32 2139095040, %v6487_v40  ;;  %vm3495_vm12 = vcmp.lt.s32.totalorder %v6455_v28, 2  ;;  %vm3496_vm13 = vcmp.eq.s32.totalorder %v6455_v28, 0  ;;  %v1719_v32 = vsel %vm1634_vm11, %v1718_v24, %v1694_v34 }
 0x378   :  { %v3843_v4 = vadd.s32 4294967294, %v1700_v36  ;;  %v3354_v23 = vadd.s32 1, %v6503_v21  ;;  %v1944_v8 = vand.u32 2147483647, %v6487_v40  ;;  %vm3492_vm14 = vweird.f32 %v6245_v55 }
 0x379   :  { %vm3499_vm15 = vcmp.eq.s32.totalorder %v6455_v28, 2  ;;  %v1688_v10 = vadd.s32 %v6440_v49, %v6438_v35  ;;  %v1948_v6 = vshrl.u32 %v1947_v39, 23  ;;  %v3351_v33 = vmul.u32 %v3344_v3, %v3335_v13 }
 0x37a   :  { %vm3844_vm0 = vcmp.lt.s32.totalorder %v3843_v4, 0  ;;  %vm3353_vm1 = vc.u32 %v6508_v57, %v6502_v1  ;;  %v3611_v34 = vand.u32 2139095040, %v6511_v44  ;;  %v1721_v63 = vsel %vm6515_vm10, 0, %v1719_v32 }
 0x37b   :  { %v1703_v42 = vsel %vm3844_vm0, 0, %v3843_v4  ;;  %v3355_v54 = vsel %vm3353_vm1, %v3354_v23, %v6503_v21  ;;  %v3853_v46 = vadd.s32 4294967169, %v1948_v6  ;;  %v1951_v35 = vand.u32 8388607, %v1944_v8 }
 0x37c   :  { %v1704_v48 = vsub.s32 32, %v1703_v42  ;;  %v1708_v30 = vsub.s32 4294967266, %v1703_v42  ;;  %v4279_v60 = vpop.eup %4278  ;;  %v3356_v50 = vadd.s32 %v3355_v54, %v3351_v33  ;;  %v3608_v49 = vand.u32 2147483647, %v6511_v44 }
 0x37d   :  { %v4281_v61 = vpop.eup %4280  ;;  %v3500_v52 = vxor.u32 2147483648, %v4279_v60  ;;  %v1705_v41 = vshll.u32 %v6489_v45, %v1703_v42  ;;  %v1954_v56 = vadd.s32 1, %v3853_v46  ;;  %v3612_v2 = vshrl.u32 %v3611_v34, 23 }
 0x37e   :  { %v1706_v59 = vshrl.u32 %v1688_v10, %v1704_v48  ;;  %v1709_v0 = vadd.s32 127, %v1708_v30  ;;  %v3497_v37 = vxor.u32 2147483648, %v4281_v61  ;;  %v3357_v3 = vadd.s32 536870912, %v3356_v50 }
 0x37f   :  { %v3501_v58 = vsel %vm3499_vm15, %v3500_v52, %v4281_v61  ;;  %v1725_v24 = vadd.s32 3, %v1721_v63  ;;  %v1952_v19 = vor.u32 8388608, %v1951_v35  ;;  %vm1955_vm2 = vcmp.gt.s32.totalorder %v1954_v56, 0 }
 0x380   :  { %v1707_v38 = vor.u32 %v1706_v59, %v1705_v41  ;;  %v1710_v9 = vshll.u32 %v1709_v0, 23  ;;  %v3498_v53 = vsel %vm3496_vm13, %v4279_v60, %v3497_v37  ;;  %v6546_v47 = vshrl.u32 %v3357_v3, 30 }
 0x381   :  { %v3502_v45 = vsel %vm3495_vm12, %v3498_v53, %v3501_v58  ;;  %v1956_v11 = vsel %vm1955_vm2, %v1954_v56, 0  ;;  %v6552_v31 = vand.u32 8388607, %v3608_v49  ;;  %v3917_v25 = vadd.s32 4294967169, %v3612_v2 }
 0x382   :  { %v1711_v26 = vor.u32 4788187, %v1710_v9  ;;  %v3503_v51 = vsel %vm3492_vm14, nan, %v3502_v45  ;;  %v3359_v5 = vshll.u32 %v6546_v47, 30  ;;  %v1714_v36 = vcvt.s32.f32 %v1707_v38 }
 0x383   :  { %3741 = vst [vmem:[#allocation2 + $0xe8] sm:$0xff] %v3503_v51  ;;  %v1958_v43 = vand.u32 31, %v1956_v11  ;;  %v6557_v4 = vand.u32 3, %v1725_v24  ;;  %v3352_v28 = vadd.s32 %v6502_v1, %v6508_v57  ;;  %v6564_v39 = vadd.f32 %v6484_v62, %v295_v7 }
 0x384   :  { %v1712_v21 = vand.u32 2147483647, %v1711_v26  ;;  %v6561_v13 = vsub.s32 %v3356_v50, %v3359_v5  ;;  %v6566_v23 = vshll.u32 %v1952_v19, 8  ;;  %v3616_v10 = vor.u32 8388608, %v6552_v31 }
 0x385   :  { %v1959_v55 = vsub.s32 32, %v1958_v43  ;;  %v1957_v42 = vshrl.u32 %v1956_v11, 5  ;;  %v1961_v33 = vshll.u32 %v4333_v12, %v1958_v43  ;;  %v3618_v34 = vadd.s32 1, %v3917_v25 }
 0x386   :  { %v1715_v32 = vmul.f32 %v1714_v36, %v1712_v21  ;;  %v3362_v6 = vsub.s32 0, %v6561_v13  ;;  %v1964_v57 = vshll.u32 %v4334_v16, %v1958_v43  ;;  %v1967_v54 = vshll.u32 %v4335_v18, %v1958_v43 }
 0x387   :  { %v1962_v1 = vshrl.u32 %v4334_v16, %v1959_v55  ;;  %v1965_v30 = vshrl.u32 %v4335_v18, %v1959_v55  ;;  %v1968_v60 = vshrl.u32 %v4336_v20, %v1959_v55  ;;  %v1970_v50 = vshll.u32 %v4336_v20, %v1958_v43 }
 0x388   :  { %v1716_v48 = vxor.u32 2147483648, %v1715_v32  ;;  %v3906_v63 = vmin.u32 %v3362_v6, %v6561_v13  ;;  %v1971_v52 = vshrl.u32 %v4337_v22, %v1959_v55  ;;  %v3382_v0 = vsub.s32 4, %v6546_v47 }
 0x389   :  { %v1963_v35 = vor.u32 %v1962_v1, %v1961_v33  ;;  %v1966_v61 = vor.u32 %v1965_v30, %v1964_v57  ;;  %vm3619_vm3 = vcmp.gt.s32.totalorder %v3618_v34, 0  ;;  %v1969_v37 = vor.u32 %v1968_v60, %v1967_v54 }
 0x38a   :  { %v1717_v46 = vsel %vm1634_vm11, %v1716_v48, %v1715_v32  ;;  %v3364_v59 = vclz %v3906_v63  ;;  %v1972_v3 = vor.u32 %v1971_v52, %v1970_v50  ;;  %vm1976_vm4 = vcmp.lt.s32.totalorder %v1957_v42, 1 }
 0x38b   :  { %v1720_v41 = vsel %vm6515_vm10, %v6353_v14, %v1717_v46  ;;  %vm3298_vm5 = vcmp.lt.s32.totalorder %v6375_v17, 0  ;;  %v1973_v2 = vshll.u32 %v4337_v22, %v1958_v43  ;;  %v1974_v58 = vshrl.u32 %v4338_v29, %v1959_v55 }
 0x38c   :  { %4282 = vcosq.f32 %v1720_v41  ;;  %v3907_v56 = vadd.s32 4294967294, %v3364_v59  ;;  %v1960_v38 = vshrl.u32 %v4333_v12, %v1959_v55  ;;  %vm1978_vm6 = vcmp.lt.s32.totalorder %v1957_v42, 3 }
 0x38d   :  { %4284 = vsinq.f32 %v1720_v41  ;;  %vm1979_vm7 = vcmp.lt.s32.totalorder %v1957_v42, 4  ;;  %v1984_v27 = vsel %vm1976_vm4, %v1963_v35, %v1966_v61  ;;  %v1975_v9 = vor.u32 %v1974_v58, %v1973_v2 }
 0x38e   :  { %vm3908_vm8 = vcmp.lt.s32.totalorder %v3907_v56, 0  ;;  %v1981_v24 = vsel %vm1979_vm7, %v1969_v37, 2102212464  ;;  %v1985_v53 = vsel %vm1979_vm7, %v1972_v3, 920167782  ;;  %v1980_v45 = vsel %vm1976_vm4, %v1960_v38, %v1963_v35 }
 0x38f   :  { %v3367_v19 = vsel %vm3908_vm8, 0, %v3907_v56  ;;  %v1982_v26 = vsel %vm1978_vm6, %v1966_v61, %v1981_v24  ;;  %v1986_v11 = vsel %vm1978_vm6, %v1969_v37, %v1985_v53  ;;  %vm1977_vm9 = vcmp.lt.s32.totalorder %v1957_v42, 2 }
 0x390   :  { %v3368_v7 = vsub.s32 32, %v3367_v19  ;;  %v3372_v51 = vsub.s32 4294967266, %v3367_v19  ;;  %v1988_v5 = vsel %vm1976_vm4, %v1966_v61, %v1969_v37  ;;  %v3369_v25 = vshll.u32 %v6561_v13, %v3367_v19 }
 0x391   :  { %v1987_v21 = vsel %vm1977_vm9, %v1984_v27, %v1986_v11  ;;  %v1989_v36 = vsel %vm1979_vm7, %v1975_v9, 1326507024  ;;  %v3620_v43 = vsel %vm3619_vm3, %v3618_v34, 0  ;;  %v1983_v6 = vsel %vm1977_vm9, %v1980_v45, %v1982_v26 }
 0x392   :  { %v3370_v32 = vshrl.u32 %v3352_v28, %v3368_v7  ;;  %v3373_v55 = vadd.s32 127, %v3372_v51  ;;  %v1990_v33 = vsel %vm1978_vm6, %v1972_v3, %v1989_v36  ;;  %vm1728_vm11 = vcmp.eq.s32.totalorder %v6557_v4, 0 }
 0x393   :  { %v1991_v48 = vsel %vm1977_vm9, %v1988_v5, %v1990_v33  ;;  %v6602_v1 = vmul.u32.u64.low %v6566_v23, %v1987_v21  ;;  %v6603_v57 = vmul.u32.u64.high %v6566_v23, %v1987_v21, %v6602_v1  ;;  %v3622_v30 = vand.u32 31, %v3620_v43 }
 0x394   :  { %vm1727_vm10 = vcmp.lt.s32.totalorder %v6557_v4, 2  ;;  %vm6609_vm12 = vcmp.le.f32.partialorder %v3296_v15, 0.7853982  ;;  %v3371_v28 = vor.u32 %v3370_v32, %v3369_v25  ;;  %v3374_v42 = vshll.u32 %v3373_v55, 23 }
 0x395   :  { %v6614_v34 = vmul.u32.u64.low %v6566_v23, %v1991_v48  ;;  %v6615_v63 = vmul.u32.u64.high %v6566_v23, %v1991_v48, %v6614_v34  ;;  %vm1724_vm13 = vweird.f32 %v6353_v14  ;;  %vm1731_vm14 = vcmp.eq.s32.totalorder %v6557_v4, 2 }
 0x396   :  { %v3383_v54 = vsel %vm3298_vm5, %v3382_v0, %v6546_v47  ;;  %v3623_v60 = vsub.s32 32, %v3622_v30  ;;  %v6624_v15 = vshll.u32 %v3616_v10, 8  ;;  %v3375_v50 = vor.u32 4788187, %v3374_v42 }
 0x397   :  { %v1999_v46 = vmul.u32 %v6566_v23, %v1983_v6  ;;  %v6627_v35 = vshrl.u32 %v3620_v43, 5  ;;  %v3625_v61 = vshll.u32 %v4333_v12, %v3622_v30  ;;  %v2002_v52 = vadd.s32 1, %v6603_v57 }
 0x398   :  { %v3626_v41 = vshrl.u32 %v4334_v16, %v3623_v60  ;;  %v3628_v59 = vshll.u32 %v4334_v16, %v3622_v30  ;;  %v3631_v47 = vshll.u32 %v4335_v18, %v3622_v30  ;;  %v3376_v37 = vand.u32 2147483647, %v3375_v50 }
 0x399   :  { %v4283_v0 = vpop.eup %4282  ;;  %v3378_v31 = vcvt.s32.f32 %v3371_v28  ;;  %vm2001_vm15 = vc.u32 %v6615_v63, %v6602_v1  ;;  %v3629_v23 = vshrl.u32 %v4335_v18, %v3623_v60  ;;  %v3632_v2 = vshrl.u32 %v4336_v20, %v3623_v60 }
 0x39a   :  { %v4285_v10 = vpop.eup %4284  ;;  %v1732_v3 = vxor.u32 2147483648, %v4283_v0  ;;  %v2003_v56 = vsel %vm2001_vm15, %v2002_v52, %v6603_v57  ;;  %v3634_v58 = vshll.u32 %v4336_v20, %v3622_v30  ;;  %v3637_v24 = vshll.u32 %v4337_v22, %v3622_v30 }
 0x39b   :  { %v1729_v38 = vxor.u32 2147483648, %v4285_v10  ;;  %v3379_v27 = vmul.f32 %v3378_v31, %v3376_v37  ;;  %v2004_v9 = vadd.s32 %v2003_v56, %v1999_v46  ;;  %v3627_v19 = vor.u32 %v3626_v41, %v3625_v61 }
 0x39c   :  { %v1733_v53 = vsel %vm1731_vm14, %v1732_v3, %v4285_v10  ;;  %v3635_v45 = vshrl.u32 %v4337_v22, %v3623_v60  ;;  %v3638_v26 = vshrl.u32 %v4338_v29, %v3623_v60  ;;  %v3630_v5 = vor.u32 %v3629_v23, %v3628_v59 }
 0x39d   :  { %v1730_v11 = vsel %vm1728_vm11, %v4283_v0, %v1729_v38  ;;  %v3380_v7 = vxor.u32 2147483648, %v3379_v27  ;;  %v2005_v51 = vadd.s32 536870912, %v2004_v9  ;;  %v3385_v21 = vsel %vm6609_vm12, 0, %v3383_v54 }
 0x39e   :  { %v1734_v25 = vsel %vm1727_vm10, %v1730_v11, %v1733_v53  ;;  %v3633_v36 = vor.u32 %v3632_v2, %v3631_v47  ;;  %v3636_v43 = vor.u32 %v3635_v45, %v3634_v58  ;;  %v3639_v33 = vor.u32 %v3638_v26, %v3637_v24  ;;  %v375_v26 = vpop.f32.mrf.mxu1 }
 0x39f   :  { %v1735_v32 = vsel %vm1724_vm13, nan, %v1734_v25  ;;  %v3381_v55 = vsel %vm3298_vm5, %v3380_v7, %v3379_v27  ;;  %v2006_v6 = vshrl.u32 %v2005_v51, 30  ;;  %v3624_v4 = vshrl.u32 %v4333_v12, %v3623_v60 }
 0x3a0   :  { %3724 = vst [vmem:[#allocation2 + $0x60] sm:$0xff] %v1735_v32  ;;  %v3384_v48 = vsel %vm6609_vm12, %v6375_v17, %v3381_v55  ;;  %vm3640_vm0 = vcmp.lt.s32.totalorder %v6627_v35, 1  ;;  %vm3642_vm1 = vcmp.lt.s32.totalorder %v6627_v35, 3  ;;  %vm3643_vm2 = vcmp.lt.s32.totalorder %v6627_v35, 4 }
 0x3a1   :  { %4286 = vcosq.f32 %v3384_v48  ;;  %v2007_v57 = vshll.u32 %v2006_v6, 30  ;;  %v3648_v14 = vsel %vm3640_vm0, %v3627_v19, %v3630_v5  ;;  %v3645_v30 = vsel %vm3643_vm2, %v3633_v36, 2102212464 }
 0x3a2   :  { %4288 = vsinq.f32 %v3384_v48  ;;  %v3649_v28 = vsel %vm3643_vm2, %v3636_v43, 920167782  ;;  %v3652_v13 = vsel %vm3640_vm0, %v3630_v5, %v3633_v36  ;;  %vm3641_vm3 = vcmp.lt.s32.totalorder %v6627_v35, 2 }
 0x3a3   :  { %v6666_v42 = vsub.s32 %v2004_v9, %v2007_v57  ;;  %v3650_v34 = vsel %vm3642_vm1, %v3633_v36, %v3649_v28  ;;  %v3653_v54 = vsel %vm3643_vm2, %v3639_v33, 1326507024  ;;  %v3389_v60 = vadd.s32 3, %v3385_v21 }
 0x3a4   :  { %v2030_v50 = vsub.s32 4, %v2006_v6  ;;  %v3651_v46 = vsel %vm3641_vm3, %v3648_v14, %v3650_v34  ;;  %v3654_v61 = vsel %vm3642_vm1, %v3636_v43, %v3653_v54  ;;  %v3644_v41 = vsel %vm3640_vm0, %v3624_v4, %v3627_v19 }
 0x3a5   :  { %v2010_v52 = vsub.s32 0, %v6666_v42  ;;  %v3646_v59 = vsel %vm3642_vm1, %v3630_v5, %v3645_v30  ;;  %v3655_v47 = vsel %vm3641_vm3, %v3652_v13, %v3654_v61  ;;  %vm1946_vm4 = vcmp.lt.s32.totalorder %v6487_v40, 0 }
 0x3a6   :  { %v6683_v0 = vmul.u32.u64.low %v6624_v15, %v3655_v47  ;;  %v6684_v37 = vmul.u32.u64.high %v6624_v15, %v3655_v47, %v6683_v0  ;;  %v6687_v31 = vmul.u32.u64.low %v6624_v15, %v3651_v46  ;;  %v6688_v23 = vmul.u32.u64.high %v6624_v15, %v3651_v46, %v6687_v31 }
 0x3a7   :  { %v3854_v10 = vmin.u32 %v2010_v52, %v6666_v42  ;;  %v3390_v3 = vand.u32 3, %v3389_v60  ;;  %v2031_v56 = vsel %vm1946_vm4, %v2030_v50, %v2006_v6  ;;  %v3647_v2 = vsel %vm3641_vm3, %v3644_v41, %v3646_v59 }
 0x3a8   :  { %v1843_v58 = vand.u32 2139095040, %v6564_v39  ;;  %vm6699_vm5 = vcmp.le.f32.partialorder %v1944_v8, 0.7853982  ;;  %vm3665_vm6 = vc.u32 %v6684_v37, %v6687_v31  ;;  %v3666_v9 = vadd.s32 1, %v6688_v23 }
 0x3a9   :  { %v2012_v38 = vclz %v3854_v10  ;;  %v2033_v19 = vsel %vm6699_vm5, 0, %v2031_v56  ;;  %v3663_v35 = vmul.u32 %v6624_v15, %v3647_v2  ;;  %v1840_v45 = vand.u32 2147483647, %v6564_v39 }
 0x3aa   :  { %v1844_v24 = vshrl.u32 %v1843_v58, 23  ;;  %vm3391_vm7 = vcmp.lt.s32.totalorder %v3390_v3, 2  ;;  %vm3392_vm8 = vcmp.eq.s32.totalorder %v3390_v3, 0  ;;  %v3667_v8 = vsel %vm3665_vm6, %v3666_v9, %v6688_v23 }
 0x3ab   :  { %v3855_v53 = vadd.s32 4294967294, %v2012_v38  ;;  %vm3395_vm9 = vcmp.eq.s32.totalorder %v3390_v3, 2  ;;  %v2000_v7 = vadd.s32 %v6602_v1, %v6615_v63  ;;  %v3668_v51 = vadd.s32 %v3667_v8, %v3663_v35 }
 0x3ac   :  { %v3849_v11 = vadd.s32 4294967169, %v1844_v24  ;;  %v2037_v21 = vadd.s32 3, %v2033_v19  ;;  %v6713_v15 = vadd.f32 %v6484_v62, %v375_v26  ;;  %v1847_v33 = vand.u32 8388607, %v1840_v45 }
 0x3ad   :  { %vm3856_vm11 = vcmp.lt.s32.totalorder %v3855_v53, 0  ;;  %v3669_v1 = vadd.s32 536870912, %v3668_v51  ;;  %vm3388_vm12 = vweird.f32 %v6375_v17  ;;  %v3664_v59 = vadd.s32 %v6687_v31, %v6684_v37 }
 0x3ae   :  { %v4287_v5 = vpop.eup %4286  ;;  %v2015_v25 = vsel %vm3856_vm11, 0, %v3855_v53  ;;  %v1850_v36 = vadd.s32 1, %v3849_v11  ;;  %v3507_v34 = vand.u32 2139095040, %v6713_v15  ;;  %v6726_v41 = vand.u32 3, %v2037_v21 }
 0x3af   :  { %v4289_v43 = vpop.eup %4288  ;;  %v3396_v32 = vxor.u32 2147483648, %v4287_v5  ;;  %v2016_v55 = vsub.s32 32, %v2015_v25  ;;  %v2020_v6 = vsub.s32 4294967266, %v2015_v25  ;;  %v2017_v4 = vshll.u32 %v6666_v42, %v2015_v25 }
 0x3b0   :  { %v3393_v48 = vxor.u32 2147483648, %v4289_v43  ;;  %vm1851_vm10 = vcmp.gt.s32.totalorder %v1850_v36, 0  ;;  %v6720_v28 = vshrl.u32 %v3669_v1, 30  ;;  %v1848_v0 = vor.u32 8388608, %v1847_v33 }
 0x3b1   :  { %v3397_v63 = vsel %vm3395_vm9, %v3396_v32, %v4289_v43  ;;  %v2018_v57 = vshrl.u32 %v2000_v7, %v2016_v55  ;;  %v2021_v14 = vadd.s32 127, %v2020_v6  ;;  %v1852_v30 = vsel %vm1851_vm10, %v1850_v36, 0 }
 0x3b2   :  { %v3394_v62 = vsel %vm3392_vm8, %v4287_v5, %v3393_v48  ;;  %v1854_v13 = vand.u32 31, %v1852_v30  ;;  %v3671_v46 = vshll.u32 %v6720_v28, 30  ;;  %v3508_v17 = vshrl.u32 %v3507_v34, 23 }
 0x3b3   :  { %v3398_v54 = vsel %vm3391_vm7, %v3394_v62, %v3397_v63  ;;  %v2019_v60 = vor.u32 %v2018_v57, %v2017_v4  ;;  %v2022_v42 = vshll.u32 %v2021_v14, 23  ;;  %v1853_v24 = vshrl.u32 %v1852_v30, 5 }
 0x3b4   :  { %v3399_v50 = vsel %vm3388_vm12, nan, %v3398_v54  ;;  %v1855_v61 = vsub.s32 32, %v1854_v13  ;;  %v6729_v47 = vsub.s32 %v3668_v51, %v3671_v46  ;;  %v1857_v56 = vshll.u32 %v4333_v12, %v1854_v13 }
 0x3b5   :  { %3740 = vst [vmem:[#allocation2 + $0xe0] sm:$0xff] %v3399_v50  ;;  %v2023_v52 = vor.u32 4788187, %v2022_v42  ;;  %v2026_v3 = vcvt.s32.f32 %v2019_v60  ;;  %v1860_v38 = vshll.u32 %v4334_v16, %v1854_v13  ;;  %v1863_v9 = vshll.u32 %v4335_v18, %v1854_v13 }
 0x3b6   :  { %v1858_v23 = vshrl.u32 %v4334_v16, %v1855_v61  ;;  %v1861_v2 = vshrl.u32 %v4335_v18, %v1855_v61  ;;  %v3674_v58 = vsub.s32 0, %v6729_v47  ;;  %v1864_v37 = vshrl.u32 %v4336_v20, %v1855_v61 }
 0x3b7   :  { %v2024_v10 = vand.u32 2147483647, %v2023_v52  ;;  %v1866_v53 = vshll.u32 %v4336_v20, %v1854_v13  ;;  %v1867_v19 = vshrl.u32 %v4337_v22, %v1855_v61  ;;  %v1869_v5 = vshll.u32 %v4337_v22, %v1854_v13 }
 0x3b8   :  { %v3918_v35 = vmin.u32 %v3674_v58, %v6729_v47  ;;  %v1859_v26 = vor.u32 %v1858_v23, %v1857_v56  ;;  %v1862_v8 = vor.u32 %v1861_v2, %v1860_v38  ;;  %v1865_v11 = vor.u32 %v1864_v37, %v1863_v9 }
 0x3b9   :  { %v2027_v31 = vmul.f32 %v2026_v3, %v2024_v10  ;;  %v1868_v51 = vor.u32 %v1867_v19, %v1866_v53  ;;  %v1870_v25 = vshrl.u32 %v4338_v29, %v1855_v61  ;;  %v3694_v36 = vsub.s32 4, %v6720_v28 }
 0x3ba   :  { %v3676_v21 = vclz %v3918_v35  ;;  %v1888_v43 = vshll.u32 %v1848_v0, 8  ;;  %v3913_v32 = vadd.s32 4294967169, %v3508_v17  ;;  %v1856_v6 = vshrl.u32 %v4333_v12, %v1855_v61 }
 0x3bb   :  { %v2028_v7 = vxor.u32 2147483648, %v2027_v31  ;;  %v1871_v33 = vor.u32 %v1870_v25, %v1869_v5  ;;  %vm1872_vm13 = vcmp.lt.s32.totalorder %v1853_v24, 1  ;;  %vm1874_vm14 = vcmp.lt.s32.totalorder %v1853_v24, 3 }
 0x3bc   :  { %v3919_v4 = vadd.s32 4294967294, %v3676_v21  ;;  %vm1875_vm15 = vcmp.lt.s32.totalorder %v1853_v24, 4  ;;  %v1880_v63 = vsel %vm1872_vm13, %v1859_v26, %v1862_v8  ;;  %vm1873_vm1 = vcmp.lt.s32.totalorder %v1853_v24, 2 }
 0x3bd   :  { %v2029_v55 = vsel %vm1946_vm4, %v2028_v7, %v2027_v31  ;;  %v1877_v1 = vsel %vm1875_vm15, %v1865_v11, 2102212464  ;;  %v1881_v57 = vsel %vm1875_vm15, %v1868_v51, 920167782  ;;  %v1876_v62 = vsel %vm1872_vm13, %v1856_v6, %v1859_v26 }
 0x3be   :  { %v2032_v48 = vsel %vm6699_vm5, %v6487_v40, %v2029_v55  ;;  %vm3920_vm0 = vcmp.lt.s32.totalorder %v3919_v4, 0  ;;  %v1882_v14 = vsel %vm1874_vm14, %v1865_v11, %v1881_v57  ;;  %v1884_v13 = vsel %vm1872_vm13, %v1862_v8, %v1865_v11 }
 0x3bf   :  { %4290 = vcosq.f32 %v2032_v48  ;;  %v3679_v30 = vsel %vm3920_vm0, 0, %v3919_v4  ;;  %v1883_v27 = vsel %vm1873_vm1, %v1880_v63, %v1882_v14  ;;  %v1878_v60 = vsel %vm1874_vm14, %v1862_v8, %v1877_v1 }
 0x3c0   :  { %4292 = vsinq.f32 %v2032_v48  ;;  %v3680_v34 = vsub.s32 32, %v3679_v30  ;;  %v3684_v54 = vsub.s32 4294967266, %v3679_v30  ;;  %v1885_v42 = vsel %vm1875_vm15, %v1871_v33, 1326507024 }
 0x3c1   :  { %v3681_v50 = vshll.u32 %v6729_v47, %v3679_v30  ;;  %v1886_v46 = vsel %vm1874_vm14, %v1868_v51, %v1885_v42  ;;  %v6761_v61 = vmul.u32.u64.low %v1888_v43, %v1883_v27  ;;  %v6762_v52 = vmul.u32.u64.high %v1888_v43, %v1883_v27, %v6761_v61 }
 0x3c2   :  { %v3682_v0 = vshrl.u32 %v3664_v59, %v3680_v34  ;;  %v3685_v23 = vadd.s32 127, %v3684_v54  ;;  %v1887_v17 = vsel %vm1873_vm1, %v1884_v13, %v1886_v46  ;;  %v3514_v10 = vadd.s32 1, %v3913_v32 }
 0x3c3   :  { %vm3610_vm2 = vcmp.lt.s32.totalorder %v6511_v44, 0  ;;  %v6767_v3 = vmul.u32.u64.low %v1888_v43, %v1887_v17  ;;  %v6768_v56 = vmul.u32.u64.high %v1888_v43, %v1887_v17, %v6767_v3  ;;  %v1879_v47 = vsel %vm1873_vm1, %v1876_v62, %v1878_v60 }
 0x3c4   :  { %v3683_v2 = vor.u32 %v3682_v0, %v3681_v50  ;;  %v3686_v58 = vshll.u32 %v3685_v23, 23  ;;  %vm3515_vm3 = vcmp.gt.s32.totalorder %v3514_v10, 0  ;;  %vm6773_vm4 = vcmp.le.f32.partialorder %v3608_v49, 0.7853982 }
 0x3c5   :  { %v1898_v59 = vadd.s32 1, %v6762_v52  ;;  %v3504_v9 = vand.u32 2147483647, %v6713_v15  ;;  %v3516_v37 = vsel %vm3515_vm3, %v3514_v10, 0  ;;  %vm2039_vm5 = vcmp.lt.s32.totalorder %v6726_v41, 2 }
 0x3c6   :  { %v3687_v31 = vor.u32 4788187, %v3686_v58  ;;  %v3695_v24 = vsel %vm3610_vm2, %v3694_v36, %v6720_v28  ;;  %v3518_v53 = vand.u32 31, %v3516_v37  ;;  %vm2036_vm6 = vweird.f32 %v6487_v40 }
 0x3c7   :  { %vm2040_vm7 = vcmp.eq.s32.totalorder %v6726_v41, 0  ;;  %vm2043_vm8 = vcmp.eq.s32.totalorder %v6726_v41, 2  ;;  %v1895_v49 = vmul.u32 %v1888_v43, %v1879_v47  ;;  %vm1897_vm9 = vc.u32 %v6768_v56, %v6761_v61 }
 0x3c8   :  { %v3688_v19 = vand.u32 2147483647, %v3687_v31  ;;  %v3690_v35 = vcvt.s32.f32 %v3683_v2  ;;  %v1899_v26 = vsel %vm1897_vm9, %v1898_v59, %v6762_v52  ;;  %v3519_v8 = vsub.s32 32, %v3518_v53 }
 0x3c9   :  { %v3697_v11 = vsel %vm6773_vm4, 0, %v3695_v24  ;;  %v1900_v28 = vadd.s32 %v1899_v26, %v1895_v49  ;;  %v3511_v7 = vand.u32 8388607, %v3504_v9  ;;  %v6793_v51 = vshrl.u32 %v3516_v37, 5 }
 0x3ca   :  { %v3691_v25 = vmul.f32 %v3690_v35, %v3688_v19  ;;  %v3521_v21 = vshll.u32 %v4333_v12, %v3518_v53  ;;  %v3522_v36 = vshrl.u32 %v4334_v16, %v3519_v8  ;;  %v3524_v43 = vshll.u32 %v4334_v16, %v3518_v53 }
 0x3cb   :  { %v1901_v6 = vadd.s32 536870912, %v1900_v28  ;;  %v3525_v33 = vshrl.u32 %v4335_v18, %v3519_v8  ;;  %v3527_v48 = vshll.u32 %v4335_v18, %v3518_v53  ;;  %v3530_v63 = vshll.u32 %v4336_v20, %v3518_v53 }
 0x3cc   :  { %v4291_v5 = vpop.eup %4290  ;;  %v3692_v1 = vxor.u32 2147483648, %v3691_v25  ;;  %v3531_v57 = vshrl.u32 %v4337_v22, %v3519_v8  ;;  %v3523_v62 = vor.u32 %v3522_v36, %v3521_v21  ;;  %v3528_v16 = vshrl.u32 %v4336_v20, %v3519_v8 }
 0x3cd   :  { %v4293_v32 = vpop.eup %4292  ;;  %v2044_v55 = vxor.u32 2147483648, %v4291_v5  ;;  %v6804_v30 = vshrl.u32 %v1901_v6, 30  ;;  %v3533_v13 = vshll.u32 %v4337_v22, %v3518_v53  ;;  %v3534_v34 = vshrl.u32 %v4338_v29, %v3519_v8 }
 0x3ce   :  { %v2041_v4 = vxor.u32 2147483648, %v4293_v32  ;;  %v3693_v18 = vsel %vm3610_vm2, %v3692_v1, %v3691_v25  ;;  %v3526_v20 = vor.u32 %v3525_v33, %v3524_v43  ;;  %v3532_v46 = vor.u32 %v3531_v57, %v3530_v63 }
 0x3cf   :  { %v2045_v14 = vsel %vm2043_vm8, %v2044_v55, %v4293_v32  ;;  %v3696_v60 = vsel %vm6773_vm4, %v6511_v44, %v3693_v18  ;;  %v1903_v42 = vshll.u32 %v6804_v30, 30  ;;  %v3535_v52 = vor.u32 %v3534_v34, %v3533_v13 }
 0x3d0   :  { %v2042_v27 = vsel %vm2040_vm7, %v4291_v5, %v2041_v4  ;;  %4294 = vcosq.f32 %v3696_v60  ;;  %v3529_v29 = vor.u32 %v3528_v16, %v3527_v48  ;;  %v3701_v0 = vadd.s32 3, %v3697_v11 }
 0x3d1   :  { %v2046_v54 = vsel %vm2039_vm5, %v2042_v27, %v2045_v14  ;;  %4296 = vsinq.f32 %v3696_v60  ;;  %v1904_v22 = vsub.s32 %v1900_v28, %v1903_v42  ;;  %v3512_v41 = vor.u32 8388608, %v3511_v7 }
 0x3d2   :  { %v2047_v50 = vsel %vm2036_vm6, nan, %v2046_v54  ;;  %vm3536_vm11 = vcmp.lt.s32.totalorder %v6793_v51, 1  ;;  %v3520_v17 = vshrl.u32 %v4333_v12, %v3519_v8  ;;  %vm3539_vm10 = vcmp.lt.s32.totalorder %v6793_v51, 4 }
 0x3d3   :  { %3727 = vst [vmem:[#allocation2 + $0x78] sm:$0xff] %v2047_v50  ;;  %v1906_v23 = vsub.s32 0, %v1904_v22  ;;  %v3544_v40 = vsel %vm3536_vm11, %v3523_v62, %v3526_v20  ;;  %vm3537_vm12 = vcmp.lt.s32.totalorder %v6793_v51, 2  ;;  %vm3538_vm13 = vcmp.lt.s32.totalorder %v6793_v51, 3 }
 0x3d4   :  { %v3545_v10 = vsel %vm3539_vm10, %v3532_v46, 920167782  ;;  %v3549_v3 = vsel %vm3539_vm10, %v3535_v52, 1326507024  ;;  %v3541_v58 = vsel %vm3539_vm10, %v3529_v29, 2102212464  ;;  %v3548_v38 = vsel %vm3536_vm11, %v3526_v20, %v3529_v29 }
 0x3d5   :  { %v3850_v2 = vmin.u32 %v1906_v23, %v1904_v22  ;;  %v3546_v47 = vsel %vm3538_vm13, %v3529_v29, %v3545_v10  ;;  %v3550_v59 = vsel %vm3538_vm13, %v3532_v46, %v3549_v3  ;;  %v3552_v37 = vshll.u32 %v3512_v41, 8 }
 0x3d6   :  { %v3547_v12 = vsel %vm3537_vm12, %v3544_v40, %v3546_v47  ;;  %v3540_v24 = vsel %vm3536_vm11, %v3520_v17, %v3523_v62  ;;  %v3542_v53 = vsel %vm3538_vm13, %v3526_v20, %v3541_v58  ;;  %v3551_v49 = vsel %vm3537_vm12, %v3548_v38, %v3550_v59 }
 0x3d7   :  { %v1908_v31 = vclz %v3850_v2  ;;  %v6836_v19 = vmul.u32.u64.low %v3552_v37, %v3547_v12  ;;  %v6837_v35 = vmul.u32.u64.high %v3552_v37, %v3547_v12, %v6836_v19  ;;  %v3702_v26 = vand.u32 3, %v3701_v0 }
 0x3d8   :  { %v6839_v11 = vmul.u32.u64.low %v3552_v37, %v3551_v49  ;;  %v6840_v28 = vmul.u32.u64.high %v3552_v37, %v3551_v49, %v6839_v11  ;;  %v3543_v7 = vsel %vm3537_vm12, %v3540_v24, %v3542_v53  ;;  %v1896_v36 = vadd.s32 %v6761_v61, %v6768_v56 }
 0x3d9   :  { %v3851_v8 = vadd.s32 4294967294, %v1908_v31  ;;  %v3562_v25 = vadd.s32 1, %v6837_v35  ;;  %vm3707_vm15 = vcmp.eq.s32.totalorder %v3702_v26, 2  ;;  %v3559_v48 = vmul.u32 %v3552_v37, %v3543_v7 }
 0x3da   :  { %vm3561_vm0 = vc.u32 %v6840_v28, %v6836_v19  ;;  %vm3704_vm1 = vcmp.eq.s32.totalorder %v3702_v26, 0  ;;  %vm3703_vm2 = vcmp.lt.s32.totalorder %v3702_v26, 2  ;;  %vm3700_vm3 = vweird.f32 %v6511_v44 }
 0x3db   :  { %vm3852_vm14 = vcmp.lt.s32.totalorder %v3851_v8, 0  ;;  %v3563_v63 = vsel %vm3561_vm0, %v3562_v25, %v6837_v35  ;;  %vm1842_vm4 = vcmp.lt.s32.totalorder %v6564_v39, 0  ;;  %v1926_v52 = vsub.s32 4, %v6804_v30 }
 0x3dc   :  { %v1911_v5 = vsel %vm3852_vm14, 0, %v3851_v8  ;;  %v3564_v14 = vadd.s32 %v3563_v63, %v3559_v48  ;;  %vm1841_vm5 = vcmp.le.f32.partialorder %v1840_v45, 0.7853982  ;;  %v3560_v2 = vadd.s32 %v6836_v19, %v6840_v28 }
 0x3dd   :  { %v4295_v21 = vpop.eup %4294  ;;  %v1912_v43 = vsub.s32 32, %v1911_v5  ;;  %v1916_v32 = vsub.s32 4294967266, %v1911_v5  ;;  %v1913_v33 = vshll.u32 %v1904_v22, %v1911_v5  ;;  %v1927_v41 = vsel %vm1842_vm4, %v1926_v52, %v6804_v30 }
 0x3de   :  { %v4297_v55 = vpop.eup %4296  ;;  %v3708_v6 = vxor.u32 2147483648, %v4295_v21  ;;  %v3565_v27 = vadd.s32 536870912, %v3564_v14  ;;  %v1929_v40 = vsel %vm1841_vm5, 0, %v1927_v41  ;;  %vm1932_vm11 = vweird.f32 %v6564_v39 }
 0x3df   :  { %v3705_v4 = vxor.u32 2147483648, %v4297_v55  ;;  %v1914_v1 = vshrl.u32 %v1896_v36, %v1912_v43  ;;  %v1917_v51 = vadd.s32 127, %v1916_v32  ;;  %v1933_v3 = vadd.s32 3, %v1929_v40 }
 0x3e0   :  { %v3709_v57 = vsel %vm3707_vm15, %v3708_v6, %v4297_v55  ;;  %v3566_v34 = vshrl.u32 %v3565_v27, 30  ;;  %vm3506_vm10 = vcmp.lt.s32.totalorder %v6713_v15, 0  ;;  %vm3505_vm12 = vcmp.le.f32.partialorder %v3504_v9, 0.7853982 }
 0x3e1   :  { %v3706_v62 = vsel %vm3704_vm1, %v4295_v21, %v3705_v4  ;;  %v1915_v16 = vor.u32 %v1914_v1, %v1913_v33  ;;  %v1918_v61 = vshll.u32 %v1917_v51, 23  ;;  %v1934_v59 = vand.u32 3, %v1933_v3 }
 0x3e2   :  { %v3710_v56 = vsel %vm3703_vm2, %v3706_v62, %v3709_v57  ;;  %v3567_v42 = vshll.u32 %v3566_v34, 30  ;;  %v3590_v21 = vsub.s32 4, %v3566_v34  ;;  %vm3596_vm0 = vweird.f32 %v6713_v15 }
 0x3e3   :  { %v3711_v18 = vsel %vm3700_vm3, nan, %v3710_v56  ;;  %v1919_v13 = vor.u32 4788187, %v1918_v61  ;;  %v1922_v60 = vcvt.s32.f32 %v1915_v16  ;;  %vm1939_vm7 = vcmp.eq.s32.totalorder %v1934_v59, 2 }
 0x3e4   :  { %3743 = vst [vmem:[#allocation2 + $0xf8] sm:$0xff] %v3711_v18  ;;  %v3568_v50 = vsub.s32 %v3564_v14, %v3567_v42  ;;  %vm1936_vm8 = vcmp.eq.s32.totalorder %v1934_v59, 0  ;;  %vm1935_vm9 = vcmp.lt.s32.totalorder %v1934_v59, 2  ;;  %v3591_v32 = vsel %vm3506_vm10, %v3590_v21, %v3566_v34 }
 0x3e5   :  { %v1920_v54 = vand.u32 2147483647, %v1919_v13  ;;  %v3593_v55 = vsel %vm3505_vm12, 0, %v3591_v32 }
 0x3e6   :  { %v3570_v22 = vsub.s32 0, %v3568_v50  ;;  %v3597_v6 = vadd.s32 3, %v3593_v55 }
 0x3e7   :  { %v1923_v20 = vmul.f32 %v1922_v60, %v1920_v54 }
 0x3e8   :  { %v3914_v0 = vmin.u32 %v3570_v22, %v3568_v50  ;;  %v3598_v33 = vand.u32 3, %v3597_v6 }
 0x3e9   :  { %v1924_v46 = vxor.u32 2147483648, %v1923_v20 }
 0x3ea   :  { %v3572_v23 = vclz %v3914_v0  ;;  %vm3603_vm13 = vcmp.eq.s32.totalorder %v3598_v33, 2  ;;  %vm3600_vm14 = vcmp.eq.s32.totalorder %v3598_v33, 0  ;;  %vm3599_vm15 = vcmp.lt.s32.totalorder %v3598_v33, 2 }
 0x3eb   :  { %v1925_v44 = vsel %vm1842_vm4, %v1924_v46, %v1923_v20 }
 0x3ec   :  { %v1928_v29 = vsel %vm1841_vm5, %v6564_v39, %v1925_v44  ;;  %v3915_v17 = vadd.s32 4294967294, %v3572_v23 }
 0x3ed   :  { %4298 = vcosq.f32 %v1928_v29 }
 0x3ee   :  { %4300 = vsinq.f32 %v1928_v29  ;;  %vm3916_vm6 = vcmp.lt.s32.totalorder %v3915_v17, 0 }
 0x3ef   :  { %v3575_v10 = vsel %vm3916_vm6, 0, %v3915_v17 }
 0x3f0   :  { %v3576_v58 = vsub.s32 32, %v3575_v10  ;;  %v3580_v47 = vsub.s32 4294967266, %v3575_v10  ;;  %v3577_v38 = vshll.u32 %v3568_v50, %v3575_v10 }
 0x3f2   :  { %v3578_v45 = vshrl.u32 %v3560_v2, %v3576_v58  ;;  %v3581_v12 = vadd.s32 127, %v3580_v47 }
 0x3f4   :  { %v3579_v37 = vor.u32 %v3578_v45, %v3577_v38  ;;  %v3582_v31 = vshll.u32 %v3581_v12, 23 }
 0x3f6   :  { %v3583_v53 = vor.u32 4788187, %v3582_v31  ;;  %v3586_v8 = vcvt.s32.f32 %v3579_v37 }
 0x3f8   :  { %v3584_v26 = vand.u32 2147483647, %v3583_v53 }
 0x3fa   :  { %v4299_v24 = vpop.eup %4298  ;;  %v3587_v28 = vmul.f32 %v3586_v8, %v3584_v26 }
 0x3fb   :  { %v4301_v30 = vpop.eup %4300  ;;  %v1940_v49 = vxor.u32 2147483648, %v4299_v24 }
 0x3fc   :  { %v1937_v35 = vxor.u32 2147483648, %v4301_v30  ;;  %v3588_v25 = vxor.u32 2147483648, %v3587_v28 }
 0x3fd   :  { %v1941_v11 = vsel %vm1939_vm7, %v1940_v49, %v4301_v30 }
 0x3fe   :  { %v1938_v19 = vsel %vm1936_vm8, %v4299_v24, %v1937_v35  ;;  %v3589_v36 = vsel %vm3506_vm10, %v3588_v25, %v3587_v28 }
 0x3ff   :  { %v1942_v7 = vsel %vm1935_vm9, %v1938_v19, %v1941_v11  ;;  %v3592_v43 = vsel %vm3505_vm12, %v6713_v15, %v3589_v36 }
 0x400   :  { %v1943_v5 = vsel %vm1932_vm11, nan, %v1942_v7  ;;  %4302 = vcosq.f32 %v3592_v43 }
 0x401   :  { %3726 = vst [vmem:[#allocation2 + $0x70] sm:$0xff] %v1943_v5  ;;  %4304 = vsinq.f32 %v3592_v43 }
 0x40d   :  { %v4303_v39 = vpop.eup %4302 }
 0x40e   :  { %v4305_v48 = vpop.eup %4304  ;;  %v3604_v4 = vxor.u32 2147483648, %v4303_v39 }
 0x40f   :  { %v3601_v1 = vxor.u32 2147483648, %v4305_v48 }
 0x410   :  { %v3605_v51 = vsel %vm3603_vm13, %v3604_v4, %v4305_v48 }
 0x411   :  { %v3602_v9 = vsel %vm3600_vm14, %v4303_v39, %v3601_v1 }
 0x412   :  { %v3606_v63 = vsel %vm3599_vm15, %v3602_v9, %v3605_v51 }
 0x413   :  { %v3607_v57 = vsel %vm3596_vm0, nan, %v3606_v63 }
 0x414   :  { %3742 = vst [vmem:[#allocation2 + $0xf0] sm:$0xff] %v3607_v57 }
 0x415   :  { %4322 = shalt.err (!%p4319_p4)
}
 0x416   :  { %s4340_s21 = smov 128   ;;  %s4341_s22 = smov 8  }
 0x417   :  { %3755 = dma.vmem_to_hbm [thread:$0]  %s3750_s19, 4096, %s6869_s3, [#allocation3], %s4340_s21, %s4340_s21, %s4341_s22  }
 0x418   :  { %4331 = dma.done.wait [#allocation3], 4096  }
 0x419   :  { %4332 = vsyncadd [#allocation3], 4294963200 }
 0x41a   :  { %3759 = vsyncpa [#allocation3], 1 }

</bundles_post_ra>
